<compile_context>
chip_gen: v7x
topology: tpu7x:2x2x1
jax: 0.10.0
libtpu: 0.0.40
codegen_flags: <defaults>
</compile_context>

<pallas_src>
import functools

import jax
import jax.numpy as jnp
from jax.experimental import pallas as pl
from jax.experimental.pallas import tpu as pltpu


# ----------------------------------------------------------------------------
# Tiling helpers
# ----------------------------------------------------------------------------
def _pick_time_chunk(seq_len, batch, target=16, max_unroll=64):
    """Time chunk tc: tc | T and (tc*batch) % 8 == 0 (sublane-legal block)."""
    aligned = [t for t in range(1, min(seq_len, max_unroll) + 1)
               if seq_len % t == 0 and (t * batch) % 8 == 0]
    if aligned:
        under = [t for t in aligned if t <= target]
        return max(under) if under else min(aligned)
    if seq_len <= max_unroll:
        return seq_len  # single full-sequence chunk (block == full array is legal)
    # TODO(synk): pad T (and reset the backward state at the pad boundary).
    raise NotImplementedError("no legal time chunk for this (T, B)")


def _pick_row_tile(total_rows, target=512):
    """Row tile for the projection GEMM: multiple of 8 dividing total_rows."""
    if total_rows <= target:
        return total_rows
    best = None
    for t in range(8, target + 1, 8):
        if total_rows % t == 0:
            best = t
    return best if best is not None else total_rows


# ----------------------------------------------------------------------------
# Pallas kernels
# ----------------------------------------------------------------------------
def bilstm_chunk_kernel(
    # inputs
    xf_ref, xb_ref,                       # (tc*B, D) bf16 fwd / bwd chunk
    wih_f_hbm, whh_f_hbm, bf_ref,         # HBM weight refs, (1, 4c) f32 bias
    wih_b_hbm, whh_b_hbm, bb_ref,
    # outputs
    of_ref, ob_ref,                       # (tc*B, cdim) bf16
    # scratch
    wih_f_vm, whh_f_vm, wih_b_vm, whh_b_vm, w_sem,
    hf_ref, cf_ref, hb_ref, cb_ref,       # (B, cdim) f32 state across chunks
    xgf, xgb,                             # (tc*B, 4c) f32 input->gate
    obuf_f, obuf_b,                       # (tc*B, cdim) f32 staged outputs
    *, cdim, tc, batch):
    """Fused bidirectional LSTM over one time chunk (grid axis 0 = chunks).

    Forward direction consumes chunk i in ascending local order; backward
    direction consumes chunk (nc-1-i) in descending local order.  Recurrent
    state is carried in registers inside the chunk and flushed to VMEM
    scratch once per chunk so it survives across grid steps.
    """
    @pl.when(pl.program_id(0) == 0)
    def _init():
        # One-time weight residency: single-buffered VMEM copies of the
        # constant weights (instead of double-buffered pipelined blocks).
        copies = (
            pltpu.make_async_copy(wih_f_hbm, wih_f_vm, w_sem.at[0]),
            pltpu.make_async_copy(whh_f_hbm, whh_f_vm, w_sem.at[1]),
            pltpu.make_async_copy(wih_b_hbm, wih_b_vm, w_sem.at[2]),
            pltpu.make_async_copy(whh_b_hbm, whh_b_vm, w_sem.at[3]),
        )
        for c in copies:
            c.start()
        for c in copies:
            c.wait()
        hf_ref[...] = jnp.zeros_like(hf_ref)
        cf_ref[...] = jnp.zeros_like(cf_ref)
        hb_ref[...] = jnp.zeros_like(hb_ref)
        cb_ref[...] = jnp.zeros_like(cb_ref)

    # Whole-chunk input->gate GEMMs: one big MXU matmul per direction,
    # hoisted off the sequential recurrence path.  No reshapes: inputs
    # already arrive as flat (tc*B, D) bf16 blocks.
    xgf[...] = (jnp.dot(xf_ref[...], wih_f_vm[...],
                        preferred_element_type=jnp.float32) + bf_ref[...])
    xgb[...] = (jnp.dot(xb_ref[...], wih_b_vm[...],
                        preferred_element_type=jnp.float32) + bb_ref[...])

    whh_f = whh_f_vm[...]
    whh_b = whh_b_vm[...]

    def cell_step(s_local, xg, whh, h, c, out_buf):
        """One LSTM cell step (gate order after init permutation: [i,f,o,g])."""
        r0 = s_local * batch                                  # static offset
        gates = xg[r0:r0 + batch, :] + jnp.dot(
            h.astype(jnp.bfloat16), whh, preferred_element_type=jnp.float32)
        sig = jax.nn.sigmoid(gates[:, : 3 * cdim])            # i | f | o
        g_g = jnp.tanh(gates[:, 3 * cdim:])
        c_new = sig[:, cdim:2 * cdim] * c + sig[:, :cdim] * g_g
        h_new = sig[:, 2 * cdim:3 * cdim] * jnp.tanh(c_new)
        out_buf[r0:r0 + batch, :] = h_new
        return h_new, c_new

    # State in registers for the whole chunk; fully unrolled static loop
    # (tc is small, B=2 keeps per-step slices sub-tile -> static indexing).
    hf, cf = hf_ref[...], cf_ref[...]
    hb, cb = hb_ref[...], cb_ref[...]
    for s in range(tc):
        hf, cf = cell_step(s, xgf, whh_f, hf, cf, obuf_f)          # fwd
        hb, cb = cell_step(tc - 1 - s, xgb, whh_b, hb, cb, obuf_b)  # bwd
    hf_ref[...] = hf
    cf_ref[...] = cf
    hb_ref[...] = hb
    cb_ref[...] = cb

    # Single dense (bf16) store of the whole chunk's outputs.
    of_ref[...] = obuf_f[...].astype(of_ref.dtype)
    ob_ref[...] = obuf_b[...].astype(ob_ref.dtype)


def proj_tanh_kernel(hf_ref, hb_ref, wpf_ref, wpb_ref, bp_ref, o_ref):
    """tanh(h_fwd @ Wp_top + h_bwd @ Wp_bot + b) for one flat row tile."""
    y = (jnp.dot(hf_ref[...], wpf_ref[...], preferred_element_type=jnp.float32)
         + jnp.dot(hb_ref[...], wpb_ref[...], preferred_element_type=jnp.float32)
         + bp_ref[...])
    o_ref[...] = jnp.tanh(y).astype(o_ref.dtype)


# ----------------------------------------------------------------------------
# Wrappers
# ----------------------------------------------------------------------------
def bilstm_layer(x2, p, *, seq_len, batch, tc):
    """Fused bidirectional LSTM.  x2: (T*B, D) bf16 -> two (T*B, cdim) bf16."""
    rows_total, in_dim = x2.shape
    cdim = p["whh_f"].shape[0]
    gdim = 4 * cdim
    nc = seq_len // tc
    rows = tc * batch

    fwd_idx = lambda i: (i, 0)              # noqa: E731
    bwd_idx = lambda i: (nc - 1 - i, 0)     # noqa: E731
    const_b = lambda i: (0, 0)              # noqa: E731
    hbm = pl.BlockSpec(memory_space=pl.ANY)

    return pl.pallas_call(
        functools.partial(bilstm_chunk_kernel, cdim=cdim, tc=tc, batch=batch),
        out_shape=(jax.ShapeDtypeStruct((rows_total, cdim), jnp.bfloat16),
                   jax.ShapeDtypeStruct((rows_total, cdim), jnp.bfloat16)),
        grid=(nc,),
        in_specs=[
            pl.BlockSpec((rows, in_dim), fwd_idx),   # x, forward chunk
            pl.BlockSpec((rows, in_dim), bwd_idx),   # x, backward chunk
            hbm, hbm,                                # wih_f, whh_f (HBM)
            pl.BlockSpec((1, gdim), const_b),        # b_f
            hbm, hbm,                                # wih_b, whh_b (HBM)
            pl.BlockSpec((1, gdim), const_b),        # b_b
        ],
        out_specs=(pl.BlockSpec((rows, cdim), fwd_idx),
                   pl.BlockSpec((rows, cdim), bwd_idx)),
        scratch_shapes=[
            pltpu.VMEM((in_dim, gdim), jnp.bfloat16),   # wih_f resident copy
            pltpu.VMEM((cdim, gdim), jnp.bfloat16),     # whh_f
            pltpu.VMEM((in_dim, gdim), jnp.bfloat16),   # wih_b
            pltpu.VMEM((cdim, gdim), jnp.bfloat16),     # whh_b
            pltpu.SemaphoreType.DMA((4,)),
            pltpu.VMEM((batch, cdim), jnp.float32),     # h_f
            pltpu.VMEM((batch, cdim), jnp.float32),     # c_f
            pltpu.VMEM((batch, cdim), jnp.float32),     # h_b
            pltpu.VMEM((batch, cdim), jnp.float32),     # c_b
            pltpu.VMEM((rows, gdim), jnp.float32),      # x->gates fwd
            pltpu.VMEM((rows, gdim), jnp.float32),      # x->gates bwd
            pltpu.VMEM((rows, cdim), jnp.float32),      # staged h_f chunk
            pltpu.VMEM((rows, cdim), jnp.float32),      # staged h_b chunk
        ],
        compiler_params=pltpu.CompilerParams(
            dimension_semantics=("arbitrary",)),        # sequential recurrence
    )(x2, x2, p["wih_f"], p["whh_f"], p["b_f"],
      p["wih_b"], p["whh_b"], p["b_b"])


def project_layer(h_f, h_b, p, *, out_dtype):
    """tanh(concat(h_f, h_b) @ Wp^T + b) without materializing the concat."""
    rows_total, cdim = h_f.shape
    hdim = p["bp"].shape[-1]
    tr = _pick_row_tile(rows_total, target=512)
    nr = rows_total // tr

    row_idx = lambda i: (i, 0)   # noqa: E731
    const_w = lambda i: (0, 0)   # noqa: E731

    return pl.pallas_call(
        proj_tanh_kernel,
        out_shape=jax.ShapeDtypeStruct((rows_total, hdim), out_dtype),
        grid=(nr,),
        in_specs=[
            pl.BlockSpec((tr, cdim), row_idx),
            pl.BlockSpec((tr, cdim), row_idx),
            pl.BlockSpec((cdim, hdim), const_w),
            pl.BlockSpec((cdim, hdim), const_w),
            pl.BlockSpec((1, hdim), const_w),
        ],
        out_specs=pl.BlockSpec((tr, hdim), row_idx),
        compiler_params=pltpu.CompilerParams(
            dimension_semantics=("parallel",)),         # independent row tiles
    )(h_f, h_b, p["wp_f"], p["wp_b"], p["bp"])


def blstmp_forward(xpad, params):
    """xpad: (T, B, idim) float32 -> (T, B, hdim) float32."""
    seq_len, batch, _ = xpad.shape
    tc = _pick_time_chunk(seq_len, batch, target=16)
    # Flat, bf16 activations (free reshape; only ever MXU operands).
    x2 = xpad.reshape(seq_len * batch, -1).astype(jnp.bfloat16)
    n_layers = len(params)
    for li, p in enumerate(params):
        h_f, h_b = bilstm_layer(x2, p, seq_len=seq_len, batch=batch, tc=tc)
        out_dtype = jnp.float32 if li == n_layers - 1 else jnp.bfloat16
        x2 = project_layer(h_f, h_b, p, out_dtype=out_dtype)
    hdim = params[-1]["bp"].shape[-1]
    return x2.reshape(seq_len, batch, hdim)


# ----------------------------------------------------------------------------
# Parameter init (PyTorch-style uniform ranges, weights stored pre-transposed,
# gate-permuted to [i, f, o, g], bf16 for MXU operands; biases f32, combined).
# ----------------------------------------------------------------------------
def init_blstmp_params(key, idim, elayers, cdim, hdim):
    # PyTorch gate order [i, f, g, o] -> [i, f, o, g] so one sigmoid covers
    # a contiguous 3*cdim slab in the kernel.
    perm = jnp.concatenate([
        jnp.arange(0, cdim), jnp.arange(cdim, 2 * cdim),
        jnp.arange(3 * cdim, 4 * cdim), jnp.arange(2 * cdim, 3 * cdim)])
    k_lstm = 1.0 / (cdim ** 0.5)
    k_lin = 1.0 / ((2 * cdim) ** 0.5)

    def u(k, shape, scale):
        return jax.random.uniform(k, shape, jnp.float32, -scale, scale)

    params = []
    for layer in range(elayers):
        inputdim = idim if layer == 0 else hdim
        keys = jax.random.split(jax.random.fold_in(key, layer), 10)
        lp = {}
        for d, name in enumerate(("f", "b")):
            wih = u(keys[4 * d + 0], (4 * cdim, inputdim), k_lstm)  # torch layout
            whh = u(keys[4 * d + 1], (4 * cdim, cdim), k_lstm)
            bih = u(keys[4 * d + 2], (4 * cdim,), k_lstm)
            bhh = u(keys[4 * d + 3], (4 * cdim,), k_lstm)
            lp[f"wih_{name}"] = wih[perm, :].T.astype(jnp.bfloat16)   # (in, 4c)
            lp[f"whh_{name}"] = whh[perm, :].T.astype(jnp.bfloat16)   # (cdim, 4c)
            lp[f"b_{name}"] = (bih + bhh)[perm].reshape(1, 4 * cdim)  # f32
        wp = u(keys[8], (hdim, 2 * cdim), k_lin)                      # torch layout
        bp = u(keys[9], (hdim,), k_lin)
        wpt = wp.T                                                    # (2c, hdim)
        lp["wp_f"] = wpt[:cdim].astype(jnp.bfloat16)                  # x h_fwd
        lp["wp_b"] = wpt[cdim:].astype(jnp.bfloat16)                  # x h_bwd
        lp["bp"] = bp.reshape(1, hdim)                                # f32
        params.append(lp)
    return params


if __name__ == "__main__":
    # Small shapes consistent with the module's forward.
    T, B, idim = 8, 2, 16
    elayers, cdim, hdim = 2, 32, 32
    dropout = 0.0  # nn.LSTM dropout is a no-op for num_layers=1

    key = jax.random.PRNGKey(0)
    k_x, k_p = jax.random.split(key)
    xpad = jax.random.normal(k_x, (T, B, idim), dtype=jnp.float32)
    params = init_blstmp_params(k_p, idim, elayers, cdim, hdim)

    fwd = jax.jit(blstmp_forward)
    out = jax.block_until_ready(fwd(xpad, params))
    assert out.shape == (T, B, hdim), out.shape
    assert bool(jnp.all(jnp.isfinite(out)))
    print("KERNEL_OK")
</pallas_src>

<mosaic_0001>
module attributes {stable_mosaic.version = 11 : i64} {
  func.func @proj_tanh_kernel(%arg0: i32, %arg1: memref<16x32xbf16, #tpu.memory_space<vmem>>, %arg2: memref<16x32xbf16, #tpu.memory_space<vmem>>, %arg3: memref<32x32xbf16, #tpu.memory_space<vmem>>, %arg4: memref<32x32xbf16, #tpu.memory_space<vmem>>, %arg5: memref<1x32xf32, #tpu.memory_space<vmem>>, %arg6: memref<16x32xbf16, #tpu.memory_space<vmem>>) attributes {dimension_semantics = [#tpu.dimension_semantics<parallel>], iteration_bounds = array<i64: 1>, scalar_prefetch = 0 : i64, scratch_operands = 0 : i64, tpu.core_type = #tpu.core_type<tc>, window_params = [{transform_indices = @transform_0, window_bounds = array<i64: 16, 32>}, {transform_indices = @transform_1, window_bounds = array<i64: 16, 32>}, {pipeline_mode = #tpu.pipeline_mode<synchronous>, transform_indices = @transform_2, window_bounds = array<i64: 32, 32>}, {pipeline_mode = #tpu.pipeline_mode<synchronous>, transform_indices = @transform_3, window_bounds = array<i64: 32, 32>}, {pipeline_mode = #tpu.pipeline_mode<synchronous>, transform_indices = @transform_4, window_bounds = array<i64: 1, 32>}, {transform_indices = @transform_5, window_bounds = array<i64: 16, 32>}]} {
    %c0 = arith.constant 0 : index
    %c0_0 = arith.constant 0 : index
    %0 = vector.load %arg1[%c0, %c0_0] : memref<16x32xbf16, #tpu.memory_space<vmem>>, vector<16x32xbf16>
    %c0_1 = arith.constant 0 : index
    %c0_2 = arith.constant 0 : index
    %1 = vector.load %arg3[%c0_1, %c0_2] : memref<32x32xbf16, #tpu.memory_space<vmem>>, vector<32x32xbf16>
    %cst = arith.constant dense<0.000000e+00> : vector<16x32xf32>
    %2 = tpu.matmul %0, %1, %cst {dimension_numbers = #tpu.dot_dimension_numbers<[1], [0], [0], [1], [0, 0, 1, 1], [], []>} : vector<16x32xbf16>, vector<32x32xbf16>, vector<16x32xf32> -> vector<16x32xf32>
    %c0_3 = arith.constant 0 : index
    %c0_4 = arith.constant 0 : index
    %3 = vector.load %arg2[%c0_3, %c0_4] : memref<16x32xbf16, #tpu.memory_space<vmem>>, vector<16x32xbf16>
    %c0_5 = arith.constant 0 : index
    %c0_6 = arith.constant 0 : index
    %4 = vector.load %arg4[%c0_5, %c0_6] : memref<32x32xbf16, #tpu.memory_space<vmem>>, vector<32x32xbf16>
    %cst_7 = arith.constant dense<0.000000e+00> : vector<16x32xf32>
    %5 = tpu.matmul %3, %4, %cst_7 {dimension_numbers = #tpu.dot_dimension_numbers<[1], [0], [0], [1], [0, 0, 1, 1], [], []>} : vector<16x32xbf16>, vector<32x32xbf16>, vector<16x32xf32> -> vector<16x32xf32>
    %6 = arith.addf %2, %5 : vector<16x32xf32>
    %c0_8 = arith.constant 0 : index
    %c0_9 = arith.constant 0 : index
    %7 = vector.load %arg5[%c0_8, %c0_9] : memref<1x32xf32, #tpu.memory_space<vmem>>, vector<1x32xf32>
    %8 = vector.broadcast %7 : vector<1x32xf32> to vector<16x32xf32>
    %9 = arith.addf %6, %8 : vector<16x32xf32>
    %10 = math.tanh %9 : vector<16x32xf32>
    %11 = arith.truncf %10 : vector<16x32xf32> to vector<16x32xbf16>
    %c0_10 = arith.constant 0 : index
    %c0_11 = arith.constant 0 : index
    %12 = vector.load %arg6[%c0_10, %c0_11] : memref<16x32xbf16, #tpu.memory_space<vmem>>, vector<16x32xbf16>
    tpu.vector_store %arg6[%c0_10, %c0_11], %11 {strides = array<i32>} : memref<16x32xbf16, #tpu.memory_space<vmem>>, vector<16x32xbf16>,
    return
  }
  func.func @transform_0(%arg0: i32) -> (i32, i32) {
    %c0_i32 = arith.constant 0 : i32
    %c0_i32_0 = arith.constant 0 : i32
    return %arg0, %c0_i32 : i32, i32
  }
  func.func @transform_1(%arg0: i32) -> (i32, i32) {
    %c0_i32 = arith.constant 0 : i32
    %c0_i32_0 = arith.constant 0 : i32
    return %arg0, %c0_i32 : i32, i32
  }
  func.func @transform_2(%arg0: i32) -> (i32, i32) {
    %c0_i32 = arith.constant 0 : i32
    %c0_i32_0 = arith.constant 0 : i32
    %c0_i32_1 = arith.constant 0 : i32
    return %c0_i32, %c0_i32_0 : i32, i32
  }
  func.func @transform_3(%arg0: i32) -> (i32, i32) {
    %c0_i32 = arith.constant 0 : i32
    %c0_i32_0 = arith.constant 0 : i32
    %c0_i32_1 = arith.constant 0 : i32
    return %c0_i32, %c0_i32_0 : i32, i32
  }
  func.func @transform_4(%arg0: i32) -> (i32, i32) {
    %c0_i32 = arith.constant 0 : i32
    %c0_i32_0 = arith.constant 0 : i32
    %c0_i32_1 = arith.constant 0 : i32
    return %c0_i32, %c0_i32_0 : i32, i32
  }
  func.func @transform_5(%arg0: i32) -> (i32, i32) {
    %c0_i32 = arith.constant 0 : i32
    %c0_i32_0 = arith.constant 0 : i32
    return %arg0, %c0_i32 : i32, i32
  }
}

module attributes {stable_mosaic.version = 11 : i64} {
  func.func @bilstm_chunk_kernel(%arg0: i32, %arg1: memref<16x16xbf16, #tpu.memory_space<vmem>>, %arg2: memref<16x16xbf16, #tpu.memory_space<vmem>>, %arg3: memref<16x128xbf16, #tpu.memory_space<any>>, %arg4: memref<32x128xbf16, #tpu.memory_space<any>>, %arg5: memref<1x128xf32, #tpu.memory_space<vmem>>, %arg6: memref<16x128xbf16, #tpu.memory_space<any>>, %arg7: memref<32x128xbf16, #tpu.memory_space<any>>, %arg8: memref<1x128xf32, #tpu.memory_space<vmem>>, %arg9: memref<16x32xbf16, #tpu.memory_space<vmem>>, %arg10: memref<16x32xbf16, #tpu.memory_space<vmem>>, %arg11: memref<16x128xbf16, #tpu.memory_space<vmem>>, %arg12: memref<32x128xbf16, #tpu.memory_space<vmem>>, %arg13: memref<16x128xbf16, #tpu.memory_space<vmem>>, %arg14: memref<32x128xbf16, #tpu.memory_space<vmem>>, %arg15: memref<4x!tpu.dma_semaphore, #tpu.memory_space<semaphore_mem>>, %arg16: memref<2x32xf32, #tpu.memory_space<vmem>>, %arg17: memref<2x32xf32, #tpu.memory_space<vmem>>, %arg18: memref<2x32xf32, #tpu.memory_space<vmem>>, %arg19: memref<2x32xf32, #tpu.memory_space<vmem>>, %arg20: memref<16x128xf32, #tpu.memory_space<vmem>>, %arg21: memref<16x128xf32, #tpu.memory_space<vmem>>, %arg22: memref<16x32xf32, #tpu.memory_space<vmem>>, %arg23: memref<16x32xf32, #tpu.memory_space<vmem>>) attributes {dimension_semantics = [#tpu.dimension_semantics<arbitrary>], iteration_bounds = array<i64: 1>, scalar_prefetch = 0 : i64, scratch_operands = 13 : i64, tpu.core_type = #tpu.core_type<tc>, window_params = [{transform_indices = @transform_0, window_bounds = array<i64: 16, 16>}, {transform_indices = @transform_1, window_bounds = array<i64: 16, 16>}, {}, {}, {pipeline_mode = #tpu.pipeline_mode<synchronous>, transform_indices = @transform_4, window_bounds = array<i64: 1, 128>}, {}, {}, {pipeline_mode = #tpu.pipeline_mode<synchronous>, transform_indices = @transform_7, window_bounds = array<i64: 1, 128>}, {transform_indices = @transform_8, window_bounds = array<i64: 16, 32>}, {transform_indices = @transform_9, window_bounds = array<i64: 16, 32>}]} {
    %c0_i32 = arith.constant 0 : i32
    %0 = arith.cmpi eq, %arg0, %c0_i32 : i32
    %1 = arith.extui %0 : i1 to i32
    %c0_i32_0 = arith.constant 0 : i32
    %2 = arith.cmpi ne, %1, %c0_i32_0 : i32
    scf.if %2 {
      %c0_i32_134 = arith.constant 0 : i32
      %369 = tpu.memref_slice %arg15[%c0_i32_134] : memref<4x!tpu.dma_semaphore, #tpu.memory_space<semaphore_mem>> -> memref<1x!tpu.dma_semaphore, #tpu.memory_space<semaphore_mem>>
      %370 = tpu.memref_squeeze %369 : memref<1x!tpu.dma_semaphore, #tpu.memory_space<semaphore_mem>> -> memref<!tpu.dma_semaphore, #tpu.memory_space<semaphore_mem>>
      tpu.enqueue_dma source(%arg3 : memref<16x128xbf16, #tpu.memory_space<any>>) target(%arg11 : memref<16x128xbf16, #tpu.memory_space<vmem>>) target_semaphore(%370 : memref<!tpu.dma_semaphore, #tpu.memory_space<semaphore_mem>>)
      %c1_i32 = arith.constant 1 : i32
      %371 = tpu.memref_slice %arg15[%c1_i32] : memref<4x!tpu.dma_semaphore, #tpu.memory_space<semaphore_mem>> -> memref<1x!tpu.dma_semaphore, #tpu.memory_space<semaphore_mem>>
      %372 = tpu.memref_squeeze %371 : memref<1x!tpu.dma_semaphore, #tpu.memory_space<semaphore_mem>> -> memref<!tpu.dma_semaphore, #tpu.memory_space<semaphore_mem>>
      tpu.enqueue_dma source(%arg4 : memref<32x128xbf16, #tpu.memory_space<any>>) target(%arg12 : memref<32x128xbf16, #tpu.memory_space<vmem>>) target_semaphore(%372 : memref<!tpu.dma_semaphore, #tpu.memory_space<semaphore_mem>>)
      %c2_i32 = arith.constant 2 : i32
      %373 = tpu.memref_slice %arg15[%c2_i32] : memref<4x!tpu.dma_semaphore, #tpu.memory_space<semaphore_mem>> -> memref<1x!tpu.dma_semaphore, #tpu.memory_space<semaphore_mem>>
      %374 = tpu.memref_squeeze %373 : memref<1x!tpu.dma_semaphore, #tpu.memory_space<semaphore_mem>> -> memref<!tpu.dma_semaphore, #tpu.memory_space<semaphore_mem>>
      tpu.enqueue_dma source(%arg6 : memref<16x128xbf16, #tpu.memory_space<any>>) target(%arg13 : memref<16x128xbf16, #tpu.memory_space<vmem>>) target_semaphore(%374 : memref<!tpu.dma_semaphore, #tpu.memory_space<semaphore_mem>>)
      %c3_i32 = arith.constant 3 : i32
      %375 = tpu.memref_slice %arg15[%c3_i32] : memref<4x!tpu.dma_semaphore, #tpu.memory_space<semaphore_mem>> -> memref<1x!tpu.dma_semaphore, #tpu.memory_space<semaphore_mem>>
      %376 = tpu.memref_squeeze %375 : memref<1x!tpu.dma_semaphore, #tpu.memory_space<semaphore_mem>> -> memref<!tpu.dma_semaphore, #tpu.memory_space<semaphore_mem>>
      tpu.enqueue_dma source(%arg7 : memref<32x128xbf16, #tpu.memory_space<any>>) target(%arg14 : memref<32x128xbf16, #tpu.memory_space<vmem>>) target_semaphore(%376 : memref<!tpu.dma_semaphore, #tpu.memory_space<semaphore_mem>>)
      %c0_i32_135 = arith.constant 0 : i32
      %377 = tpu.memref_slice %arg15[%c0_i32_135] : memref<4x!tpu.dma_semaphore, #tpu.memory_space<semaphore_mem>> -> memref<1x!tpu.dma_semaphore, #tpu.memory_space<semaphore_mem>>
      %378 = tpu.memref_squeeze %377 : memref<1x!tpu.dma_semaphore, #tpu.memory_space<semaphore_mem>> -> memref<!tpu.dma_semaphore, #tpu.memory_space<semaphore_mem>>
      tpu.wait_dma2 semaphore(%378 : memref<!tpu.dma_semaphore, #tpu.memory_space<semaphore_mem>>) src(%arg3 : memref<16x128xbf16, #tpu.memory_space<any>>) dst(%arg11 : memref<16x128xbf16, #tpu.memory_space<vmem>>)
      %c1_i32_136 = arith.constant 1 : i32
      %379 = tpu.memref_slice %arg15[%c1_i32_136] : memref<4x!tpu.dma_semaphore, #tpu.memory_space<semaphore_mem>> -> memref<1x!tpu.dma_semaphore, #tpu.memory_space<semaphore_mem>>
      %380 = tpu.memref_squeeze %379 : memref<1x!tpu.dma_semaphore, #tpu.memory_space<semaphore_mem>> -> memref<!tpu.dma_semaphore, #tpu.memory_space<semaphore_mem>>
      tpu.wait_dma2 semaphore(%380 : memref<!tpu.dma_semaphore, #tpu.memory_space<semaphore_mem>>) src(%arg4 : memref<32x128xbf16, #tpu.memory_space<any>>) dst(%arg12 : memref<32x128xbf16, #tpu.memory_space<vmem>>)
      %c2_i32_137 = arith.constant 2 : i32
      %381 = tpu.memref_slice %arg15[%c2_i32_137] : memref<4x!tpu.dma_semaphore, #tpu.memory_space<semaphore_mem>> -> memref<1x!tpu.dma_semaphore, #tpu.memory_space<semaphore_mem>>
      %382 = tpu.memref_squeeze %381 : memref<1x!tpu.dma_semaphore, #tpu.memory_space<semaphore_mem>> -> memref<!tpu.dma_semaphore, #tpu.memory_space<semaphore_mem>>
      tpu.wait_dma2 semaphore(%382 : memref<!tpu.dma_semaphore, #tpu.memory_space<semaphore_mem>>) src(%arg6 : memref<16x128xbf16, #tpu.memory_space<any>>) dst(%arg13 : memref<16x128xbf16, #tpu.memory_space<vmem>>)
      %c3_i32_138 = arith.constant 3 : i32
      %383 = tpu.memref_slice %arg15[%c3_i32_138] : memref<4x!tpu.dma_semaphore, #tpu.memory_space<semaphore_mem>> -> memref<1x!tpu.dma_semaphore, #tpu.memory_space<semaphore_mem>>
      %384 = tpu.memref_squeeze %383 : memref<1x!tpu.dma_semaphore, #tpu.memory_space<semaphore_mem>> -> memref<!tpu.dma_semaphore, #tpu.memory_space<semaphore_mem>>
      tpu.wait_dma2 semaphore(%384 : memref<!tpu.dma_semaphore, #tpu.memory_space<semaphore_mem>>) src(%arg7 : memref<32x128xbf16, #tpu.memory_space<any>>) dst(%arg14 : memref<32x128xbf16, #tpu.memory_space<vmem>>)
      %cst_139 = arith.constant 0.000000e+00 : f32
      %385 = vector.broadcast %cst_139 : f32 to vector<2x32xf32>
      %c0_140 = arith.constant 0 : index
      %c0_141 = arith.constant 0 : index
      %386 = vector.load %arg16[%c0_140, %c0_141] : memref<2x32xf32, #tpu.memory_space<vmem>>, vector<2x32xf32>
      tpu.vector_store %arg16[%c0_140, %c0_141], %385 {strides = array<i32>} : memref<2x32xf32, #tpu.memory_space<vmem>>, vector<2x32xf32>,
      %cst_142 = arith.constant 0.000000e+00 : f32
      %387 = vector.broadcast %cst_142 : f32 to vector<2x32xf32>
      %c0_143 = arith.constant 0 : index
      %c0_144 = arith.constant 0 : index
      %388 = vector.load %arg17[%c0_143, %c0_144] : memref<2x32xf32, #tpu.memory_space<vmem>>, vector<2x32xf32>
      tpu.vector_store %arg17[%c0_143, %c0_144], %387 {strides = array<i32>} : memref<2x32xf32, #tpu.memory_space<vmem>>, vector<2x32xf32>,
      %cst_145 = arith.constant 0.000000e+00 : f32
      %389 = vector.broadcast %cst_145 : f32 to vector<2x32xf32>
      %c0_146 = arith.constant 0 : index
      %c0_147 = arith.constant 0 : index
      %390 = vector.load %arg18[%c0_146, %c0_147] : memref<2x32xf32, #tpu.memory_space<vmem>>, vector<2x32xf32>
      tpu.vector_store %arg18[%c0_146, %c0_147], %389 {strides = array<i32>} : memref<2x32xf32, #tpu.memory_space<vmem>>, vector<2x32xf32>,
      %cst_148 = arith.constant 0.000000e+00 : f32
      %391 = vector.broadcast %cst_148 : f32 to vector<2x32xf32>
      %c0_149 = arith.constant 0 : index
      %c0_150 = arith.constant 0 : index
      %392 = vector.load %arg19[%c0_149, %c0_150] : memref<2x32xf32, #tpu.memory_space<vmem>>, vector<2x32xf32>
      tpu.vector_store %arg19[%c0_149, %c0_150], %391 {strides = array<i32>} : memref<2x32xf32, #tpu.memory_space<vmem>>, vector<2x32xf32>,
    } else {
    }
    %c0 = arith.constant 0 : index
    %c0_1 = arith.constant 0 : index
    %3 = vector.load %arg1[%c0, %c0_1] : memref<16x16xbf16, #tpu.memory_space<vmem>>, vector<16x16xbf16>
    %c0_2 = arith.constant 0 : index
    %c0_3 = arith.constant 0 : index
    %4 = vector.load %arg11[%c0_2, %c0_3] : memref<16x128xbf16, #tpu.memory_space<vmem>>, vector<16x128xbf16>
    %cst = arith.constant dense<0.000000e+00> : vector<16x128xf32>
    %5 = tpu.matmul %3, %4, %cst {dimension_numbers = #tpu.dot_dimension_numbers<[1], [0], [0], [1], [0, 0, 1, 1], [], []>} : vector<16x16xbf16>, vector<16x128xbf16>, vector<16x128xf32> -> vector<16x128xf32>
    %c0_4 = arith.constant 0 : index
    %c0_5 = arith.constant 0 : index
    %6 = vector.load %arg5[%c0_4, %c0_5] : memref<1x128xf32, #tpu.memory_space<vmem>>, vector<1x128xf32>
    %7 = vector.broadcast %6 : vector<1x128xf32> to vector<16x128xf32>
    %8 = arith.addf %5, %7 : vector<16x128xf32>
    %c0_6 = arith.constant 0 : index
    %c0_7 = arith.constant 0 : index
    %9 = vector.load %arg20[%c0_6, %c0_7] : memref<16x128xf32, #tpu.memory_space<vmem>>, vector<16x128xf32>
    tpu.vector_store %arg20[%c0_6, %c0_7], %8 {strides = array<i32>} : memref<16x128xf32, #tpu.memory_space<vmem>>, vector<16x128xf32>,
    %c0_8 = arith.constant 0 : index
    %c0_9 = arith.constant 0 : index
    %10 = vector.load %arg2[%c0_8, %c0_9] : memref<16x16xbf16, #tpu.memory_space<vmem>>, vector<16x16xbf16>
    %c0_10 = arith.constant 0 : index
    %c0_11 = arith.constant 0 : index
    %11 = vector.load %arg13[%c0_10, %c0_11] : memref<16x128xbf16, #tpu.memory_space<vmem>>, vector<16x128xbf16>
    %cst_12 = arith.constant dense<0.000000e+00> : vector<16x128xf32>
    %12 = tpu.matmul %10, %11, %cst_12 {dimension_numbers = #tpu.dot_dimension_numbers<[1], [0], [0], [1], [0, 0, 1, 1], [], []>} : vector<16x16xbf16>, vector<16x128xbf16>, vector<16x128xf32> -> vector<16x128xf32>
    %c0_13 = arith.constant 0 : index
    %c0_14 = arith.constant 0 : index
    %13 = vector.load %arg8[%c0_13, %c0_14] : memref<1x128xf32, #tpu.memory_space<vmem>>, vector<1x128xf32>
    %14 = vector.broadcast %13 : vector<1x128xf32> to vector<16x128xf32>
    %15 = arith.addf %12, %14 : vector<16x128xf32>
    %c0_15 = arith.constant 0 : index
    %c0_16 = arith.constant 0 : index
    %16 = vector.load %arg21[%c0_15, %c0_16] : memref<16x128xf32, #tpu.memory_space<vmem>>, vector<16x128xf32>
    tpu.vector_store %arg21[%c0_15, %c0_16], %15 {strides = array<i32>} : memref<16x128xf32, #tpu.memory_space<vmem>>, vector<16x128xf32>,
    %c0_17 = arith.constant 0 : index
    %c0_18 = arith.constant 0 : index
    %17 = vector.load %arg12[%c0_17, %c0_18] : memref<32x128xbf16, #tpu.memory_space<vmem>>, vector<32x128xbf16>
    %c0_19 = arith.constant 0 : index
    %c0_20 = arith.constant 0 : index
    %18 = vector.load %arg14[%c0_19, %c0_20] : memref<32x128xbf16, #tpu.memory_space<vmem>>, vector<32x128xbf16>
    %c0_21 = arith.constant 0 : index
    %c0_22 = arith.constant 0 : index
    %19 = vector.load %arg16[%c0_21, %c0_22] : memref<2x32xf32, #tpu.memory_space<vmem>>, vector<2x32xf32>
    %c0_23 = arith.constant 0 : index
    %c0_24 = arith.constant 0 : index
    %20 = vector.load %arg17[%c0_23, %c0_24] : memref<2x32xf32, #tpu.memory_space<vmem>>, vector<2x32xf32>
    %c0_25 = arith.constant 0 : index
    %c0_26 = arith.constant 0 : index
    %21 = vector.load %arg18[%c0_25, %c0_26] : memref<2x32xf32, #tpu.memory_space<vmem>>, vector<2x32xf32>
    %c0_27 = arith.constant 0 : index
    %c0_28 = arith.constant 0 : index
    %22 = vector.load %arg19[%c0_27, %c0_28] : memref<2x32xf32, #tpu.memory_space<vmem>>, vector<2x32xf32>
    %c0_29 = arith.constant 0 : index
    %c0_30 = arith.constant 0 : index
    %23 = vector.load %arg20[%c0_29, %c0_30] : memref<16x128xf32, #tpu.memory_space<vmem>>, vector<2x128xf32>
    %24 = arith.truncf %19 : vector<2x32xf32> to vector<2x32xbf16>
    %cst_31 = arith.constant dense<0.000000e+00> : vector<2x128xf32>
    %25 = tpu.matmul %24, %17, %cst_31 {dimension_numbers = #tpu.dot_dimension_numbers<[1], [0], [0], [1], [0, 0, 1, 1], [], []>} : vector<2x32xbf16>, vector<32x128xbf16>, vector<2x128xf32> -> vector<2x128xf32>
    %26 = arith.addf %23, %25 : vector<2x128xf32>
    %27 = vector.extract_strided_slice %26 {offsets = [0, 0], sizes = [2, 96], strides = [1, 1]} : vector<2x128xf32> to vector<2x96xf32>
    %28 = arith.negf %27 : vector<2x96xf32>
    %29 = math.exp %28 : vector<2x96xf32>
    %cst_32 = arith.constant 1.000000e+00 : f32
    %30 = vector.broadcast %cst_32 : f32 to vector<2x96xf32>
    %31 = arith.addf %30, %29 : vector<2x96xf32>
    %32 = arith.divf %30, %31 : vector<2x96xf32>
    %33 = vector.extract_strided_slice %26 {offsets = [0, 96], sizes = [2, 32], strides = [1, 1]} : vector<2x128xf32> to vector<2x32xf32>
    %34 = math.tanh %33 : vector<2x32xf32>
    %35 = vector.extract_strided_slice %32 {offsets = [0, 32], sizes = [2, 32], strides = [1, 1]} : vector<2x96xf32> to vector<2x32xf32>
    %36 = arith.mulf %35, %20 : vector<2x32xf32>
    %37 = vector.extract_strided_slice %32 {offsets = [0, 0], sizes = [2, 32], strides = [1, 1]} : vector<2x96xf32> to vector<2x32xf32>
    %38 = arith.mulf %37, %34 : vector<2x32xf32>
    %39 = arith.addf %36, %38 : vector<2x32xf32>
    %40 = vector.extract_strided_slice %32 {offsets = [0, 64], sizes = [2, 32], strides = [1, 1]} : vector<2x96xf32> to vector<2x32xf32>
    %41 = math.tanh %39 : vector<2x32xf32>
    %42 = arith.mulf %40, %41 : vector<2x32xf32>
    %c0_33 = arith.constant 0 : index
    %c0_34 = arith.constant 0 : index
    %43 = vector.load %arg22[%c0_33, %c0_34] : memref<16x32xf32, #tpu.memory_space<vmem>>, vector<2x32xf32>
    tpu.vector_store %arg22[%c0_33, %c0_34], %42 {strides = array<i32>} : memref<16x32xf32, #tpu.memory_space<vmem>>, vector<2x32xf32>,
    %c14 = arith.constant 14 : index
    %c0_35 = arith.constant 0 : index
    %44 = vector.load %arg21[%c14, %c0_35] : memref<16x128xf32, #tpu.memory_space<vmem>>, vector<2x128xf32>
    %45 = arith.truncf %21 : vector<2x32xf32> to vector<2x32xbf16>
    %cst_36 = arith.constant dense<0.000000e+00> : vector<2x128xf32>
    %46 = tpu.matmul %45, %18, %cst_36 {dimension_numbers = #tpu.dot_dimension_numbers<[1], [0], [0], [1], [0, 0, 1, 1], [], []>} : vector<2x32xbf16>, vector<32x128xbf16>, vector<2x128xf32> -> vector<2x128xf32>
    %47 = arith.addf %44, %46 : vector<2x128xf32>
    %48 = vector.extract_strided_slice %47 {offsets = [0, 0], sizes = [2, 96], strides = [1, 1]} : vector<2x128xf32> to vector<2x96xf32>
    %49 = arith.negf %48 : vector<2x96xf32>
    %50 = math.exp %49 : vector<2x96xf32>
    %cst_37 = arith.constant 1.000000e+00 : f32
    %51 = vector.broadcast %cst_37 : f32 to vector<2x96xf32>
    %52 = arith.addf %51, %50 : vector<2x96xf32>
    %53 = arith.divf %51, %52 : vector<2x96xf32>
    %54 = vector.extract_strided_slice %47 {offsets = [0, 96], sizes = [2, 32], strides = [1, 1]} : vector<2x128xf32> to vector<2x32xf32>
    %55 = math.tanh %54 : vector<2x32xf32>
    %56 = vector.extract_strided_slice %53 {offsets = [0, 32], sizes = [2, 32], strides = [1, 1]} : vector<2x96xf32> to vector<2x32xf32>
    %57 = arith.mulf %56, %22 : vector<2x32xf32>
    %58 = vector.extract_strided_slice %53 {offsets = [0, 0], sizes = [2, 32], strides = [1, 1]} : vector<2x96xf32> to vector<2x32xf32>
    %59 = arith.mulf %58, %55 : vector<2x32xf32>
    %60 = arith.addf %57, %59 : vector<2x32xf32>
    %61 = vector.extract_strided_slice %53 {offsets = [0, 64], sizes = [2, 32], strides = [1, 1]} : vector<2x96xf32> to vector<2x32xf32>
    %62 = math.tanh %60 : vector<2x32xf32>
    %63 = arith.mulf %61, %62 : vector<2x32xf32>
    %c14_38 = arith.constant 14 : index
    %c0_39 = arith.constant 0 : index
    %64 = vector.load %arg23[%c14_38, %c0_39] : memref<16x32xf32, #tpu.memory_space<vmem>>, vector<2x32xf32>
    tpu.vector_store %arg23[%c14_38, %c0_39], %63 {strides = array<i32>} : memref<16x32xf32, #tpu.memory_space<vmem>>, vector<2x32xf32>,
    %c2 = arith.constant 2 : index
    %c0_40 = arith.constant 0 : index
    %65 = vector.load %arg20[%c2, %c0_40] : memref<16x128xf32, #tpu.memory_space<vmem>>, vector<2x128xf32>
    %66 = arith.truncf %42 : vector<2x32xf32> to vector<2x32xbf16>
    %cst_41 = arith.constant dense<0.000000e+00> : vector<2x128xf32>
    %67 = tpu.matmul %66, %17, %cst_41 {dimension_numbers = #tpu.dot_dimension_numbers<[1], [0], [0], [1], [0, 0, 1, 1], [], []>} : vector<2x32xbf16>, vector<32x128xbf16>, vector<2x128xf32> -> vector<2x128xf32>
    %68 = arith.addf %65, %67 : vector<2x128xf32>
    %69 = vector.extract_strided_slice %68 {offsets = [0, 0], sizes = [2, 96], strides = [1, 1]} : vector<2x128xf32> to vector<2x96xf32>
    %70 = arith.negf %69 : vector<2x96xf32>
    %71 = math.exp %70 : vector<2x96xf32>
    %cst_42 = arith.constant 1.000000e+00 : f32
    %72 = vector.broadcast %cst_42 : f32 to vector<2x96xf32>
    %73 = arith.addf %72, %71 : vector<2x96xf32>
    %74 = arith.divf %72, %73 : vector<2x96xf32>
    %75 = vector.extract_strided_slice %68 {offsets = [0, 96], sizes = [2, 32], strides = [1, 1]} : vector<2x128xf32> to vector<2x32xf32>
    %76 = math.tanh %75 : vector<2x32xf32>
    %77 = vector.extract_strided_slice %74 {offsets = [0, 32], sizes = [2, 32], strides = [1, 1]} : vector<2x96xf32> to vector<2x32xf32>
    %78 = arith.mulf %77, %39 : vector<2x32xf32>
    %79 = vector.extract_strided_slice %74 {offsets = [0, 0], sizes = [2, 32], strides = [1, 1]} : vector<2x96xf32> to vector<2x32xf32>
    %80 = arith.mulf %79, %76 : vector<2x32xf32>
    %81 = arith.addf %78, %80 : vector<2x32xf32>
    %82 = vector.extract_strided_slice %74 {offsets = [0, 64], sizes = [2, 32], strides = [1, 1]} : vector<2x96xf32> to vector<2x32xf32>
    %83 = math.tanh %81 : vector<2x32xf32>
    %84 = arith.mulf %82, %83 : vector<2x32xf32>
    %c2_43 = arith.constant 2 : index
    %c0_44 = arith.constant 0 : index
    %85 = vector.load %arg22[%c2_43, %c0_44] : memref<16x32xf32, #tpu.memory_space<vmem>>, vector<2x32xf32>
    tpu.vector_store %arg22[%c2_43, %c0_44], %84 {strides = array<i32>} : memref<16x32xf32, #tpu.memory_space<vmem>>, vector<2x32xf32>,
    %c12 = arith.constant 12 : index
    %c0_45 = arith.constant 0 : index
    %86 = vector.load %arg21[%c12, %c0_45] : memref<16x128xf32, #tpu.memory_space<vmem>>, vector<2x128xf32>
    %87 = arith.truncf %63 : vector<2x32xf32> to vector<2x32xbf16>
    %cst_46 = arith.constant dense<0.000000e+00> : vector<2x128xf32>
    %88 = tpu.matmul %87, %18, %cst_46 {dimension_numbers = #tpu.dot_dimension_numbers<[1], [0], [0], [1], [0, 0, 1, 1], [], []>} : vector<2x32xbf16>, vector<32x128xbf16>, vector<2x128xf32> -> vector<2x128xf32>
    %89 = arith.addf %86, %88 : vector<2x128xf32>
    %90 = vector.extract_strided_slice %89 {offsets = [0, 0], sizes = [2, 96], strides = [1, 1]} : vector<2x128xf32> to vector<2x96xf32>
    %91 = arith.negf %90 : vector<2x96xf32>
    %92 = math.exp %91 : vector<2x96xf32>
    %cst_47 = arith.constant 1.000000e+00 : f32
    %93 = vector.broadcast %cst_47 : f32 to vector<2x96xf32>
    %94 = arith.addf %93, %92 : vector<2x96xf32>
    %95 = arith.divf %93, %94 : vector<2x96xf32>
    %96 = vector.extract_strided_slice %89 {offsets = [0, 96], sizes = [2, 32], strides = [1, 1]} : vector<2x128xf32> to vector<2x32xf32>
    %97 = math.tanh %96 : vector<2x32xf32>
    %98 = vector.extract_strided_slice %95 {offsets = [0, 32], sizes = [2, 32], strides = [1, 1]} : vector<2x96xf32> to vector<2x32xf32>
    %99 = arith.mulf %98, %60 : vector<2x32xf32>
    %100 = vector.extract_strided_slice %95 {offsets = [0, 0], sizes = [2, 32], strides = [1, 1]} : vector<2x96xf32> to vector<2x32xf32>
    %101 = arith.mulf %100, %97 : vector<2x32xf32>
    %102 = arith.addf %99, %101 : vector<2x32xf32>
    %103 = vector.extract_strided_slice %95 {offsets = [0, 64], sizes = [2, 32], strides = [1, 1]} : vector<2x96xf32> to vector<2x32xf32>
    %104 = math.tanh %102 : vector<2x32xf32>
    %105 = arith.mulf %103, %104 : vector<2x32xf32>
    %c12_48 = arith.constant 12 : index
    %c0_49 = arith.constant 0 : index
    %106 = vector.load %arg23[%c12_48, %c0_49] : memref<16x32xf32, #tpu.memory_space<vmem>>, vector<2x32xf32>
    tpu.vector_store %arg23[%c12_48, %c0_49], %105 {strides = array<i32>} : memref<16x32xf32, #tpu.memory_space<vmem>>, vector<2x32xf32>,
    %c4 = arith.constant 4 : index
    %c0_50 = arith.constant 0 : index
    %107 = vector.load %arg20[%c4, %c0_50] : memref<16x128xf32, #tpu.memory_space<vmem>>, vector<2x128xf32>
    %108 = arith.truncf %84 : vector<2x32xf32> to vector<2x32xbf16>
    %cst_51 = arith.constant dense<0.000000e+00> : vector<2x128xf32>
    %109 = tpu.matmul %108, %17, %cst_51 {dimension_numbers = #tpu.dot_dimension_numbers<[1], [0], [0], [1], [0, 0, 1, 1], [], []>} : vector<2x32xbf16>, vector<32x128xbf16>, vector<2x128xf32> -> vector<2x128xf32>
    %110 = arith.addf %107, %109 : vector<2x128xf32>
    %111 = vector.extract_strided_slice %110 {offsets = [0, 0], sizes = [2, 96], strides = [1, 1]} : vector<2x128xf32> to vector<2x96xf32>
    %112 = arith.negf %111 : vector<2x96xf32>
    %113 = math.exp %112 : vector<2x96xf32>
    %cst_52 = arith.constant 1.000000e+00 : f32
    %114 = vector.broadcast %cst_52 : f32 to vector<2x96xf32>
    %115 = arith.addf %114, %113 : vector<2x96xf32>
    %116 = arith.divf %114, %115 : vector<2x96xf32>
    %117 = vector.extract_strided_slice %110 {offsets = [0, 96], sizes = [2, 32], strides = [1, 1]} : vector<2x128xf32> to vector<2x32xf32>
    %118 = math.tanh %117 : vector<2x32xf32>
    %119 = vector.extract_strided_slice %116 {offsets = [0, 32], sizes = [2, 32], strides = [1, 1]} : vector<2x96xf32> to vector<2x32xf32>
    %120 = arith.mulf %119, %81 : vector<2x32xf32>
    %121 = vector.extract_strided_slice %116 {offsets = [0, 0], sizes = [2, 32], strides = [1, 1]} : vector<2x96xf32> to vector<2x32xf32>
    %122 = arith.mulf %121, %118 : vector<2x32xf32>
    %123 = arith.addf %120, %122 : vector<2x32xf32>
    %124 = vector.extract_strided_slice %116 {offsets = [0, 64], sizes = [2, 32], strides = [1, 1]} : vector<2x96xf32> to vector<2x32xf32>
    %125 = math.tanh %123 : vector<2x32xf32>
    %126 = arith.mulf %124, %125 : vector<2x32xf32>
    %c4_53 = arith.constant 4 : index
    %c0_54 = arith.constant 0 : index
    %127 = vector.load %arg22[%c4_53, %c0_54] : memref<16x32xf32, #tpu.memory_space<vmem>>, vector<2x32xf32>
    tpu.vector_store %arg22[%c4_53, %c0_54], %126 {strides = array<i32>} : memref<16x32xf32, #tpu.memory_space<vmem>>, vector<2x32xf32>,
    %c10 = arith.constant 10 : index
    %c0_55 = arith.constant 0 : index
    %128 = vector.load %arg21[%c10, %c0_55] : memref<16x128xf32, #tpu.memory_space<vmem>>, vector<2x128xf32>
    %129 = arith.truncf %105 : vector<2x32xf32> to vector<2x32xbf16>
    %cst_56 = arith.constant dense<0.000000e+00> : vector<2x128xf32>
    %130 = tpu.matmul %129, %18, %cst_56 {dimension_numbers = #tpu.dot_dimension_numbers<[1], [0], [0], [1], [0, 0, 1, 1], [], []>} : vector<2x32xbf16>, vector<32x128xbf16>, vector<2x128xf32> -> vector<2x128xf32>
    %131 = arith.addf %128, %130 : vector<2x128xf32>
    %132 = vector.extract_strided_slice %131 {offsets = [0, 0], sizes = [2, 96], strides = [1, 1]} : vector<2x128xf32> to vector<2x96xf32>
    %133 = arith.negf %132 : vector<2x96xf32>
    %134 = math.exp %133 : vector<2x96xf32>
    %cst_57 = arith.constant 1.000000e+00 : f32
    %135 = vector.broadcast %cst_57 : f32 to vector<2x96xf32>
    %136 = arith.addf %135, %134 : vector<2x96xf32>
    %137 = arith.divf %135, %136 : vector<2x96xf32>
    %138 = vector.extract_strided_slice %131 {offsets = [0, 96], sizes = [2, 32], strides = [1, 1]} : vector<2x128xf32> to vector<2x32xf32>
    %139 = math.tanh %138 : vector<2x32xf32>
    %140 = vector.extract_strided_slice %137 {offsets = [0, 32], sizes = [2, 32], strides = [1, 1]} : vector<2x96xf32> to vector<2x32xf32>
    %141 = arith.mulf %140, %102 : vector<2x32xf32>
    %142 = vector.extract_strided_slice %137 {offsets = [0, 0], sizes = [2, 32], strides = [1, 1]} : vector<2x96xf32> to vector<2x32xf32>
    %143 = arith.mulf %142, %139 : vector<2x32xf32>
    %144 = arith.addf %141, %143 : vector<2x32xf32>
    %145 = vector.extract_strided_slice %137 {offsets = [0, 64], sizes = [2, 32], strides = [1, 1]} : vector<2x96xf32> to vector<2x32xf32>
    %146 = math.tanh %144 : vector<2x32xf32>
    %147 = arith.mulf %145, %146 : vector<2x32xf32>
    %c10_58 = arith.constant 10 : index
    %c0_59 = arith.constant 0 : index
    %148 = vector.load %arg23[%c10_58, %c0_59] : memref<16x32xf32, #tpu.memory_space<vmem>>, vector<2x32xf32>
    tpu.vector_store %arg23[%c10_58, %c0_59], %147 {strides = array<i32>} : memref<16x32xf32, #tpu.memory_space<vmem>>, vector<2x32xf32>,
    %c6 = arith.constant 6 : index
    %c0_60 = arith.constant 0 : index
    %149 = vector.load %arg20[%c6, %c0_60] : memref<16x128xf32, #tpu.memory_space<vmem>>, vector<2x128xf32>
    %150 = arith.truncf %126 : vector<2x32xf32> to vector<2x32xbf16>
    %cst_61 = arith.constant dense<0.000000e+00> : vector<2x128xf32>
    %151 = tpu.matmul %150, %17, %cst_61 {dimension_numbers = #tpu.dot_dimension_numbers<[1], [0], [0], [1], [0, 0, 1, 1], [], []>} : vector<2x32xbf16>, vector<32x128xbf16>, vector<2x128xf32> -> vector<2x128xf32>
    %152 = arith.addf %149, %151 : vector<2x128xf32>
    %153 = vector.extract_strided_slice %152 {offsets = [0, 0], sizes = [2, 96], strides = [1, 1]} : vector<2x128xf32> to vector<2x96xf32>
    %154 = arith.negf %153 : vector<2x96xf32>
    %155 = math.exp %154 : vector<2x96xf32>
    %cst_62 = arith.constant 1.000000e+00 : f32
    %156 = vector.broadcast %cst_62 : f32 to vector<2x96xf32>
    %157 = arith.addf %156, %155 : vector<2x96xf32>
    %158 = arith.divf %156, %157 : vector<2x96xf32>
    %159 = vector.extract_strided_slice %152 {offsets = [0, 96], sizes = [2, 32], strides = [1, 1]} : vector<2x128xf32> to vector<2x32xf32>
    %160 = math.tanh %159 : vector<2x32xf32>
    %161 = vector.extract_strided_slice %158 {offsets = [0, 32], sizes = [2, 32], strides = [1, 1]} : vector<2x96xf32> to vector<2x32xf32>
    %162 = arith.mulf %161, %123 : vector<2x32xf32>
    %163 = vector.extract_strided_slice %158 {offsets = [0, 0], sizes = [2, 32], strides = [1, 1]} : vector<2x96xf32> to vector<2x32xf32>
    %164 = arith.mulf %163, %160 : vector<2x32xf32>
    %165 = arith.addf %162, %164 : vector<2x32xf32>
    %166 = vector.extract_strided_slice %158 {offsets = [0, 64], sizes = [2, 32], strides = [1, 1]} : vector<2x96xf32> to vector<2x32xf32>
    %167 = math.tanh %165 : vector<2x32xf32>
    %168 = arith.mulf %166, %167 : vector<2x32xf32>
    %c6_63 = arith.constant 6 : index
    %c0_64 = arith.constant 0 : index
    %169 = vector.load %arg22[%c6_63, %c0_64] : memref<16x32xf32, #tpu.memory_space<vmem>>, vector<2x32xf32>
    tpu.vector_store %arg22[%c6_63, %c0_64], %168 {strides = array<i32>} : memref<16x32xf32, #tpu.memory_space<vmem>>, vector<2x32xf32>,
    %c8 = arith.constant 8 : index
    %c0_65 = arith.constant 0 : index
    %170 = vector.load %arg21[%c8, %c0_65] : memref<16x128xf32, #tpu.memory_space<vmem>>, vector<2x128xf32>
    %171 = arith.truncf %147 : vector<2x32xf32> to vector<2x32xbf16>
    %cst_66 = arith.constant dense<0.000000e+00> : vector<2x128xf32>
    %172 = tpu.matmul %171, %18, %cst_66 {dimension_numbers = #tpu.dot_dimension_numbers<[1], [0], [0], [1], [0, 0, 1, 1], [], []>} : vector<2x32xbf16>, vector<32x128xbf16>, vector<2x128xf32> -> vector<2x128xf32>
    %173 = arith.addf %170, %172 : vector<2x128xf32>
    %174 = vector.extract_strided_slice %173 {offsets = [0, 0], sizes = [2, 96], strides = [1, 1]} : vector<2x128xf32> to vector<2x96xf32>
    %175 = arith.negf %174 : vector<2x96xf32>
    %176 = math.exp %175 : vector<2x96xf32>
    %cst_67 = arith.constant 1.000000e+00 : f32
    %177 = vector.broadcast %cst_67 : f32 to vector<2x96xf32>
    %178 = arith.addf %177, %176 : vector<2x96xf32>
    %179 = arith.divf %177, %178 : vector<2x96xf32>
    %180 = vector.extract_strided_slice %173 {offsets = [0, 96], sizes = [2, 32], strides = [1, 1]} : vector<2x128xf32> to vector<2x32xf32>
    %181 = math.tanh %180 : vector<2x32xf32>
    %182 = vector.extract_strided_slice %179 {offsets = [0, 32], sizes = [2, 32], strides = [1, 1]} : vector<2x96xf32> to vector<2x32xf32>
    %183 = arith.mulf %182, %144 : vector<2x32xf32>
    %184 = vector.extract_strided_slice %179 {offsets = [0, 0], sizes = [2, 32], strides = [1, 1]} : vector<2x96xf32> to vector<2x32xf32>
    %185 = arith.mulf %184, %181 : vector<2x32xf32>
    %186 = arith.addf %183, %185 : vector<2x32xf32>
    %187 = vector.extract_strided_slice %179 {offsets = [0, 64], sizes = [2, 32], strides = [1, 1]} : vector<2x96xf32> to vector<2x32xf32>
    %188 = math.tanh %186 : vector<2x32xf32>
    %189 = arith.mulf %187, %188 : vector<2x32xf32>
    %c8_68 = arith.constant 8 : index
    %c0_69 = arith.constant 0 : index
    %190 = vector.load %arg23[%c8_68, %c0_69] : memref<16x32xf32, #tpu.memory_space<vmem>>, vector<2x32xf32>
    tpu.vector_store %arg23[%c8_68, %c0_69], %189 {strides = array<i32>} : memref<16x32xf32, #tpu.memory_space<vmem>>, vector<2x32xf32>,
    %c8_70 = arith.constant 8 : index
    %c0_71 = arith.constant 0 : index
    %191 = vector.load %arg20[%c8_70, %c0_71] : memref<16x128xf32, #tpu.memory_space<vmem>>, vector<2x128xf32>
    %192 = arith.truncf %168 : vector<2x32xf32> to vector<2x32xbf16>
    %cst_72 = arith.constant dense<0.000000e+00> : vector<2x128xf32>
    %193 = tpu.matmul %192, %17, %cst_72 {dimension_numbers = #tpu.dot_dimension_numbers<[1], [0], [0], [1], [0, 0, 1, 1], [], []>} : vector<2x32xbf16>, vector<32x128xbf16>, vector<2x128xf32> -> vector<2x128xf32>
    %194 = arith.addf %191, %193 : vector<2x128xf32>
    %195 = vector.extract_strided_slice %194 {offsets = [0, 0], sizes = [2, 96], strides = [1, 1]} : vector<2x128xf32> to vector<2x96xf32>
    %196 = arith.negf %195 : vector<2x96xf32>
    %197 = math.exp %196 : vector<2x96xf32>
    %cst_73 = arith.constant 1.000000e+00 : f32
    %198 = vector.broadcast %cst_73 : f32 to vector<2x96xf32>
    %199 = arith.addf %198, %197 : vector<2x96xf32>
    %200 = arith.divf %198, %199 : vector<2x96xf32>
    %201 = vector.extract_strided_slice %194 {offsets = [0, 96], sizes = [2, 32], strides = [1, 1]} : vector<2x128xf32> to vector<2x32xf32>
    %202 = math.tanh %201 : vector<2x32xf32>
    %203 = vector.extract_strided_slice %200 {offsets = [0, 32], sizes = [2, 32], strides = [1, 1]} : vector<2x96xf32> to vector<2x32xf32>
    %204 = arith.mulf %203, %165 : vector<2x32xf32>
    %205 = vector.extract_strided_slice %200 {offsets = [0, 0], sizes = [2, 32], strides = [1, 1]} : vector<2x96xf32> to vector<2x32xf32>
    %206 = arith.mulf %205, %202 : vector<2x32xf32>
    %207 = arith.addf %204, %206 : vector<2x32xf32>
    %208 = vector.extract_strided_slice %200 {offsets = [0, 64], sizes = [2, 32], strides = [1, 1]} : vector<2x96xf32> to vector<2x32xf32>
    %209 = math.tanh %207 : vector<2x32xf32>
    %210 = arith.mulf %208, %209 : vector<2x32xf32>
    %c8_74 = arith.constant 8 : index
    %c0_75 = arith.constant 0 : index
    %211 = vector.load %arg22[%c8_74, %c0_75] : memref<16x32xf32, #tpu.memory_space<vmem>>, vector<2x32xf32>
    tpu.vector_store %arg22[%c8_74, %c0_75], %210 {strides = array<i32>} : memref<16x32xf32, #tpu.memory_space<vmem>>, vector<2x32xf32>,
    %c6_76 = arith.constant 6 : index
    %c0_77 = arith.constant 0 : index
    %212 = vector.load %arg21[%c6_76, %c0_77] : memref<16x128xf32, #tpu.memory_space<vmem>>, vector<2x128xf32>
    %213 = arith.truncf %189 : vector<2x32xf32> to vector<2x32xbf16>
    %cst_78 = arith.constant dense<0.000000e+00> : vector<2x128xf32>
    %214 = tpu.matmul %213, %18, %cst_78 {dimension_numbers = #tpu.dot_dimension_numbers<[1], [0], [0], [1], [0, 0, 1, 1], [], []>} : vector<2x32xbf16>, vector<32x128xbf16>, vector<2x128xf32> -> vector<2x128xf32>
    %215 = arith.addf %212, %214 : vector<2x128xf32>
    %216 = vector.extract_strided_slice %215 {offsets = [0, 0], sizes = [2, 96], strides = [1, 1]} : vector<2x128xf32> to vector<2x96xf32>
    %217 = arith.negf %216 : vector<2x96xf32>
    %218 = math.exp %217 : vector<2x96xf32>
    %cst_79 = arith.constant 1.000000e+00 : f32
    %219 = vector.broadcast %cst_79 : f32 to vector<2x96xf32>
    %220 = arith.addf %219, %218 : vector<2x96xf32>
    %221 = arith.divf %219, %220 : vector<2x96xf32>
    %222 = vector.extract_strided_slice %215 {offsets = [0, 96], sizes = [2, 32], strides = [1, 1]} : vector<2x128xf32> to vector<2x32xf32>
    %223 = math.tanh %222 : vector<2x32xf32>
    %224 = vector.extract_strided_slice %221 {offsets = [0, 32], sizes = [2, 32], strides = [1, 1]} : vector<2x96xf32> to vector<2x32xf32>
    %225 = arith.mulf %224, %186 : vector<2x32xf32>
    %226 = vector.extract_strided_slice %221 {offsets = [0, 0], sizes = [2, 32], strides = [1, 1]} : vector<2x96xf32> to vector<2x32xf32>
    %227 = arith.mulf %226, %223 : vector<2x32xf32>
    %228 = arith.addf %225, %227 : vector<2x32xf32>
    %229 = vector.extract_strided_slice %221 {offsets = [0, 64], sizes = [2, 32], strides = [1, 1]} : vector<2x96xf32> to vector<2x32xf32>
    %230 = math.tanh %228 : vector<2x32xf32>
    %231 = arith.mulf %229, %230 : vector<2x32xf32>
    %c6_80 = arith.constant 6 : index
    %c0_81 = arith.constant 0 : index
    %232 = vector.load %arg23[%c6_80, %c0_81] : memref<16x32xf32, #tpu.memory_space<vmem>>, vector<2x32xf32>
    tpu.vector_store %arg23[%c6_80, %c0_81], %231 {strides = array<i32>} : memref<16x32xf32, #tpu.memory_space<vmem>>, vector<2x32xf32>,
    %c10_82 = arith.constant 10 : index
    %c0_83 = arith.constant 0 : index
    %233 = vector.load %arg20[%c10_82, %c0_83] : memref<16x128xf32, #tpu.memory_space<vmem>>, vector<2x128xf32>
    %234 = arith.truncf %210 : vector<2x32xf32> to vector<2x32xbf16>
    %cst_84 = arith.constant dense<0.000000e+00> : vector<2x128xf32>
    %235 = tpu.matmul %234, %17, %cst_84 {dimension_numbers = #tpu.dot_dimension_numbers<[1], [0], [0], [1], [0, 0, 1, 1], [], []>} : vector<2x32xbf16>, vector<32x128xbf16>, vector<2x128xf32> -> vector<2x128xf32>
    %236 = arith.addf %233, %235 : vector<2x128xf32>
    %237 = vector.extract_strided_slice %236 {offsets = [0, 0], sizes = [2, 96], strides = [1, 1]} : vector<2x128xf32> to vector<2x96xf32>
    %238 = arith.negf %237 : vector<2x96xf32>
    %239 = math.exp %238 : vector<2x96xf32>
    %cst_85 = arith.constant 1.000000e+00 : f32
    %240 = vector.broadcast %cst_85 : f32 to vector<2x96xf32>
    %241 = arith.addf %240, %239 : vector<2x96xf32>
    %242 = arith.divf %240, %241 : vector<2x96xf32>
    %243 = vector.extract_strided_slice %236 {offsets = [0, 96], sizes = [2, 32], strides = [1, 1]} : vector<2x128xf32> to vector<2x32xf32>
    %244 = math.tanh %243 : vector<2x32xf32>
    %245 = vector.extract_strided_slice %242 {offsets = [0, 32], sizes = [2, 32], strides = [1, 1]} : vector<2x96xf32> to vector<2x32xf32>
    %246 = arith.mulf %245, %207 : vector<2x32xf32>
    %247 = vector.extract_strided_slice %242 {offsets = [0, 0], sizes = [2, 32], strides = [1, 1]} : vector<2x96xf32> to vector<2x32xf32>
    %248 = arith.mulf %247, %244 : vector<2x32xf32>
    %249 = arith.addf %246, %248 : vector<2x32xf32>
    %250 = vector.extract_strided_slice %242 {offsets = [0, 64], sizes = [2, 32], strides = [1, 1]} : vector<2x96xf32> to vector<2x32xf32>
    %251 = math.tanh %249 : vector<2x32xf32>
    %252 = arith.mulf %250, %251 : vector<2x32xf32>
    %c10_86 = arith.constant 10 : index
    %c0_87 = arith.constant 0 : index
    %253 = vector.load %arg22[%c10_86, %c0_87] : memref<16x32xf32, #tpu.memory_space<vmem>>, vector<2x32xf32>
    tpu.vector_store %arg22[%c10_86, %c0_87], %252 {strides = array<i32>} : memref<16x32xf32, #tpu.memory_space<vmem>>, vector<2x32xf32>,
    %c4_88 = arith.constant 4 : index
    %c0_89 = arith.constant 0 : index
    %254 = vector.load %arg21[%c4_88, %c0_89] : memref<16x128xf32, #tpu.memory_space<vmem>>, vector<2x128xf32>
    %255 = arith.truncf %231 : vector<2x32xf32> to vector<2x32xbf16>
    %cst_90 = arith.constant dense<0.000000e+00> : vector<2x128xf32>
    %256 = tpu.matmul %255, %18, %cst_90 {dimension_numbers = #tpu.dot_dimension_numbers<[1], [0], [0], [1], [0, 0, 1, 1], [], []>} : vector<2x32xbf16>, vector<32x128xbf16>, vector<2x128xf32> -> vector<2x128xf32>
    %257 = arith.addf %254, %256 : vector<2x128xf32>
    %258 = vector.extract_strided_slice %257 {offsets = [0, 0], sizes = [2, 96], strides = [1, 1]} : vector<2x128xf32> to vector<2x96xf32>
    %259 = arith.negf %258 : vector<2x96xf32>
    %260 = math.exp %259 : vector<2x96xf32>
    %cst_91 = arith.constant 1.000000e+00 : f32
    %261 = vector.broadcast %cst_91 : f32 to vector<2x96xf32>
    %262 = arith.addf %261, %260 : vector<2x96xf32>
    %263 = arith.divf %261, %262 : vector<2x96xf32>
    %264 = vector.extract_strided_slice %257 {offsets = [0, 96], sizes = [2, 32], strides = [1, 1]} : vector<2x128xf32> to vector<2x32xf32>
    %265 = math.tanh %264 : vector<2x32xf32>
    %266 = vector.extract_strided_slice %263 {offsets = [0, 32], sizes = [2, 32], strides = [1, 1]} : vector<2x96xf32> to vector<2x32xf32>
    %267 = arith.mulf %266, %228 : vector<2x32xf32>
    %268 = vector.extract_strided_slice %263 {offsets = [0, 0], sizes = [2, 32], strides = [1, 1]} : vector<2x96xf32> to vector<2x32xf32>
    %269 = arith.mulf %268, %265 : vector<2x32xf32>
    %270 = arith.addf %267, %269 : vector<2x32xf32>
    %271 = vector.extract_strided_slice %263 {offsets = [0, 64], sizes = [2, 32], strides = [1, 1]} : vector<2x96xf32> to vector<2x32xf32>
    %272 = math.tanh %270 : vector<2x32xf32>
    %273 = arith.mulf %271, %272 : vector<2x32xf32>
    %c4_92 = arith.constant 4 : index
    %c0_93 = arith.constant 0 : index
    %274 = vector.load %arg23[%c4_92, %c0_93] : memref<16x32xf32, #tpu.memory_space<vmem>>, vector<2x32xf32>
    tpu.vector_store %arg23[%c4_92, %c0_93], %273 {strides = array<i32>} : memref<16x32xf32, #tpu.memory_space<vmem>>, vector<2x32xf32>,
    %c12_94 = arith.constant 12 : index
    %c0_95 = arith.constant 0 : index
    %275 = vector.load %arg20[%c12_94, %c0_95] : memref<16x128xf32, #tpu.memory_space<vmem>>, vector<2x128xf32>
    %276 = arith.truncf %252 : vector<2x32xf32> to vector<2x32xbf16>
    %cst_96 = arith.constant dense<0.000000e+00> : vector<2x128xf32>
    %277 = tpu.matmul %276, %17, %cst_96 {dimension_numbers = #tpu.dot_dimension_numbers<[1], [0], [0], [1], [0, 0, 1, 1], [], []>} : vector<2x32xbf16>, vector<32x128xbf16>, vector<2x128xf32> -> vector<2x128xf32>
    %278 = arith.addf %275, %277 : vector<2x128xf32>
    %279 = vector.extract_strided_slice %278 {offsets = [0, 0], sizes = [2, 96], strides = [1, 1]} : vector<2x128xf32> to vector<2x96xf32>
    %280 = arith.negf %279 : vector<2x96xf32>
    %281 = math.exp %280 : vector<2x96xf32>
    %cst_97 = arith.constant 1.000000e+00 : f32
    %282 = vector.broadcast %cst_97 : f32 to vector<2x96xf32>
    %283 = arith.addf %282, %281 : vector<2x96xf32>
    %284 = arith.divf %282, %283 : vector<2x96xf32>
    %285 = vector.extract_strided_slice %278 {offsets = [0, 96], sizes = [2, 32], strides = [1, 1]} : vector<2x128xf32> to vector<2x32xf32>
    %286 = math.tanh %285 : vector<2x32xf32>
    %287 = vector.extract_strided_slice %284 {offsets = [0, 32], sizes = [2, 32], strides = [1, 1]} : vector<2x96xf32> to vector<2x32xf32>
    %288 = arith.mulf %287, %249 : vector<2x32xf32>
    %289 = vector.extract_strided_slice %284 {offsets = [0, 0], sizes = [2, 32], strides = [1, 1]} : vector<2x96xf32> to vector<2x32xf32>
    %290 = arith.mulf %289, %286 : vector<2x32xf32>
    %291 = arith.addf %288, %290 : vector<2x32xf32>
    %292 = vector.extract_strided_slice %284 {offsets = [0, 64], sizes = [2, 32], strides = [1, 1]} : vector<2x96xf32> to vector<2x32xf32>
    %293 = math.tanh %291 : vector<2x32xf32>
    %294 = arith.mulf %292, %293 : vector<2x32xf32>
    %c12_98 = arith.constant 12 : index
    %c0_99 = arith.constant 0 : index
    %295 = vector.load %arg22[%c12_98, %c0_99] : memref<16x32xf32, #tpu.memory_space<vmem>>, vector<2x32xf32>
    tpu.vector_store %arg22[%c12_98, %c0_99], %294 {strides = array<i32>} : memref<16x32xf32, #tpu.memory_space<vmem>>, vector<2x32xf32>,
    %c2_100 = arith.constant 2 : index
    %c0_101 = arith.constant 0 : index
    %296 = vector.load %arg21[%c2_100, %c0_101] : memref<16x128xf32, #tpu.memory_space<vmem>>, vector<2x128xf32>
    %297 = arith.truncf %273 : vector<2x32xf32> to vector<2x32xbf16>
    %cst_102 = arith.constant dense<0.000000e+00> : vector<2x128xf32>
    %298 = tpu.matmul %297, %18, %cst_102 {dimension_numbers = #tpu.dot_dimension_numbers<[1], [0], [0], [1], [0, 0, 1, 1], [], []>} : vector<2x32xbf16>, vector<32x128xbf16>, vector<2x128xf32> -> vector<2x128xf32>
    %299 = arith.addf %296, %298 : vector<2x128xf32>
    %300 = vector.extract_strided_slice %299 {offsets = [0, 0], sizes = [2, 96], strides = [1, 1]} : vector<2x128xf32> to vector<2x96xf32>
    %301 = arith.negf %300 : vector<2x96xf32>
    %302 = math.exp %301 : vector<2x96xf32>
    %cst_103 = arith.constant 1.000000e+00 : f32
    %303 = vector.broadcast %cst_103 : f32 to vector<2x96xf32>
    %304 = arith.addf %303, %302 : vector<2x96xf32>
    %305 = arith.divf %303, %304 : vector<2x96xf32>
    %306 = vector.extract_strided_slice %299 {offsets = [0, 96], sizes = [2, 32], strides = [1, 1]} : vector<2x128xf32> to vector<2x32xf32>
    %307 = math.tanh %306 : vector<2x32xf32>
    %308 = vector.extract_strided_slice %305 {offsets = [0, 32], sizes = [2, 32], strides = [1, 1]} : vector<2x96xf32> to vector<2x32xf32>
    %309 = arith.mulf %308, %270 : vector<2x32xf32>
    %310 = vector.extract_strided_slice %305 {offsets = [0, 0], sizes = [2, 32], strides = [1, 1]} : vector<2x96xf32> to vector<2x32xf32>
    %311 = arith.mulf %310, %307 : vector<2x32xf32>
    %312 = arith.addf %309, %311 : vector<2x32xf32>
    %313 = vector.extract_strided_slice %305 {offsets = [0, 64], sizes = [2, 32], strides = [1, 1]} : vector<2x96xf32> to vector<2x32xf32>
    %314 = math.tanh %312 : vector<2x32xf32>
    %315 = arith.mulf %313, %314 : vector<2x32xf32>
    %c2_104 = arith.constant 2 : index
    %c0_105 = arith.constant 0 : index
    %316 = vector.load %arg23[%c2_104, %c0_105] : memref<16x32xf32, #tpu.memory_space<vmem>>, vector<2x32xf32>
    tpu.vector_store %arg23[%c2_104, %c0_105], %315 {strides = array<i32>} : memref<16x32xf32, #tpu.memory_space<vmem>>, vector<2x32xf32>,
    %c14_106 = arith.constant 14 : index
    %c0_107 = arith.constant 0 : index
    %317 = vector.load %arg20[%c14_106, %c0_107] : memref<16x128xf32, #tpu.memory_space<vmem>>, vector<2x128xf32>
    %318 = arith.truncf %294 : vector<2x32xf32> to vector<2x32xbf16>
    %cst_108 = arith.constant dense<0.000000e+00> : vector<2x128xf32>
    %319 = tpu.matmul %318, %17, %cst_108 {dimension_numbers = #tpu.dot_dimension_numbers<[1], [0], [0], [1], [0, 0, 1, 1], [], []>} : vector<2x32xbf16>, vector<32x128xbf16>, vector<2x128xf32> -> vector<2x128xf32>
    %320 = arith.addf %317, %319 : vector<2x128xf32>
    %321 = vector.extract_strided_slice %320 {offsets = [0, 0], sizes = [2, 96], strides = [1, 1]} : vector<2x128xf32> to vector<2x96xf32>
    %322 = arith.negf %321 : vector<2x96xf32>
    %323 = math.exp %322 : vector<2x96xf32>
    %cst_109 = arith.constant 1.000000e+00 : f32
    %324 = vector.broadcast %cst_109 : f32 to vector<2x96xf32>
    %325 = arith.addf %324, %323 : vector<2x96xf32>
    %326 = arith.divf %324, %325 : vector<2x96xf32>
    %327 = vector.extract_strided_slice %320 {offsets = [0, 96], sizes = [2, 32], strides = [1, 1]} : vector<2x128xf32> to vector<2x32xf32>
    %328 = math.tanh %327 : vector<2x32xf32>
    %329 = vector.extract_strided_slice %326 {offsets = [0, 32], sizes = [2, 32], strides = [1, 1]} : vector<2x96xf32> to vector<2x32xf32>
    %330 = arith.mulf %329, %291 : vector<2x32xf32>
    %331 = vector.extract_strided_slice %326 {offsets = [0, 0], sizes = [2, 32], strides = [1, 1]} : vector<2x96xf32> to vector<2x32xf32>
    %332 = arith.mulf %331, %328 : vector<2x32xf32>
    %333 = arith.addf %330, %332 : vector<2x32xf32>
    %334 = vector.extract_strided_slice %326 {offsets = [0, 64], sizes = [2, 32], strides = [1, 1]} : vector<2x96xf32> to vector<2x32xf32>
    %335 = math.tanh %333 : vector<2x32xf32>
    %336 = arith.mulf %334, %335 : vector<2x32xf32>
    %c14_110 = arith.constant 14 : index
    %c0_111 = arith.constant 0 : index
    %337 = vector.load %arg22[%c14_110, %c0_111] : memref<16x32xf32, #tpu.memory_space<vmem>>, vector<2x32xf32>
    tpu.vector_store %arg22[%c14_110, %c0_111], %336 {strides = array<i32>} : memref<16x32xf32, #tpu.memory_space<vmem>>, vector<2x32xf32>,
    %c0_112 = arith.constant 0 : index
    %c0_113 = arith.constant 0 : index
    %338 = vector.load %arg21[%c0_112, %c0_113] : memref<16x128xf32, #tpu.memory_space<vmem>>, vector<2x128xf32>
    %339 = arith.truncf %315 : vector<2x32xf32> to vector<2x32xbf16>
    %cst_114 = arith.constant dense<0.000000e+00> : vector<2x128xf32>
    %340 = tpu.matmul %339, %18, %cst_114 {dimension_numbers = #tpu.dot_dimension_numbers<[1], [0], [0], [1], [0, 0, 1, 1], [], []>} : vector<2x32xbf16>, vector<32x128xbf16>, vector<2x128xf32> -> vector<2x128xf32>
    %341 = arith.addf %338, %340 : vector<2x128xf32>
    %342 = vector.extract_strided_slice %341 {offsets = [0, 0], sizes = [2, 96], strides = [1, 1]} : vector<2x128xf32> to vector<2x96xf32>
    %343 = arith.negf %342 : vector<2x96xf32>
    %344 = math.exp %343 : vector<2x96xf32>
    %cst_115 = arith.constant 1.000000e+00 : f32
    %345 = vector.broadcast %cst_115 : f32 to vector<2x96xf32>
    %346 = arith.addf %345, %344 : vector<2x96xf32>
    %347 = arith.divf %345, %346 : vector<2x96xf32>
    %348 = vector.extract_strided_slice %341 {offsets = [0, 96], sizes = [2, 32], strides = [1, 1]} : vector<2x128xf32> to vector<2x32xf32>
    %349 = math.tanh %348 : vector<2x32xf32>
    %350 = vector.extract_strided_slice %347 {offsets = [0, 32], sizes = [2, 32], strides = [1, 1]} : vector<2x96xf32> to vector<2x32xf32>
    %351 = arith.mulf %350, %312 : vector<2x32xf32>
    %352 = vector.extract_strided_slice %347 {offsets = [0, 0], sizes = [2, 32], strides = [1, 1]} : vector<2x96xf32> to vector<2x32xf32>
    %353 = arith.mulf %352, %349 : vector<2x32xf32>
    %354 = arith.addf %351, %353 : vector<2x32xf32>
    %355 = vector.extract_strided_slice %347 {offsets = [0, 64], sizes = [2, 32], strides = [1, 1]} : vector<2x96xf32> to vector<2x32xf32>
    %356 = math.tanh %354 : vector<2x32xf32>
    %357 = arith.mulf %355, %356 : vector<2x32xf32>
    %c0_116 = arith.constant 0 : index
    %c0_117 = arith.constant 0 : index
    %358 = vector.load %arg23[%c0_116, %c0_117] : memref<16x32xf32, #tpu.memory_space<vmem>>, vector<2x32xf32>
    tpu.vector_store %arg23[%c0_116, %c0_117], %357 {strides = array<i32>} : memref<16x32xf32, #tpu.memory_space<vmem>>, vector<2x32xf32>,
    %c0_118 = arith.constant 0 : index
    %c0_119 = arith.constant 0 : index
    %359 = vector.load %arg16[%c0_118, %c0_119] : memref<2x32xf32, #tpu.memory_space<vmem>>, vector<2x32xf32>
    tpu.vector_store %arg16[%c0_118, %c0_119], %336 {strides = array<i32>} : memref<2x32xf32, #tpu.memory_space<vmem>>, vector<2x32xf32>,
    %c0_120 = arith.constant 0 : index
    %c0_121 = arith.constant 0 : index
    %360 = vector.load %arg17[%c0_120, %c0_121] : memref<2x32xf32, #tpu.memory_space<vmem>>, vector<2x32xf32>
    tpu.vector_store %arg17[%c0_120, %c0_121], %333 {strides = array<i32>} : memref<2x32xf32, #tpu.memory_space<vmem>>, vector<2x32xf32>,
    %c0_122 = arith.constant 0 : index
    %c0_123 = arith.constant 0 : index
    %361 = vector.load %arg18[%c0_122, %c0_123] : memref<2x32xf32, #tpu.memory_space<vmem>>, vector<2x32xf32>
    tpu.vector_store %arg18[%c0_122, %c0_123], %357 {strides = array<i32>} : memref<2x32xf32, #tpu.memory_space<vmem>>, vector<2x32xf32>,
    %c0_124 = arith.constant 0 : index
    %c0_125 = arith.constant 0 : index
    %362 = vector.load %arg19[%c0_124, %c0_125] : memref<2x32xf32, #tpu.memory_space<vmem>>, vector<2x32xf32>
    tpu.vector_store %arg19[%c0_124, %c0_125], %354 {strides = array<i32>} : memref<2x32xf32, #tpu.memory_space<vmem>>, vector<2x32xf32>,
    %c0_126 = arith.constant 0 : index
    %c0_127 = arith.constant 0 : index
    %363 = vector.load %arg22[%c0_126, %c0_127] : memref<16x32xf32, #tpu.memory_space<vmem>>, vector<16x32xf32>
    %364 = arith.truncf %363 : vector<16x32xf32> to vector<16x32xbf16>
    %c0_128 = arith.constant 0 : index
    %c0_129 = arith.constant 0 : index
    %365 = vector.load %arg9[%c0_128, %c0_129] : memref<16x32xbf16, #tpu.memory_space<vmem>>, vector<16x32xbf16>
    tpu.vector_store %arg9[%c0_128, %c0_129], %364 {strides = array<i32>} : memref<16x32xbf16, #tpu.memory_space<vmem>>, vector<16x32xbf16>,
    %c0_130 = arith.constant 0 : index
    %c0_131 = arith.constant 0 : index
    %366 = vector.load %arg23[%c0_130, %c0_131] : memref<16x32xf32, #tpu.memory_space<vmem>>, vector<16x32xf32>
    %367 = arith.truncf %366 : vector<16x32xf32> to vector<16x32xbf16>
    %c0_132 = arith.constant 0 : index
    %c0_133 = arith.constant 0 : index
    %368 = vector.load %arg10[%c0_132, %c0_133] : memref<16x32xbf16, #tpu.memory_space<vmem>>, vector<16x32xbf16>
    tpu.vector_store %arg10[%c0_132, %c0_133], %367 {strides = array<i32>} : memref<16x32xbf16, #tpu.memory_space<vmem>>, vector<16x32xbf16>,
    return
  }
  func.func @transform_0(%arg0: i32) -> (i32, i32) {
    %c0_i32 = arith.constant 0 : i32
    %c0_i32_0 = arith.constant 0 : i32
    return %arg0, %c0_i32 : i32, i32
  }
  func.func @transform_1(%arg0: i32) -> (i32, i32) {
    %c0_i32 = arith.constant 0 : i32
    %0 = arith.subi %c0_i32, %arg0 : i32
    %c0_i32_0 = arith.constant 0 : i32
    %c0_i32_1 = arith.constant 0 : i32
    return %0, %c0_i32_0 : i32, i32
  }
  func.func @transform_4(%arg0: i32) -> (i32, i32) {
    %c0_i32 = arith.constant 0 : i32
    %c0_i32_0 = arith.constant 0 : i32
    %c0_i32_1 = arith.constant 0 : i32
    return %c0_i32, %c0_i32_0 : i32, i32
  }
  func.func @transform_7(%arg0: i32) -> (i32, i32) {
    %c0_i32 = arith.constant 0 : i32
    %c0_i32_0 = arith.constant 0 : i32
    %c0_i32_1 = arith.constant 0 : i32
    return %c0_i32, %c0_i32_0 : i32, i32
  }
  func.func @transform_8(%arg0: i32) -> (i32, i32) {
    %c0_i32 = arith.constant 0 : i32
    %c0_i32_0 = arith.constant 0 : i32
    return %arg0, %c0_i32 : i32, i32
  }
  func.func @transform_9(%arg0: i32) -> (i32, i32) {
    %c0_i32 = arith.constant 0 : i32
    %0 = arith.subi %c0_i32, %arg0 : i32
    %c0_i32_0 = arith.constant 0 : i32
    %c0_i32_1 = arith.constant 0 : i32
    return %0, %c0_i32_0 : i32, i32
  }
}

module attributes {stable_mosaic.version = 11 : i64} {
  func.func @bilstm_chunk_kernel(%arg0: i32, %arg1: memref<16x32xbf16, #tpu.memory_space<vmem>>, %arg2: memref<16x32xbf16, #tpu.memory_space<vmem>>, %arg3: memref<32x128xbf16, #tpu.memory_space<any>>, %arg4: memref<32x128xbf16, #tpu.memory_space<any>>, %arg5: memref<1x128xf32, #tpu.memory_space<vmem>>, %arg6: memref<32x128xbf16, #tpu.memory_space<any>>, %arg7: memref<32x128xbf16, #tpu.memory_space<any>>, %arg8: memref<1x128xf32, #tpu.memory_space<vmem>>, %arg9: memref<16x32xbf16, #tpu.memory_space<vmem>>, %arg10: memref<16x32xbf16, #tpu.memory_space<vmem>>, %arg11: memref<32x128xbf16, #tpu.memory_space<vmem>>, %arg12: memref<32x128xbf16, #tpu.memory_space<vmem>>, %arg13: memref<32x128xbf16, #tpu.memory_space<vmem>>, %arg14: memref<32x128xbf16, #tpu.memory_space<vmem>>, %arg15: memref<4x!tpu.dma_semaphore, #tpu.memory_space<semaphore_mem>>, %arg16: memref<2x32xf32, #tpu.memory_space<vmem>>, %arg17: memref<2x32xf32, #tpu.memory_space<vmem>>, %arg18: memref<2x32xf32, #tpu.memory_space<vmem>>, %arg19: memref<2x32xf32, #tpu.memory_space<vmem>>, %arg20: memref<16x128xf32, #tpu.memory_space<vmem>>, %arg21: memref<16x128xf32, #tpu.memory_space<vmem>>, %arg22: memref<16x32xf32, #tpu.memory_space<vmem>>, %arg23: memref<16x32xf32, #tpu.memory_space<vmem>>) attributes {dimension_semantics = [#tpu.dimension_semantics<arbitrary>], iteration_bounds = array<i64: 1>, scalar_prefetch = 0 : i64, scratch_operands = 13 : i64, tpu.core_type = #tpu.core_type<tc>, window_params = [{transform_indices = @transform_0, window_bounds = array<i64: 16, 32>}, {transform_indices = @transform_1, window_bounds = array<i64: 16, 32>}, {}, {}, {pipeline_mode = #tpu.pipeline_mode<synchronous>, transform_indices = @transform_4, window_bounds = array<i64: 1, 128>}, {}, {}, {pipeline_mode = #tpu.pipeline_mode<synchronous>, transform_indices = @transform_7, window_bounds = array<i64: 1, 128>}, {transform_indices = @transform_8, window_bounds = array<i64: 16, 32>}, {transform_indices = @transform_9, window_bounds = array<i64: 16, 32>}]} {
    %c0_i32 = arith.constant 0 : i32
    %0 = arith.cmpi eq, %arg0, %c0_i32 : i32
    %1 = arith.extui %0 : i1 to i32
    %c0_i32_0 = arith.constant 0 : i32
    %2 = arith.cmpi ne, %1, %c0_i32_0 : i32
    scf.if %2 {
      %c0_i32_134 = arith.constant 0 : i32
      %369 = tpu.memref_slice %arg15[%c0_i32_134] : memref<4x!tpu.dma_semaphore, #tpu.memory_space<semaphore_mem>> -> memref<1x!tpu.dma_semaphore, #tpu.memory_space<semaphore_mem>>
      %370 = tpu.memref_squeeze %369 : memref<1x!tpu.dma_semaphore, #tpu.memory_space<semaphore_mem>> -> memref<!tpu.dma_semaphore, #tpu.memory_space<semaphore_mem>>
      tpu.enqueue_dma source(%arg3 : memref<32x128xbf16, #tpu.memory_space<any>>) target(%arg11 : memref<32x128xbf16, #tpu.memory_space<vmem>>) target_semaphore(%370 : memref<!tpu.dma_semaphore, #tpu.memory_space<semaphore_mem>>)
      %c1_i32 = arith.constant 1 : i32
      %371 = tpu.memref_slice %arg15[%c1_i32] : memref<4x!tpu.dma_semaphore, #tpu.memory_space<semaphore_mem>> -> memref<1x!tpu.dma_semaphore, #tpu.memory_space<semaphore_mem>>
      %372 = tpu.memref_squeeze %371 : memref<1x!tpu.dma_semaphore, #tpu.memory_space<semaphore_mem>> -> memref<!tpu.dma_semaphore, #tpu.memory_space<semaphore_mem>>
      tpu.enqueue_dma source(%arg4 : memref<32x128xbf16, #tpu.memory_space<any>>) target(%arg12 : memref<32x128xbf16, #tpu.memory_space<vmem>>) target_semaphore(%372 : memref<!tpu.dma_semaphore, #tpu.memory_space<semaphore_mem>>)
      %c2_i32 = arith.constant 2 : i32
      %373 = tpu.memref_slice %arg15[%c2_i32] : memref<4x!tpu.dma_semaphore, #tpu.memory_space<semaphore_mem>> -> memref<1x!tpu.dma_semaphore, #tpu.memory_space<semaphore_mem>>
      %374 = tpu.memref_squeeze %373 : memref<1x!tpu.dma_semaphore, #tpu.memory_space<semaphore_mem>> -> memref<!tpu.dma_semaphore, #tpu.memory_space<semaphore_mem>>
      tpu.enqueue_dma source(%arg6 : memref<32x128xbf16, #tpu.memory_space<any>>) target(%arg13 : memref<32x128xbf16, #tpu.memory_space<vmem>>) target_semaphore(%374 : memref<!tpu.dma_semaphore, #tpu.memory_space<semaphore_mem>>)
      %c3_i32 = arith.constant 3 : i32
      %375 = tpu.memref_slice %arg15[%c3_i32] : memref<4x!tpu.dma_semaphore, #tpu.memory_space<semaphore_mem>> -> memref<1x!tpu.dma_semaphore, #tpu.memory_space<semaphore_mem>>
      %376 = tpu.memref_squeeze %375 : memref<1x!tpu.dma_semaphore, #tpu.memory_space<semaphore_mem>> -> memref<!tpu.dma_semaphore, #tpu.memory_space<semaphore_mem>>
      tpu.enqueue_dma source(%arg7 : memref<32x128xbf16, #tpu.memory_space<any>>) target(%arg14 : memref<32x128xbf16, #tpu.memory_space<vmem>>) target_semaphore(%376 : memref<!tpu.dma_semaphore, #tpu.memory_space<semaphore_mem>>)
      %c0_i32_135 = arith.constant 0 : i32
      %377 = tpu.memref_slice %arg15[%c0_i32_135] : memref<4x!tpu.dma_semaphore, #tpu.memory_space<semaphore_mem>> -> memref<1x!tpu.dma_semaphore, #tpu.memory_space<semaphore_mem>>
      %378 = tpu.memref_squeeze %377 : memref<1x!tpu.dma_semaphore, #tpu.memory_space<semaphore_mem>> -> memref<!tpu.dma_semaphore, #tpu.memory_space<semaphore_mem>>
      tpu.wait_dma2 semaphore(%378 : memref<!tpu.dma_semaphore, #tpu.memory_space<semaphore_mem>>) src(%arg3 : memref<32x128xbf16, #tpu.memory_space<any>>) dst(%arg11 : memref<32x128xbf16, #tpu.memory_space<vmem>>)
      %c1_i32_136 = arith.constant 1 : i32
      %379 = tpu.memref_slice %arg15[%c1_i32_136] : memref<4x!tpu.dma_semaphore, #tpu.memory_space<semaphore_mem>> -> memref<1x!tpu.dma_semaphore, #tpu.memory_space<semaphore_mem>>
      %380 = tpu.memref_squeeze %379 : memref<1x!tpu.dma_semaphore, #tpu.memory_space<semaphore_mem>> -> memref<!tpu.dma_semaphore, #tpu.memory_space<semaphore_mem>>
      tpu.wait_dma2 semaphore(%380 : memref<!tpu.dma_semaphore, #tpu.memory_space<semaphore_mem>>) src(%arg4 : memref<32x128xbf16, #tpu.memory_space<any>>) dst(%arg12 : memref<32x128xbf16, #tpu.memory_space<vmem>>)
      %c2_i32_137 = arith.constant 2 : i32
      %381 = tpu.memref_slice %arg15[%c2_i32_137] : memref<4x!tpu.dma_semaphore, #tpu.memory_space<semaphore_mem>> -> memref<1x!tpu.dma_semaphore, #tpu.memory_space<semaphore_mem>>
      %382 = tpu.memref_squeeze %381 : memref<1x!tpu.dma_semaphore, #tpu.memory_space<semaphore_mem>> -> memref<!tpu.dma_semaphore, #tpu.memory_space<semaphore_mem>>
      tpu.wait_dma2 semaphore(%382 : memref<!tpu.dma_semaphore, #tpu.memory_space<semaphore_mem>>) src(%arg6 : memref<32x128xbf16, #tpu.memory_space<any>>) dst(%arg13 : memref<32x128xbf16, #tpu.memory_space<vmem>>)
      %c3_i32_138 = arith.constant 3 : i32
      %383 = tpu.memref_slice %arg15[%c3_i32_138] : memref<4x!tpu.dma_semaphore, #tpu.memory_space<semaphore_mem>> -> memref<1x!tpu.dma_semaphore, #tpu.memory_space<semaphore_mem>>
      %384 = tpu.memref_squeeze %383 : memref<1x!tpu.dma_semaphore, #tpu.memory_space<semaphore_mem>> -> memref<!tpu.dma_semaphore, #tpu.memory_space<semaphore_mem>>
      tpu.wait_dma2 semaphore(%384 : memref<!tpu.dma_semaphore, #tpu.memory_space<semaphore_mem>>) src(%arg7 : memref<32x128xbf16, #tpu.memory_space<any>>) dst(%arg14 : memref<32x128xbf16, #tpu.memory_space<vmem>>)
      %cst_139 = arith.constant 0.000000e+00 : f32
      %385 = vector.broadcast %cst_139 : f32 to vector<2x32xf32>
      %c0_140 = arith.constant 0 : index
      %c0_141 = arith.constant 0 : index
      %386 = vector.load %arg16[%c0_140, %c0_141] : memref<2x32xf32, #tpu.memory_space<vmem>>, vector<2x32xf32>
      tpu.vector_store %arg16[%c0_140, %c0_141], %385 {strides = array<i32>} : memref<2x32xf32, #tpu.memory_space<vmem>>, vector<2x32xf32>,
      %cst_142 = arith.constant 0.000000e+00 : f32
      %387 = vector.broadcast %cst_142 : f32 to vector<2x32xf32>
      %c0_143 = arith.constant 0 : index
      %c0_144 = arith.constant 0 : index
      %388 = vector.load %arg17[%c0_143, %c0_144] : memref<2x32xf32, #tpu.memory_space<vmem>>, vector<2x32xf32>
      tpu.vector_store %arg17[%c0_143, %c0_144], %387 {strides = array<i32>} : memref<2x32xf32, #tpu.memory_space<vmem>>, vector<2x32xf32>,
      %cst_145 = arith.constant 0.000000e+00 : f32
      %389 = vector.broadcast %cst_145 : f32 to vector<2x32xf32>
      %c0_146 = arith.constant 0 : index
      %c0_147 = arith.constant 0 : index
      %390 = vector.load %arg18[%c0_146, %c0_147] : memref<2x32xf32, #tpu.memory_space<vmem>>, vector<2x32xf32>
      tpu.vector_store %arg18[%c0_146, %c0_147], %389 {strides = array<i32>} : memref<2x32xf32, #tpu.memory_space<vmem>>, vector<2x32xf32>,
      %cst_148 = arith.constant 0.000000e+00 : f32
      %391 = vector.broadcast %cst_148 : f32 to vector<2x32xf32>
      %c0_149 = arith.constant 0 : index
      %c0_150 = arith.constant 0 : index
      %392 = vector.load %arg19[%c0_149, %c0_150] : memref<2x32xf32, #tpu.memory_space<vmem>>, vector<2x32xf32>
      tpu.vector_store %arg19[%c0_149, %c0_150], %391 {strides = array<i32>} : memref<2x32xf32, #tpu.memory_space<vmem>>, vector<2x32xf32>,
    } else {
    }
    %c0 = arith.constant 0 : index
    %c0_1 = arith.constant 0 : index
    %3 = vector.load %arg1[%c0, %c0_1] : memref<16x32xbf16, #tpu.memory_space<vmem>>, vector<16x32xbf16>
    %c0_2 = arith.constant 0 : index
    %c0_3 = arith.constant 0 : index
    %4 = vector.load %arg11[%c0_2, %c0_3] : memref<32x128xbf16, #tpu.memory_space<vmem>>, vector<32x128xbf16>
    %cst = arith.constant dense<0.000000e+00> : vector<16x128xf32>
    %5 = tpu.matmul %3, %4, %cst {dimension_numbers = #tpu.dot_dimension_numbers<[1], [0], [0], [1], [0, 0, 1, 1], [], []>} : vector<16x32xbf16>, vector<32x128xbf16>, vector<16x128xf32> -> vector<16x128xf32>
    %c0_4 = arith.constant 0 : index
    %c0_5 = arith.constant 0 : index
    %6 = vector.load %arg5[%c0_4, %c0_5] : memref<1x128xf32, #tpu.memory_space<vmem>>, vector<1x128xf32>
    %7 = vector.broadcast %6 : vector<1x128xf32> to vector<16x128xf32>
    %8 = arith.addf %5, %7 : vector<16x128xf32>
    %c0_6 = arith.constant 0 : index
    %c0_7 = arith.constant 0 : index
    %9 = vector.load %arg20[%c0_6, %c0_7] : memref<16x128xf32, #tpu.memory_space<vmem>>, vector<16x128xf32>
    tpu.vector_store %arg20[%c0_6, %c0_7], %8 {strides = array<i32>} : memref<16x128xf32, #tpu.memory_space<vmem>>, vector<16x128xf32>,
    %c0_8 = arith.constant 0 : index
    %c0_9 = arith.constant 0 : index
    %10 = vector.load %arg2[%c0_8, %c0_9] : memref<16x32xbf16, #tpu.memory_space<vmem>>, vector<16x32xbf16>
    %c0_10 = arith.constant 0 : index
    %c0_11 = arith.constant 0 : index
    %11 = vector.load %arg13[%c0_10, %c0_11] : memref<32x128xbf16, #tpu.memory_space<vmem>>, vector<32x128xbf16>
    %cst_12 = arith.constant dense<0.000000e+00> : vector<16x128xf32>
    %12 = tpu.matmul %10, %11, %cst_12 {dimension_numbers = #tpu.dot_dimension_numbers<[1], [0], [0], [1], [0, 0, 1, 1], [], []>} : vector<16x32xbf16>, vector<32x128xbf16>, vector<16x128xf32> -> vector<16x128xf32>
    %c0_13 = arith.constant 0 : index
    %c0_14 = arith.constant 0 : index
    %13 = vector.load %arg8[%c0_13, %c0_14] : memref<1x128xf32, #tpu.memory_space<vmem>>, vector<1x128xf32>
    %14 = vector.broadcast %13 : vector<1x128xf32> to vector<16x128xf32>
    %15 = arith.addf %12, %14 : vector<16x128xf32>
    %c0_15 = arith.constant 0 : index
    %c0_16 = arith.constant 0 : index
    %16 = vector.load %arg21[%c0_15, %c0_16] : memref<16x128xf32, #tpu.memory_space<vmem>>, vector<16x128xf32>
    tpu.vector_store %arg21[%c0_15, %c0_16], %15 {strides = array<i32>} : memref<16x128xf32, #tpu.memory_space<vmem>>, vector<16x128xf32>,
    %c0_17 = arith.constant 0 : index
    %c0_18 = arith.constant 0 : index
    %17 = vector.load %arg12[%c0_17, %c0_18] : memref<32x128xbf16, #tpu.memory_space<vmem>>, vector<32x128xbf16>
    %c0_19 = arith.constant 0 : index
    %c0_20 = arith.constant 0 : index
    %18 = vector.load %arg14[%c0_19, %c0_20] : memref<32x128xbf16, #tpu.memory_space<vmem>>, vector<32x128xbf16>
    %c0_21 = arith.constant 0 : index
    %c0_22 = arith.constant 0 : index
    %19 = vector.load %arg16[%c0_21, %c0_22] : memref<2x32xf32, #tpu.memory_space<vmem>>, vector<2x32xf32>
    %c0_23 = arith.constant 0 : index
    %c0_24 = arith.constant 0 : index
    %20 = vector.load %arg17[%c0_23, %c0_24] : memref<2x32xf32, #tpu.memory_space<vmem>>, vector<2x32xf32>
    %c0_25 = arith.constant 0 : index
    %c0_26 = arith.constant 0 : index
    %21 = vector.load %arg18[%c0_25, %c0_26] : memref<2x32xf32, #tpu.memory_space<vmem>>, vector<2x32xf32>
    %c0_27 = arith.constant 0 : index
    %c0_28 = arith.constant 0 : index
    %22 = vector.load %arg19[%c0_27, %c0_28] : memref<2x32xf32, #tpu.memory_space<vmem>>, vector<2x32xf32>
    %c0_29 = arith.constant 0 : index
    %c0_30 = arith.constant 0 : index
    %23 = vector.load %arg20[%c0_29, %c0_30] : memref<16x128xf32, #tpu.memory_space<vmem>>, vector<2x128xf32>
    %24 = arith.truncf %19 : vector<2x32xf32> to vector<2x32xbf16>
    %cst_31 = arith.constant dense<0.000000e+00> : vector<2x128xf32>
    %25 = tpu.matmul %24, %17, %cst_31 {dimension_numbers = #tpu.dot_dimension_numbers<[1], [0], [0], [1], [0, 0, 1, 1], [], []>} : vector<2x32xbf16>, vector<32x128xbf16>, vector<2x128xf32> -> vector<2x128xf32>
    %26 = arith.addf %23, %25 : vector<2x128xf32>
    %27 = vector.extract_strided_slice %26 {offsets = [0, 0], sizes = [2, 96], strides = [1, 1]} : vector<2x128xf32> to vector<2x96xf32>
    %28 = arith.negf %27 : vector<2x96xf32>
    %29 = math.exp %28 : vector<2x96xf32>
    %cst_32 = arith.constant 1.000000e+00 : f32
    %30 = vector.broadcast %cst_32 : f32 to vector<2x96xf32>
    %31 = arith.addf %30, %29 : vector<2x96xf32>
    %32 = arith.divf %30, %31 : vector<2x96xf32>
    %33 = vector.extract_strided_slice %26 {offsets = [0, 96], sizes = [2, 32], strides = [1, 1]} : vector<2x128xf32> to vector<2x32xf32>
    %34 = math.tanh %33 : vector<2x32xf32>
    %35 = vector.extract_strided_slice %32 {offsets = [0, 32], sizes = [2, 32], strides = [1, 1]} : vector<2x96xf32> to vector<2x32xf32>
    %36 = arith.mulf %35, %20 : vector<2x32xf32>
    %37 = vector.extract_strided_slice %32 {offsets = [0, 0], sizes = [2, 32], strides = [1, 1]} : vector<2x96xf32> to vector<2x32xf32>
    %38 = arith.mulf %37, %34 : vector<2x32xf32>
    %39 = arith.addf %36, %38 : vector<2x32xf32>
    %40 = vector.extract_strided_slice %32 {offsets = [0, 64], sizes = [2, 32], strides = [1, 1]} : vector<2x96xf32> to vector<2x32xf32>
    %41 = math.tanh %39 : vector<2x32xf32>
    %42 = arith.mulf %40, %41 : vector<2x32xf32>
    %c0_33 = arith.constant 0 : index
    %c0_34 = arith.constant 0 : index
    %43 = vector.load %arg22[%c0_33, %c0_34] : memref<16x32xf32, #tpu.memory_space<vmem>>, vector<2x32xf32>
    tpu.vector_store %arg22[%c0_33, %c0_34], %42 {strides = array<i32>} : memref<16x32xf32, #tpu.memory_space<vmem>>, vector<2x32xf32>,
    %c14 = arith.constant 14 : index
    %c0_35 = arith.constant 0 : index
    %44 = vector.load %arg21[%c14, %c0_35] : memref<16x128xf32, #tpu.memory_space<vmem>>, vector<2x128xf32>
    %45 = arith.truncf %21 : vector<2x32xf32> to vector<2x32xbf16>
    %cst_36 = arith.constant dense<0.000000e+00> : vector<2x128xf32>
    %46 = tpu.matmul %45, %18, %cst_36 {dimension_numbers = #tpu.dot_dimension_numbers<[1], [0], [0], [1], [0, 0, 1, 1], [], []>} : vector<2x32xbf16>, vector<32x128xbf16>, vector<2x128xf32> -> vector<2x128xf32>
    %47 = arith.addf %44, %46 : vector<2x128xf32>
    %48 = vector.extract_strided_slice %47 {offsets = [0, 0], sizes = [2, 96], strides = [1, 1]} : vector<2x128xf32> to vector<2x96xf32>
    %49 = arith.negf %48 : vector<2x96xf32>
    %50 = math.exp %49 : vector<2x96xf32>
    %cst_37 = arith.constant 1.000000e+00 : f32
    %51 = vector.broadcast %cst_37 : f32 to vector<2x96xf32>
    %52 = arith.addf %51, %50 : vector<2x96xf32>
    %53 = arith.divf %51, %52 : vector<2x96xf32>
    %54 = vector.extract_strided_slice %47 {offsets = [0, 96], sizes = [2, 32], strides = [1, 1]} : vector<2x128xf32> to vector<2x32xf32>
    %55 = math.tanh %54 : vector<2x32xf32>
    %56 = vector.extract_strided_slice %53 {offsets = [0, 32], sizes = [2, 32], strides = [1, 1]} : vector<2x96xf32> to vector<2x32xf32>
    %57 = arith.mulf %56, %22 : vector<2x32xf32>
    %58 = vector.extract_strided_slice %53 {offsets = [0, 0], sizes = [2, 32], strides = [1, 1]} : vector<2x96xf32> to vector<2x32xf32>
    %59 = arith.mulf %58, %55 : vector<2x32xf32>
    %60 = arith.addf %57, %59 : vector<2x32xf32>
    %61 = vector.extract_strided_slice %53 {offsets = [0, 64], sizes = [2, 32], strides = [1, 1]} : vector<2x96xf32> to vector<2x32xf32>
    %62 = math.tanh %60 : vector<2x32xf32>
    %63 = arith.mulf %61, %62 : vector<2x32xf32>
    %c14_38 = arith.constant 14 : index
    %c0_39 = arith.constant 0 : index
    %64 = vector.load %arg23[%c14_38, %c0_39] : memref<16x32xf32, #tpu.memory_space<vmem>>, vector<2x32xf32>
    tpu.vector_store %arg23[%c14_38, %c0_39], %63 {strides = array<i32>} : memref<16x32xf32, #tpu.memory_space<vmem>>, vector<2x32xf32>,
    %c2 = arith.constant 2 : index
    %c0_40 = arith.constant 0 : index
    %65 = vector.load %arg20[%c2, %c0_40] : memref<16x128xf32, #tpu.memory_space<vmem>>, vector<2x128xf32>
    %66 = arith.truncf %42 : vector<2x32xf32> to vector<2x32xbf16>
    %cst_41 = arith.constant dense<0.000000e+00> : vector<2x128xf32>
    %67 = tpu.matmul %66, %17, %cst_41 {dimension_numbers = #tpu.dot_dimension_numbers<[1], [0], [0], [1], [0, 0, 1, 1], [], []>} : vector<2x32xbf16>, vector<32x128xbf16>, vector<2x128xf32> -> vector<2x128xf32>
    %68 = arith.addf %65, %67 : vector<2x128xf32>
    %69 = vector.extract_strided_slice %68 {offsets = [0, 0], sizes = [2, 96], strides = [1, 1]} : vector<2x128xf32> to vector<2x96xf32>
    %70 = arith.negf %69 : vector<2x96xf32>
    %71 = math.exp %70 : vector<2x96xf32>
    %cst_42 = arith.constant 1.000000e+00 : f32
    %72 = vector.broadcast %cst_42 : f32 to vector<2x96xf32>
    %73 = arith.addf %72, %71 : vector<2x96xf32>
    %74 = arith.divf %72, %73 : vector<2x96xf32>
    %75 = vector.extract_strided_slice %68 {offsets = [0, 96], sizes = [2, 32], strides = [1, 1]} : vector<2x128xf32> to vector<2x32xf32>
    %76 = math.tanh %75 : vector<2x32xf32>
    %77 = vector.extract_strided_slice %74 {offsets = [0, 32], sizes = [2, 32], strides = [1, 1]} : vector<2x96xf32> to vector<2x32xf32>
    %78 = arith.mulf %77, %39 : vector<2x32xf32>
    %79 = vector.extract_strided_slice %74 {offsets = [0, 0], sizes = [2, 32], strides = [1, 1]} : vector<2x96xf32> to vector<2x32xf32>
    %80 = arith.mulf %79, %76 : vector<2x32xf32>
    %81 = arith.addf %78, %80 : vector<2x32xf32>
    %82 = vector.extract_strided_slice %74 {offsets = [0, 64], sizes = [2, 32], strides = [1, 1]} : vector<2x96xf32> to vector<2x32xf32>
    %83 = math.tanh %81 : vector<2x32xf32>
    %84 = arith.mulf %82, %83 : vector<2x32xf32>
    %c2_43 = arith.constant 2 : index
    %c0_44 = arith.constant 0 : index
    %85 = vector.load %arg22[%c2_43, %c0_44] : memref<16x32xf32, #tpu.memory_space<vmem>>, vector<2x32xf32>
    tpu.vector_store %arg22[%c2_43, %c0_44], %84 {strides = array<i32>} : memref<16x32xf32, #tpu.memory_space<vmem>>, vector<2x32xf32>,
    %c12 = arith.constant 12 : index
    %c0_45 = arith.constant 0 : index
    %86 = vector.load %arg21[%c12, %c0_45] : memref<16x128xf32, #tpu.memory_space<vmem>>, vector<2x128xf32>
    %87 = arith.truncf %63 : vector<2x32xf32> to vector<2x32xbf16>
    %cst_46 = arith.constant dense<0.000000e+00> : vector<2x128xf32>
    %88 = tpu.matmul %87, %18, %cst_46 {dimension_numbers = #tpu.dot_dimension_numbers<[1], [0], [0], [1], [0, 0, 1, 1], [], []>} : vector<2x32xbf16>, vector<32x128xbf16>, vector<2x128xf32> -> vector<2x128xf32>
    %89 = arith.addf %86, %88 : vector<2x128xf32>
    %90 = vector.extract_strided_slice %89 {offsets = [0, 0], sizes = [2, 96], strides = [1, 1]} : vector<2x128xf32> to vector<2x96xf32>
    %91 = arith.negf %90 : vector<2x96xf32>
    %92 = math.exp %91 : vector<2x96xf32>
    %cst_47 = arith.constant 1.000000e+00 : f32
    %93 = vector.broadcast %cst_47 : f32 to vector<2x96xf32>
    %94 = arith.addf %93, %92 : vector<2x96xf32>
    %95 = arith.divf %93, %94 : vector<2x96xf32>
    %96 = vector.extract_strided_slice %89 {offsets = [0, 96], sizes = [2, 32], strides = [1, 1]} : vector<2x128xf32> to vector<2x32xf32>
    %97 = math.tanh %96 : vector<2x32xf32>
    %98 = vector.extract_strided_slice %95 {offsets = [0, 32], sizes = [2, 32], strides = [1, 1]} : vector<2x96xf32> to vector<2x32xf32>
    %99 = arith.mulf %98, %60 : vector<2x32xf32>
    %100 = vector.extract_strided_slice %95 {offsets = [0, 0], sizes = [2, 32], strides = [1, 1]} : vector<2x96xf32> to vector<2x32xf32>
    %101 = arith.mulf %100, %97 : vector<2x32xf32>
    %102 = arith.addf %99, %101 : vector<2x32xf32>
    %103 = vector.extract_strided_slice %95 {offsets = [0, 64], sizes = [2, 32], strides = [1, 1]} : vector<2x96xf32> to vector<2x32xf32>
    %104 = math.tanh %102 : vector<2x32xf32>
    %105 = arith.mulf %103, %104 : vector<2x32xf32>
    %c12_48 = arith.constant 12 : index
    %c0_49 = arith.constant 0 : index
    %106 = vector.load %arg23[%c12_48, %c0_49] : memref<16x32xf32, #tpu.memory_space<vmem>>, vector<2x32xf32>
    tpu.vector_store %arg23[%c12_48, %c0_49], %105 {strides = array<i32>} : memref<16x32xf32, #tpu.memory_space<vmem>>, vector<2x32xf32>,
    %c4 = arith.constant 4 : index
    %c0_50 = arith.constant 0 : index
    %107 = vector.load %arg20[%c4, %c0_50] : memref<16x128xf32, #tpu.memory_space<vmem>>, vector<2x128xf32>
    %108 = arith.truncf %84 : vector<2x32xf32> to vector<2x32xbf16>
    %cst_51 = arith.constant dense<0.000000e+00> : vector<2x128xf32>
    %109 = tpu.matmul %108, %17, %cst_51 {dimension_numbers = #tpu.dot_dimension_numbers<[1], [0], [0], [1], [0, 0, 1, 1], [], []>} : vector<2x32xbf16>, vector<32x128xbf16>, vector<2x128xf32> -> vector<2x128xf32>
    %110 = arith.addf %107, %109 : vector<2x128xf32>
    %111 = vector.extract_strided_slice %110 {offsets = [0, 0], sizes = [2, 96], strides = [1, 1]} : vector<2x128xf32> to vector<2x96xf32>
    %112 = arith.negf %111 : vector<2x96xf32>
    %113 = math.exp %112 : vector<2x96xf32>
    %cst_52 = arith.constant 1.000000e+00 : f32
    %114 = vector.broadcast %cst_52 : f32 to vector<2x96xf32>
    %115 = arith.addf %114, %113 : vector<2x96xf32>
    %116 = arith.divf %114, %115 : vector<2x96xf32>
    %117 = vector.extract_strided_slice %110 {offsets = [0, 96], sizes = [2, 32], strides = [1, 1]} : vector<2x128xf32> to vector<2x32xf32>
    %118 = math.tanh %117 : vector<2x32xf32>
    %119 = vector.extract_strided_slice %116 {offsets = [0, 32], sizes = [2, 32], strides = [1, 1]} : vector<2x96xf32> to vector<2x32xf32>
    %120 = arith.mulf %119, %81 : vector<2x32xf32>
    %121 = vector.extract_strided_slice %116 {offsets = [0, 0], sizes = [2, 32], strides = [1, 1]} : vector<2x96xf32> to vector<2x32xf32>
    %122 = arith.mulf %121, %118 : vector<2x32xf32>
    %123 = arith.addf %120, %122 : vector<2x32xf32>
    %124 = vector.extract_strided_slice %116 {offsets = [0, 64], sizes = [2, 32], strides = [1, 1]} : vector<2x96xf32> to vector<2x32xf32>
    %125 = math.tanh %123 : vector<2x32xf32>
    %126 = arith.mulf %124, %125 : vector<2x32xf32>
    %c4_53 = arith.constant 4 : index
    %c0_54 = arith.constant 0 : index
    %127 = vector.load %arg22[%c4_53, %c0_54] : memref<16x32xf32, #tpu.memory_space<vmem>>, vector<2x32xf32>
    tpu.vector_store %arg22[%c4_53, %c0_54], %126 {strides = array<i32>} : memref<16x32xf32, #tpu.memory_space<vmem>>, vector<2x32xf32>,
    %c10 = arith.constant 10 : index
    %c0_55 = arith.constant 0 : index
    %128 = vector.load %arg21[%c10, %c0_55] : memref<16x128xf32, #tpu.memory_space<vmem>>, vector<2x128xf32>
    %129 = arith.truncf %105 : vector<2x32xf32> to vector<2x32xbf16>
    %cst_56 = arith.constant dense<0.000000e+00> : vector<2x128xf32>
    %130 = tpu.matmul %129, %18, %cst_56 {dimension_numbers = #tpu.dot_dimension_numbers<[1], [0], [0], [1], [0, 0, 1, 1], [], []>} : vector<2x32xbf16>, vector<32x128xbf16>, vector<2x128xf32> -> vector<2x128xf32>
    %131 = arith.addf %128, %130 : vector<2x128xf32>
    %132 = vector.extract_strided_slice %131 {offsets = [0, 0], sizes = [2, 96], strides = [1, 1]} : vector<2x128xf32> to vector<2x96xf32>
    %133 = arith.negf %132 : vector<2x96xf32>
    %134 = math.exp %133 : vector<2x96xf32>
    %cst_57 = arith.constant 1.000000e+00 : f32
    %135 = vector.broadcast %cst_57 : f32 to vector<2x96xf32>
    %136 = arith.addf %135, %134 : vector<2x96xf32>
    %137 = arith.divf %135, %136 : vector<2x96xf32>
    %138 = vector.extract_strided_slice %131 {offsets = [0, 96], sizes = [2, 32], strides = [1, 1]} : vector<2x128xf32> to vector<2x32xf32>
    %139 = math.tanh %138 : vector<2x32xf32>
    %140 = vector.extract_strided_slice %137 {offsets = [0, 32], sizes = [2, 32], strides = [1, 1]} : vector<2x96xf32> to vector<2x32xf32>
    %141 = arith.mulf %140, %102 : vector<2x32xf32>
    %142 = vector.extract_strided_slice %137 {offsets = [0, 0], sizes = [2, 32], strides = [1, 1]} : vector<2x96xf32> to vector<2x32xf32>
    %143 = arith.mulf %142, %139 : vector<2x32xf32>
    %144 = arith.addf %141, %143 : vector<2x32xf32>
    %145 = vector.extract_strided_slice %137 {offsets = [0, 64], sizes = [2, 32], strides = [1, 1]} : vector<2x96xf32> to vector<2x32xf32>
    %146 = math.tanh %144 : vector<2x32xf32>
    %147 = arith.mulf %145, %146 : vector<2x32xf32>
    %c10_58 = arith.constant 10 : index
    %c0_59 = arith.constant 0 : index
    %148 = vector.load %arg23[%c10_58, %c0_59] : memref<16x32xf32, #tpu.memory_space<vmem>>, vector<2x32xf32>
    tpu.vector_store %arg23[%c10_58, %c0_59], %147 {strides = array<i32>} : memref<16x32xf32, #tpu.memory_space<vmem>>, vector<2x32xf32>,
    %c6 = arith.constant 6 : index
    %c0_60 = arith.constant 0 : index
    %149 = vector.load %arg20[%c6, %c0_60] : memref<16x128xf32, #tpu.memory_space<vmem>>, vector<2x128xf32>
    %150 = arith.truncf %126 : vector<2x32xf32> to vector<2x32xbf16>
    %cst_61 = arith.constant dense<0.000000e+00> : vector<2x128xf32>
    %151 = tpu.matmul %150, %17, %cst_61 {dimension_numbers = #tpu.dot_dimension_numbers<[1], [0], [0], [1], [0, 0, 1, 1], [], []>} : vector<2x32xbf16>, vector<32x128xbf16>, vector<2x128xf32> -> vector<2x128xf32>
    %152 = arith.addf %149, %151 : vector<2x128xf32>
    %153 = vector.extract_strided_slice %152 {offsets = [0, 0], sizes = [2, 96], strides = [1, 1]} : vector<2x128xf32> to vector<2x96xf32>
    %154 = arith.negf %153 : vector<2x96xf32>
    %155 = math.exp %154 : vector<2x96xf32>
    %cst_62 = arith.constant 1.000000e+00 : f32
    %156 = vector.broadcast %cst_62 : f32 to vector<2x96xf32>
    %157 = arith.addf %156, %155 : vector<2x96xf32>
    %158 = arith.divf %156, %157 : vector<2x96xf32>
    %159 = vector.extract_strided_slice %152 {offsets = [0, 96], sizes = [2, 32], strides = [1, 1]} : vector<2x128xf32> to vector<2x32xf32>
    %160 = math.tanh %159 : vector<2x32xf32>
    %161 = vector.extract_strided_slice %158 {offsets = [0, 32], sizes = [2, 32], strides = [1, 1]} : vector<2x96xf32> to vector<2x32xf32>
    %162 = arith.mulf %161, %123 : vector<2x32xf32>
    %163 = vector.extract_strided_slice %158 {offsets = [0, 0], sizes = [2, 32], strides = [1, 1]} : vector<2x96xf32> to vector<2x32xf32>
    %164 = arith.mulf %163, %160 : vector<2x32xf32>
    %165 = arith.addf %162, %164 : vector<2x32xf32>
    %166 = vector.extract_strided_slice %158 {offsets = [0, 64], sizes = [2, 32], strides = [1, 1]} : vector<2x96xf32> to vector<2x32xf32>
    %167 = math.tanh %165 : vector<2x32xf32>
    %168 = arith.mulf %166, %167 : vector<2x32xf32>
    %c6_63 = arith.constant 6 : index
    %c0_64 = arith.constant 0 : index
    %169 = vector.load %arg22[%c6_63, %c0_64] : memref<16x32xf32, #tpu.memory_space<vmem>>, vector<2x32xf32>
    tpu.vector_store %arg22[%c6_63, %c0_64], %168 {strides = array<i32>} : memref<16x32xf32, #tpu.memory_space<vmem>>, vector<2x32xf32>,
    %c8 = arith.constant 8 : index
    %c0_65 = arith.constant 0 : index
    %170 = vector.load %arg21[%c8, %c0_65] : memref<16x128xf32, #tpu.memory_space<vmem>>, vector<2x128xf32>
    %171 = arith.truncf %147 : vector<2x32xf32> to vector<2x32xbf16>
    %cst_66 = arith.constant dense<0.000000e+00> : vector<2x128xf32>
    %172 = tpu.matmul %171, %18, %cst_66 {dimension_numbers = #tpu.dot_dimension_numbers<[1], [0], [0], [1], [0, 0, 1, 1], [], []>} : vector<2x32xbf16>, vector<32x128xbf16>, vector<2x128xf32> -> vector<2x128xf32>
    %173 = arith.addf %170, %172 : vector<2x128xf32>
    %174 = vector.extract_strided_slice %173 {offsets = [0, 0], sizes = [2, 96], strides = [1, 1]} : vector<2x128xf32> to vector<2x96xf32>
    %175 = arith.negf %174 : vector<2x96xf32>
    %176 = math.exp %175 : vector<2x96xf32>
    %cst_67 = arith.constant 1.000000e+00 : f32
    %177 = vector.broadcast %cst_67 : f32 to vector<2x96xf32>
    %178 = arith.addf %177, %176 : vector<2x96xf32>
    %179 = arith.divf %177, %178 : vector<2x96xf32>
    %180 = vector.extract_strided_slice %173 {offsets = [0, 96], sizes = [2, 32], strides = [1, 1]} : vector<2x128xf32> to vector<2x32xf32>
    %181 = math.tanh %180 : vector<2x32xf32>
    %182 = vector.extract_strided_slice %179 {offsets = [0, 32], sizes = [2, 32], strides = [1, 1]} : vector<2x96xf32> to vector<2x32xf32>
    %183 = arith.mulf %182, %144 : vector<2x32xf32>
    %184 = vector.extract_strided_slice %179 {offsets = [0, 0], sizes = [2, 32], strides = [1, 1]} : vector<2x96xf32> to vector<2x32xf32>
    %185 = arith.mulf %184, %181 : vector<2x32xf32>
    %186 = arith.addf %183, %185 : vector<2x32xf32>
    %187 = vector.extract_strided_slice %179 {offsets = [0, 64], sizes = [2, 32], strides = [1, 1]} : vector<2x96xf32> to vector<2x32xf32>
    %188 = math.tanh %186 : vector<2x32xf32>
    %189 = arith.mulf %187, %188 : vector<2x32xf32>
    %c8_68 = arith.constant 8 : index
    %c0_69 = arith.constant 0 : index
    %190 = vector.load %arg23[%c8_68, %c0_69] : memref<16x32xf32, #tpu.memory_space<vmem>>, vector<2x32xf32>
    tpu.vector_store %arg23[%c8_68, %c0_69], %189 {strides = array<i32>} : memref<16x32xf32, #tpu.memory_space<vmem>>, vector<2x32xf32>,
    %c8_70 = arith.constant 8 : index
    %c0_71 = arith.constant 0 : index
    %191 = vector.load %arg20[%c8_70, %c0_71] : memref<16x128xf32, #tpu.memory_space<vmem>>, vector<2x128xf32>
    %192 = arith.truncf %168 : vector<2x32xf32> to vector<2x32xbf16>
    %cst_72 = arith.constant dense<0.000000e+00> : vector<2x128xf32>
    %193 = tpu.matmul %192, %17, %cst_72 {dimension_numbers = #tpu.dot_dimension_numbers<[1], [0], [0], [1], [0, 0, 1, 1], [], []>} : vector<2x32xbf16>, vector<32x128xbf16>, vector<2x128xf32> -> vector<2x128xf32>
    %194 = arith.addf %191, %193 : vector<2x128xf32>
    %195 = vector.extract_strided_slice %194 {offsets = [0, 0], sizes = [2, 96], strides = [1, 1]} : vector<2x128xf32> to vector<2x96xf32>
    %196 = arith.negf %195 : vector<2x96xf32>
    %197 = math.exp %196 : vector<2x96xf32>
    %cst_73 = arith.constant 1.000000e+00 : f32
    %198 = vector.broadcast %cst_73 : f32 to vector<2x96xf32>
    %199 = arith.addf %198, %197 : vector<2x96xf32>
    %200 = arith.divf %198, %199 : vector<2x96xf32>
    %201 = vector.extract_strided_slice %194 {offsets = [0, 96], sizes = [2, 32], strides = [1, 1]} : vector<2x128xf32> to vector<2x32xf32>
    %202 = math.tanh %201 : vector<2x32xf32>
    %203 = vector.extract_strided_slice %200 {offsets = [0, 32], sizes = [2, 32], strides = [1, 1]} : vector<2x96xf32> to vector<2x32xf32>
    %204 = arith.mulf %203, %165 : vector<2x32xf32>
    %205 = vector.extract_strided_slice %200 {offsets = [0, 0], sizes = [2, 32], strides = [1, 1]} : vector<2x96xf32> to vector<2x32xf32>
    %206 = arith.mulf %205, %202 : vector<2x32xf32>
    %207 = arith.addf %204, %206 : vector<2x32xf32>
    %208 = vector.extract_strided_slice %200 {offsets = [0, 64], sizes = [2, 32], strides = [1, 1]} : vector<2x96xf32> to vector<2x32xf32>
    %209 = math.tanh %207 : vector<2x32xf32>
    %210 = arith.mulf %208, %209 : vector<2x32xf32>
    %c8_74 = arith.constant 8 : index
    %c0_75 = arith.constant 0 : index
    %211 = vector.load %arg22[%c8_74, %c0_75] : memref<16x32xf32, #tpu.memory_space<vmem>>, vector<2x32xf32>
    tpu.vector_store %arg22[%c8_74, %c0_75], %210 {strides = array<i32>} : memref<16x32xf32, #tpu.memory_space<vmem>>, vector<2x32xf32>,
    %c6_76 = arith.constant 6 : index
    %c0_77 = arith.constant 0 : index
    %212 = vector.load %arg21[%c6_76, %c0_77] : memref<16x128xf32, #tpu.memory_space<vmem>>, vector<2x128xf32>
    %213 = arith.truncf %189 : vector<2x32xf32> to vector<2x32xbf16>
    %cst_78 = arith.constant dense<0.000000e+00> : vector<2x128xf32>
    %214 = tpu.matmul %213, %18, %cst_78 {dimension_numbers = #tpu.dot_dimension_numbers<[1], [0], [0], [1], [0, 0, 1, 1], [], []>} : vector<2x32xbf16>, vector<32x128xbf16>, vector<2x128xf32> -> vector<2x128xf32>
    %215 = arith.addf %212, %214 : vector<2x128xf32>
    %216 = vector.extract_strided_slice %215 {offsets = [0, 0], sizes = [2, 96], strides = [1, 1]} : vector<2x128xf32> to vector<2x96xf32>
    %217 = arith.negf %216 : vector<2x96xf32>
    %218 = math.exp %217 : vector<2x96xf32>
    %cst_79 = arith.constant 1.000000e+00 : f32
    %219 = vector.broadcast %cst_79 : f32 to vector<2x96xf32>
    %220 = arith.addf %219, %218 : vector<2x96xf32>
    %221 = arith.divf %219, %220 : vector<2x96xf32>
    %222 = vector.extract_strided_slice %215 {offsets = [0, 96], sizes = [2, 32], strides = [1, 1]} : vector<2x128xf32> to vector<2x32xf32>
    %223 = math.tanh %222 : vector<2x32xf32>
    %224 = vector.extract_strided_slice %221 {offsets = [0, 32], sizes = [2, 32], strides = [1, 1]} : vector<2x96xf32> to vector<2x32xf32>
    %225 = arith.mulf %224, %186 : vector<2x32xf32>
    %226 = vector.extract_strided_slice %221 {offsets = [0, 0], sizes = [2, 32], strides = [1, 1]} : vector<2x96xf32> to vector<2x32xf32>
    %227 = arith.mulf %226, %223 : vector<2x32xf32>
    %228 = arith.addf %225, %227 : vector<2x32xf32>
    %229 = vector.extract_strided_slice %221 {offsets = [0, 64], sizes = [2, 32], strides = [1, 1]} : vector<2x96xf32> to vector<2x32xf32>
    %230 = math.tanh %228 : vector<2x32xf32>
    %231 = arith.mulf %229, %230 : vector<2x32xf32>
    %c6_80 = arith.constant 6 : index
    %c0_81 = arith.constant 0 : index
    %232 = vector.load %arg23[%c6_80, %c0_81] : memref<16x32xf32, #tpu.memory_space<vmem>>, vector<2x32xf32>
    tpu.vector_store %arg23[%c6_80, %c0_81], %231 {strides = array<i32>} : memref<16x32xf32, #tpu.memory_space<vmem>>, vector<2x32xf32>,
    %c10_82 = arith.constant 10 : index
    %c0_83 = arith.constant 0 : index
    %233 = vector.load %arg20[%c10_82, %c0_83] : memref<16x128xf32, #tpu.memory_space<vmem>>, vector<2x128xf32>
    %234 = arith.truncf %210 : vector<2x32xf32> to vector<2x32xbf16>
    %cst_84 = arith.constant dense<0.000000e+00> : vector<2x128xf32>
    %235 = tpu.matmul %234, %17, %cst_84 {dimension_numbers = #tpu.dot_dimension_numbers<[1], [0], [0], [1], [0, 0, 1, 1], [], []>} : vector<2x32xbf16>, vector<32x128xbf16>, vector<2x128xf32> -> vector<2x128xf32>
    %236 = arith.addf %233, %235 : vector<2x128xf32>
    %237 = vector.extract_strided_slice %236 {offsets = [0, 0], sizes = [2, 96], strides = [1, 1]} : vector<2x128xf32> to vector<2x96xf32>
    %238 = arith.negf %237 : vector<2x96xf32>
    %239 = math.exp %238 : vector<2x96xf32>
    %cst_85 = arith.constant 1.000000e+00 : f32
    %240 = vector.broadcast %cst_85 : f32 to vector<2x96xf32>
    %241 = arith.addf %240, %239 : vector<2x96xf32>
    %242 = arith.divf %240, %241 : vector<2x96xf32>
    %243 = vector.extract_strided_slice %236 {offsets = [0, 96], sizes = [2, 32], strides = [1, 1]} : vector<2x128xf32> to vector<2x32xf32>
    %244 = math.tanh %243 : vector<2x32xf32>
    %245 = vector.extract_strided_slice %242 {offsets = [0, 32], sizes = [2, 32], strides = [1, 1]} : vector<2x96xf32> to vector<2x32xf32>
    %246 = arith.mulf %245, %207 : vector<2x32xf32>
    %247 = vector.extract_strided_slice %242 {offsets = [0, 0], sizes = [2, 32], strides = [1, 1]} : vector<2x96xf32> to vector<2x32xf32>
    %248 = arith.mulf %247, %244 : vector<2x32xf32>
    %249 = arith.addf %246, %248 : vector<2x32xf32>
    %250 = vector.extract_strided_slice %242 {offsets = [0, 64], sizes = [2, 32], strides = [1, 1]} : vector<2x96xf32> to vector<2x32xf32>
    %251 = math.tanh %249 : vector<2x32xf32>
    %252 = arith.mulf %250, %251 : vector<2x32xf32>
    %c10_86 = arith.constant 10 : index
    %c0_87 = arith.constant 0 : index
    %253 = vector.load %arg22[%c10_86, %c0_87] : memref<16x32xf32, #tpu.memory_space<vmem>>, vector<2x32xf32>
    tpu.vector_store %arg22[%c10_86, %c0_87], %252 {strides = array<i32>} : memref<16x32xf32, #tpu.memory_space<vmem>>, vector<2x32xf32>,
    %c4_88 = arith.constant 4 : index
    %c0_89 = arith.constant 0 : index
    %254 = vector.load %arg21[%c4_88, %c0_89] : memref<16x128xf32, #tpu.memory_space<vmem>>, vector<2x128xf32>
    %255 = arith.truncf %231 : vector<2x32xf32> to vector<2x32xbf16>
    %cst_90 = arith.constant dense<0.000000e+00> : vector<2x128xf32>
    %256 = tpu.matmul %255, %18, %cst_90 {dimension_numbers = #tpu.dot_dimension_numbers<[1], [0], [0], [1], [0, 0, 1, 1], [], []>} : vector<2x32xbf16>, vector<32x128xbf16>, vector<2x128xf32> -> vector<2x128xf32>
    %257 = arith.addf %254, %256 : vector<2x128xf32>
    %258 = vector.extract_strided_slice %257 {offsets = [0, 0], sizes = [2, 96], strides = [1, 1]} : vector<2x128xf32> to vector<2x96xf32>
    %259 = arith.negf %258 : vector<2x96xf32>
    %260 = math.exp %259 : vector<2x96xf32>
    %cst_91 = arith.constant 1.000000e+00 : f32
    %261 = vector.broadcast %cst_91 : f32 to vector<2x96xf32>
    %262 = arith.addf %261, %260 : vector<2x96xf32>
    %263 = arith.divf %261, %262 : vector<2x96xf32>
    %264 = vector.extract_strided_slice %257 {offsets = [0, 96], sizes = [2, 32], strides = [1, 1]} : vector<2x128xf32> to vector<2x32xf32>
    %265 = math.tanh %264 : vector<2x32xf32>
    %266 = vector.extract_strided_slice %263 {offsets = [0, 32], sizes = [2, 32], strides = [1, 1]} : vector<2x96xf32> to vector<2x32xf32>
    %267 = arith.mulf %266, %228 : vector<2x32xf32>
    %268 = vector.extract_strided_slice %263 {offsets = [0, 0], sizes = [2, 32], strides = [1, 1]} : vector<2x96xf32> to vector<2x32xf32>
    %269 = arith.mulf %268, %265 : vector<2x32xf32>
    %270 = arith.addf %267, %269 : vector<2x32xf32>
    %271 = vector.extract_strided_slice %263 {offsets = [0, 64], sizes = [2, 32], strides = [1, 1]} : vector<2x96xf32> to vector<2x32xf32>
    %272 = math.tanh %270 : vector<2x32xf32>
    %273 = arith.mulf %271, %272 : vector<2x32xf32>
    %c4_92 = arith.constant 4 : index
    %c0_93 = arith.constant 0 : index
    %274 = vector.load %arg23[%c4_92, %c0_93] : memref<16x32xf32, #tpu.memory_space<vmem>>, vector<2x32xf32>
    tpu.vector_store %arg23[%c4_92, %c0_93], %273 {strides = array<i32>} : memref<16x32xf32, #tpu.memory_space<vmem>>, vector<2x32xf32>,
    %c12_94 = arith.constant 12 : index
    %c0_95 = arith.constant 0 : index
    %275 = vector.load %arg20[%c12_94, %c0_95] : memref<16x128xf32, #tpu.memory_space<vmem>>, vector<2x128xf32>
    %276 = arith.truncf %252 : vector<2x32xf32> to vector<2x32xbf16>
    %cst_96 = arith.constant dense<0.000000e+00> : vector<2x128xf32>
    %277 = tpu.matmul %276, %17, %cst_96 {dimension_numbers = #tpu.dot_dimension_numbers<[1], [0], [0], [1], [0, 0, 1, 1], [], []>} : vector<2x32xbf16>, vector<32x128xbf16>, vector<2x128xf32> -> vector<2x128xf32>
    %278 = arith.addf %275, %277 : vector<2x128xf32>
    %279 = vector.extract_strided_slice %278 {offsets = [0, 0], sizes = [2, 96], strides = [1, 1]} : vector<2x128xf32> to vector<2x96xf32>
    %280 = arith.negf %279 : vector<2x96xf32>
    %281 = math.exp %280 : vector<2x96xf32>
    %cst_97 = arith.constant 1.000000e+00 : f32
    %282 = vector.broadcast %cst_97 : f32 to vector<2x96xf32>
    %283 = arith.addf %282, %281 : vector<2x96xf32>
    %284 = arith.divf %282, %283 : vector<2x96xf32>
    %285 = vector.extract_strided_slice %278 {offsets = [0, 96], sizes = [2, 32], strides = [1, 1]} : vector<2x128xf32> to vector<2x32xf32>
    %286 = math.tanh %285 : vector<2x32xf32>
    %287 = vector.extract_strided_slice %284 {offsets = [0, 32], sizes = [2, 32], strides = [1, 1]} : vector<2x96xf32> to vector<2x32xf32>
    %288 = arith.mulf %287, %249 : vector<2x32xf32>
    %289 = vector.extract_strided_slice %284 {offsets = [0, 0], sizes = [2, 32], strides = [1, 1]} : vector<2x96xf32> to vector<2x32xf32>
    %290 = arith.mulf %289, %286 : vector<2x32xf32>
    %291 = arith.addf %288, %290 : vector<2x32xf32>
    %292 = vector.extract_strided_slice %284 {offsets = [0, 64], sizes = [2, 32], strides = [1, 1]} : vector<2x96xf32> to vector<2x32xf32>
    %293 = math.tanh %291 : vector<2x32xf32>
    %294 = arith.mulf %292, %293 : vector<2x32xf32>
    %c12_98 = arith.constant 12 : index
    %c0_99 = arith.constant 0 : index
    %295 = vector.load %arg22[%c12_98, %c0_99] : memref<16x32xf32, #tpu.memory_space<vmem>>, vector<2x32xf32>
    tpu.vector_store %arg22[%c12_98, %c0_99], %294 {strides = array<i32>} : memref<16x32xf32, #tpu.memory_space<vmem>>, vector<2x32xf32>,
    %c2_100 = arith.constant 2 : index
    %c0_101 = arith.constant 0 : index
    %296 = vector.load %arg21[%c2_100, %c0_101] : memref<16x128xf32, #tpu.memory_space<vmem>>, vector<2x128xf32>
    %297 = arith.truncf %273 : vector<2x32xf32> to vector<2x32xbf16>
    %cst_102 = arith.constant dense<0.000000e+00> : vector<2x128xf32>
    %298 = tpu.matmul %297, %18, %cst_102 {dimension_numbers = #tpu.dot_dimension_numbers<[1], [0], [0], [1], [0, 0, 1, 1], [], []>} : vector<2x32xbf16>, vector<32x128xbf16>, vector<2x128xf32> -> vector<2x128xf32>
    %299 = arith.addf %296, %298 : vector<2x128xf32>
    %300 = vector.extract_strided_slice %299 {offsets = [0, 0], sizes = [2, 96], strides = [1, 1]} : vector<2x128xf32> to vector<2x96xf32>
    %301 = arith.negf %300 : vector<2x96xf32>
    %302 = math.exp %301 : vector<2x96xf32>
    %cst_103 = arith.constant 1.000000e+00 : f32
    %303 = vector.broadcast %cst_103 : f32 to vector<2x96xf32>
    %304 = arith.addf %303, %302 : vector<2x96xf32>
    %305 = arith.divf %303, %304 : vector<2x96xf32>
    %306 = vector.extract_strided_slice %299 {offsets = [0, 96], sizes = [2, 32], strides = [1, 1]} : vector<2x128xf32> to vector<2x32xf32>
    %307 = math.tanh %306 : vector<2x32xf32>
    %308 = vector.extract_strided_slice %305 {offsets = [0, 32], sizes = [2, 32], strides = [1, 1]} : vector<2x96xf32> to vector<2x32xf32>
    %309 = arith.mulf %308, %270 : vector<2x32xf32>
    %310 = vector.extract_strided_slice %305 {offsets = [0, 0], sizes = [2, 32], strides = [1, 1]} : vector<2x96xf32> to vector<2x32xf32>
    %311 = arith.mulf %310, %307 : vector<2x32xf32>
    %312 = arith.addf %309, %311 : vector<2x32xf32>
    %313 = vector.extract_strided_slice %305 {offsets = [0, 64], sizes = [2, 32], strides = [1, 1]} : vector<2x96xf32> to vector<2x32xf32>
    %314 = math.tanh %312 : vector<2x32xf32>
    %315 = arith.mulf %313, %314 : vector<2x32xf32>
    %c2_104 = arith.constant 2 : index
    %c0_105 = arith.constant 0 : index
    %316 = vector.load %arg23[%c2_104, %c0_105] : memref<16x32xf32, #tpu.memory_space<vmem>>, vector<2x32xf32>
    tpu.vector_store %arg23[%c2_104, %c0_105], %315 {strides = array<i32>} : memref<16x32xf32, #tpu.memory_space<vmem>>, vector<2x32xf32>,
    %c14_106 = arith.constant 14 : index
    %c0_107 = arith.constant 0 : index
    %317 = vector.load %arg20[%c14_106, %c0_107] : memref<16x128xf32, #tpu.memory_space<vmem>>, vector<2x128xf32>
    %318 = arith.truncf %294 : vector<2x32xf32> to vector<2x32xbf16>
    %cst_108 = arith.constant dense<0.000000e+00> : vector<2x128xf32>
    %319 = tpu.matmul %318, %17, %cst_108 {dimension_numbers = #tpu.dot_dimension_numbers<[1], [0], [0], [1], [0, 0, 1, 1], [], []>} : vector<2x32xbf16>, vector<32x128xbf16>, vector<2x128xf32> -> vector<2x128xf32>
    %320 = arith.addf %317, %319 : vector<2x128xf32>
    %321 = vector.extract_strided_slice %320 {offsets = [0, 0], sizes = [2, 96], strides = [1, 1]} : vector<2x128xf32> to vector<2x96xf32>
    %322 = arith.negf %321 : vector<2x96xf32>
    %323 = math.exp %322 : vector<2x96xf32>
    %cst_109 = arith.constant 1.000000e+00 : f32
    %324 = vector.broadcast %cst_109 : f32 to vector<2x96xf32>
    %325 = arith.addf %324, %323 : vector<2x96xf32>
    %326 = arith.divf %324, %325 : vector<2x96xf32>
    %327 = vector.extract_strided_slice %320 {offsets = [0, 96], sizes = [2, 32], strides = [1, 1]} : vector<2x128xf32> to vector<2x32xf32>
    %328 = math.tanh %327 : vector<2x32xf32>
    %329 = vector.extract_strided_slice %326 {offsets = [0, 32], sizes = [2, 32], strides = [1, 1]} : vector<2x96xf32> to vector<2x32xf32>
    %330 = arith.mulf %329, %291 : vector<2x32xf32>
    %331 = vector.extract_strided_slice %326 {offsets = [0, 0], sizes = [2, 32], strides = [1, 1]} : vector<2x96xf32> to vector<2x32xf32>
    %332 = arith.mulf %331, %328 : vector<2x32xf32>
    %333 = arith.addf %330, %332 : vector<2x32xf32>
    %334 = vector.extract_strided_slice %326 {offsets = [0, 64], sizes = [2, 32], strides = [1, 1]} : vector<2x96xf32> to vector<2x32xf32>
    %335 = math.tanh %333 : vector<2x32xf32>
    %336 = arith.mulf %334, %335 : vector<2x32xf32>
    %c14_110 = arith.constant 14 : index
    %c0_111 = arith.constant 0 : index
    %337 = vector.load %arg22[%c14_110, %c0_111] : memref<16x32xf32, #tpu.memory_space<vmem>>, vector<2x32xf32>
    tpu.vector_store %arg22[%c14_110, %c0_111], %336 {strides = array<i32>} : memref<16x32xf32, #tpu.memory_space<vmem>>, vector<2x32xf32>,
    %c0_112 = arith.constant 0 : index
    %c0_113 = arith.constant 0 : index
    %338 = vector.load %arg21[%c0_112, %c0_113] : memref<16x128xf32, #tpu.memory_space<vmem>>, vector<2x128xf32>
    %339 = arith.truncf %315 : vector<2x32xf32> to vector<2x32xbf16>
    %cst_114 = arith.constant dense<0.000000e+00> : vector<2x128xf32>
    %340 = tpu.matmul %339, %18, %cst_114 {dimension_numbers = #tpu.dot_dimension_numbers<[1], [0], [0], [1], [0, 0, 1, 1], [], []>} : vector<2x32xbf16>, vector<32x128xbf16>, vector<2x128xf32> -> vector<2x128xf32>
    %341 = arith.addf %338, %340 : vector<2x128xf32>
    %342 = vector.extract_strided_slice %341 {offsets = [0, 0], sizes = [2, 96], strides = [1, 1]} : vector<2x128xf32> to vector<2x96xf32>
    %343 = arith.negf %342 : vector<2x96xf32>
    %344 = math.exp %343 : vector<2x96xf32>
    %cst_115 = arith.constant 1.000000e+00 : f32
    %345 = vector.broadcast %cst_115 : f32 to vector<2x96xf32>
    %346 = arith.addf %345, %344 : vector<2x96xf32>
    %347 = arith.divf %345, %346 : vector<2x96xf32>
    %348 = vector.extract_strided_slice %341 {offsets = [0, 96], sizes = [2, 32], strides = [1, 1]} : vector<2x128xf32> to vector<2x32xf32>
    %349 = math.tanh %348 : vector<2x32xf32>
    %350 = vector.extract_strided_slice %347 {offsets = [0, 32], sizes = [2, 32], strides = [1, 1]} : vector<2x96xf32> to vector<2x32xf32>
    %351 = arith.mulf %350, %312 : vector<2x32xf32>
    %352 = vector.extract_strided_slice %347 {offsets = [0, 0], sizes = [2, 32], strides = [1, 1]} : vector<2x96xf32> to vector<2x32xf32>
    %353 = arith.mulf %352, %349 : vector<2x32xf32>
    %354 = arith.addf %351, %353 : vector<2x32xf32>
    %355 = vector.extract_strided_slice %347 {offsets = [0, 64], sizes = [2, 32], strides = [1, 1]} : vector<2x96xf32> to vector<2x32xf32>
    %356 = math.tanh %354 : vector<2x32xf32>
    %357 = arith.mulf %355, %356 : vector<2x32xf32>
    %c0_116 = arith.constant 0 : index
    %c0_117 = arith.constant 0 : index
    %358 = vector.load %arg23[%c0_116, %c0_117] : memref<16x32xf32, #tpu.memory_space<vmem>>, vector<2x32xf32>
    tpu.vector_store %arg23[%c0_116, %c0_117], %357 {strides = array<i32>} : memref<16x32xf32, #tpu.memory_space<vmem>>, vector<2x32xf32>,
    %c0_118 = arith.constant 0 : index
    %c0_119 = arith.constant 0 : index
    %359 = vector.load %arg16[%c0_118, %c0_119] : memref<2x32xf32, #tpu.memory_space<vmem>>, vector<2x32xf32>
    tpu.vector_store %arg16[%c0_118, %c0_119], %336 {strides = array<i32>} : memref<2x32xf32, #tpu.memory_space<vmem>>, vector<2x32xf32>,
    %c0_120 = arith.constant 0 : index
    %c0_121 = arith.constant 0 : index
    %360 = vector.load %arg17[%c0_120, %c0_121] : memref<2x32xf32, #tpu.memory_space<vmem>>, vector<2x32xf32>
    tpu.vector_store %arg17[%c0_120, %c0_121], %333 {strides = array<i32>} : memref<2x32xf32, #tpu.memory_space<vmem>>, vector<2x32xf32>,
    %c0_122 = arith.constant 0 : index
    %c0_123 = arith.constant 0 : index
    %361 = vector.load %arg18[%c0_122, %c0_123] : memref<2x32xf32, #tpu.memory_space<vmem>>, vector<2x32xf32>
    tpu.vector_store %arg18[%c0_122, %c0_123], %357 {strides = array<i32>} : memref<2x32xf32, #tpu.memory_space<vmem>>, vector<2x32xf32>,
    %c0_124 = arith.constant 0 : index
    %c0_125 = arith.constant 0 : index
    %362 = vector.load %arg19[%c0_124, %c0_125] : memref<2x32xf32, #tpu.memory_space<vmem>>, vector<2x32xf32>
    tpu.vector_store %arg19[%c0_124, %c0_125], %354 {strides = array<i32>} : memref<2x32xf32, #tpu.memory_space<vmem>>, vector<2x32xf32>,
    %c0_126 = arith.constant 0 : index
    %c0_127 = arith.constant 0 : index
    %363 = vector.load %arg22[%c0_126, %c0_127] : memref<16x32xf32, #tpu.memory_space<vmem>>, vector<16x32xf32>
    %364 = arith.truncf %363 : vector<16x32xf32> to vector<16x32xbf16>
    %c0_128 = arith.constant 0 : index
    %c0_129 = arith.constant 0 : index
    %365 = vector.load %arg9[%c0_128, %c0_129] : memref<16x32xbf16, #tpu.memory_space<vmem>>, vector<16x32xbf16>
    tpu.vector_store %arg9[%c0_128, %c0_129], %364 {strides = array<i32>} : memref<16x32xbf16, #tpu.memory_space<vmem>>, vector<16x32xbf16>,
    %c0_130 = arith.constant 0 : index
    %c0_131 = arith.constant 0 : index
    %366 = vector.load %arg23[%c0_130, %c0_131] : memref<16x32xf32, #tpu.memory_space<vmem>>, vector<16x32xf32>
    %367 = arith.truncf %366 : vector<16x32xf32> to vector<16x32xbf16>
    %c0_132 = arith.constant 0 : index
    %c0_133 = arith.constant 0 : index
    %368 = vector.load %arg10[%c0_132, %c0_133] : memref<16x32xbf16, #tpu.memory_space<vmem>>, vector<16x32xbf16>
    tpu.vector_store %arg10[%c0_132, %c0_133], %367 {strides = array<i32>} : memref<16x32xbf16, #tpu.memory_space<vmem>>, vector<16x32xbf16>,
    return
  }
  func.func @transform_0(%arg0: i32) -> (i32, i32) {
    %c0_i32 = arith.constant 0 : i32
    %c0_i32_0 = arith.constant 0 : i32
    return %arg0, %c0_i32 : i32, i32
  }
  func.func @transform_1(%arg0: i32) -> (i32, i32) {
    %c0_i32 = arith.constant 0 : i32
    %0 = arith.subi %c0_i32, %arg0 : i32
    %c0_i32_0 = arith.constant 0 : i32
    %c0_i32_1 = arith.constant 0 : i32
    return %0, %c0_i32_0 : i32, i32
  }
  func.func @transform_4(%arg0: i32) -> (i32, i32) {
    %c0_i32 = arith.constant 0 : i32
    %c0_i32_0 = arith.constant 0 : i32
    %c0_i32_1 = arith.constant 0 : i32
    return %c0_i32, %c0_i32_0 : i32, i32
  }
  func.func @transform_7(%arg0: i32) -> (i32, i32) {
    %c0_i32 = arith.constant 0 : i32
    %c0_i32_0 = arith.constant 0 : i32
    %c0_i32_1 = arith.constant 0 : i32
    return %c0_i32, %c0_i32_0 : i32, i32
  }
  func.func @transform_8(%arg0: i32) -> (i32, i32) {
    %c0_i32 = arith.constant 0 : i32
    %c0_i32_0 = arith.constant 0 : i32
    return %arg0, %c0_i32 : i32, i32
  }
  func.func @transform_9(%arg0: i32) -> (i32, i32) {
    %c0_i32 = arith.constant 0 : i32
    %0 = arith.subi %c0_i32, %arg0 : i32
    %c0_i32_0 = arith.constant 0 : i32
    %c0_i32_1 = arith.constant 0 : i32
    return %0, %c0_i32_0 : i32, i32
  }
}

module attributes {stable_mosaic.version = 11 : i64} {
  func.func @proj_tanh_kernel(%arg0: i32, %arg1: memref<16x32xbf16, #tpu.memory_space<vmem>>, %arg2: memref<16x32xbf16, #tpu.memory_space<vmem>>, %arg3: memref<32x32xbf16, #tpu.memory_space<vmem>>, %arg4: memref<32x32xbf16, #tpu.memory_space<vmem>>, %arg5: memref<1x32xf32, #tpu.memory_space<vmem>>, %arg6: memref<16x32xf32, #tpu.memory_space<vmem>>) attributes {dimension_semantics = [#tpu.dimension_semantics<parallel>], iteration_bounds = array<i64: 1>, scalar_prefetch = 0 : i64, scratch_operands = 0 : i64, tpu.core_type = #tpu.core_type<tc>, window_params = [{transform_indices = @transform_0, window_bounds = array<i64: 16, 32>}, {transform_indices = @transform_1, window_bounds = array<i64: 16, 32>}, {pipeline_mode = #tpu.pipeline_mode<synchronous>, transform_indices = @transform_2, window_bounds = array<i64: 32, 32>}, {pipeline_mode = #tpu.pipeline_mode<synchronous>, transform_indices = @transform_3, window_bounds = array<i64: 32, 32>}, {pipeline_mode = #tpu.pipeline_mode<synchronous>, transform_indices = @transform_4, window_bounds = array<i64: 1, 32>}, {transform_indices = @transform_5, window_bounds = array<i64: 16, 32>}]} {
    %c0 = arith.constant 0 : index
    %c0_0 = arith.constant 0 : index
    %0 = vector.load %arg1[%c0, %c0_0] : memref<16x32xbf16, #tpu.memory_space<vmem>>, vector<16x32xbf16>
    %c0_1 = arith.constant 0 : index
    %c0_2 = arith.constant 0 : index
    %1 = vector.load %arg3[%c0_1, %c0_2] : memref<32x32xbf16, #tpu.memory_space<vmem>>, vector<32x32xbf16>
    %cst = arith.constant dense<0.000000e+00> : vector<16x32xf32>
    %2 = tpu.matmul %0, %1, %cst {dimension_numbers = #tpu.dot_dimension_numbers<[1], [0], [0], [1], [0, 0, 1, 1], [], []>} : vector<16x32xbf16>, vector<32x32xbf16>, vector<16x32xf32> -> vector<16x32xf32>
    %c0_3 = arith.constant 0 : index
    %c0_4 = arith.constant 0 : index
    %3 = vector.load %arg2[%c0_3, %c0_4] : memref<16x32xbf16, #tpu.memory_space<vmem>>, vector<16x32xbf16>
    %c0_5 = arith.constant 0 : index
    %c0_6 = arith.constant 0 : index
    %4 = vector.load %arg4[%c0_5, %c0_6] : memref<32x32xbf16, #tpu.memory_space<vmem>>, vector<32x32xbf16>
    %cst_7 = arith.constant dense<0.000000e+00> : vector<16x32xf32>
    %5 = tpu.matmul %3, %4, %cst_7 {dimension_numbers = #tpu.dot_dimension_numbers<[1], [0], [0], [1], [0, 0, 1, 1], [], []>} : vector<16x32xbf16>, vector<32x32xbf16>, vector<16x32xf32> -> vector<16x32xf32>
    %6 = arith.addf %2, %5 : vector<16x32xf32>
    %c0_8 = arith.constant 0 : index
    %c0_9 = arith.constant 0 : index
    %7 = vector.load %arg5[%c0_8, %c0_9] : memref<1x32xf32, #tpu.memory_space<vmem>>, vector<1x32xf32>
    %8 = vector.broadcast %7 : vector<1x32xf32> to vector<16x32xf32>
    %9 = arith.addf %6, %8 : vector<16x32xf32>
    %10 = math.tanh %9 : vector<16x32xf32>
    %c0_10 = arith.constant 0 : index
    %c0_11 = arith.constant 0 : index
    %11 = vector.load %arg6[%c0_10, %c0_11] : memref<16x32xf32, #tpu.memory_space<vmem>>, vector<16x32xf32>
    tpu.vector_store %arg6[%c0_10, %c0_11], %10 {strides = array<i32>} : memref<16x32xf32, #tpu.memory_space<vmem>>, vector<16x32xf32>,
    return
  }
  func.func @transform_0(%arg0: i32) -> (i32, i32) {
    %c0_i32 = arith.constant 0 : i32
    %c0_i32_0 = arith.constant 0 : i32
    return %arg0, %c0_i32 : i32, i32
  }
  func.func @transform_1(%arg0: i32) -> (i32, i32) {
    %c0_i32 = arith.constant 0 : i32
    %c0_i32_0 = arith.constant 0 : i32
    return %arg0, %c0_i32 : i32, i32
  }
  func.func @transform_2(%arg0: i32) -> (i32, i32) {
    %c0_i32 = arith.constant 0 : i32
    %c0_i32_0 = arith.constant 0 : i32
    %c0_i32_1 = arith.constant 0 : i32
    return %c0_i32, %c0_i32_0 : i32, i32
  }
  func.func @transform_3(%arg0: i32) -> (i32, i32) {
    %c0_i32 = arith.constant 0 : i32
    %c0_i32_0 = arith.constant 0 : i32
    %c0_i32_1 = arith.constant 0 : i32
    return %c0_i32, %c0_i32_0 : i32, i32
  }
  func.func @transform_4(%arg0: i32) -> (i32, i32) {
    %c0_i32 = arith.constant 0 : i32
    %c0_i32_0 = arith.constant 0 : i32
    %c0_i32_1 = arith.constant 0 : i32
    return %c0_i32, %c0_i32_0 : i32, i32
  }
  func.func @transform_5(%arg0: i32) -> (i32, i32) {
    %c0_i32 = arith.constant 0 : i32
    %c0_i32_0 = arith.constant 0 : i32
    return %arg0, %c0_i32 : i32, i32
  }
}

</mosaic_0001>

<bundles_post_ra>
// kernel: blstmp_forward.5
= control target key start
LH: loop header
LB: loop body
LE: loop exit
PB: predicated region body
PF: predicated region fallthrough
CT: control target
= control target key end

     0   :  { %v229_v0 = vmov 0.0   ;;  %vm230_vm0 = vmmov 0   ;;  %vm50_vm1 = vcmask 261120   ;;  %vm175_vm2 = vcmask 257024   ;;  %s288_s3 = inlined_call_operand.vmem [shape: bf16[32,32], index: 3, kind: input, shape index: {}]   ;;  %s289_s2 = inlined_call_operand.vmem [shape: bf16[32,32], index: 2, kind: input, shape index: {}]   ;;  %s290_s1 = inlined_call_operand.vmem [shape: bf16[16,32], index: 1, kind: input, shape index: {}]   ;;  %s291_s0 = inlined_call_operand.vmem [shape: bf16[16,32], index: 0, kind: input, shape index: {}]   ;;  %s292_s4 = inlined_call_operand.vmem [shape: f32[1,32], index: 4, kind: input, shape index: {}]   ;;  %s293_s5 = inlined_call_operand.vmem [shape: bf16[16,32], index: 5, kind: output, shape index: {}]  }
   0x1   :  { %201 = vmatprep.subr.bf16.mxu0 %v229_v0  ;;  %209 = vmatprep.subr.bf16.mxu1 %v229_v0  ;;  %v219_v1 = vld [vmem:[%s288_s3] sm:$0xff]   ;;  %v221_v3 = vld [vmem:[%s288_s3 + $0x8] sm:$0xff]  }
   0x2   :  { %v220_v2 = vld [vmem:[%s289_s2] sm:$0xff]   ;;  %205 = vmatprep.mubr.msk.bf16.mxu0 %vm230_vm0, %v229_v0  ;;  %213 = vmatprep.mubr.msk.bf16.mxu1 %vm230_vm0, %v229_v0  ;;  %v222_v4 = vld [vmem:[%s289_s2 + $0x8] sm:$0xff]  }
   0x3   :  { %202 = vmatpush3.bf16.msra.mxu0 %v219_v1  ;;  %210 = vmatpush3.bf16.msra.mxu1 %v220_v2  ;;  %v223_v5 = vld [vmem:[%s290_s1] sm:$0xff]  }
   0x4   :  { %203 = vmatprep.subr.bf16.mxu0 %v229_v0  ;;  %211 = vmatprep.subr.bf16.mxu1 %v229_v0  ;;  %v224_v6 = vld [vmem:[%s291_s0] sm:$0xff]  }
   0x5   :  { %v190_v9 = vld [vmem:[%s292_s4] ss:$0 sm:$0xff] }
   0x7   :  { %204 = vmatpush3.bf16.msra.mxu0 %v221_v3  ;;  %212 = vmatpush3.bf16.msra.mxu1 %v222_v4 }
   0xa   :  { %206 = vmatmul.mubr.msk.bf16.vlgmr.msra.gmra.mrb[0].mxu0 %vm50_vm1, %v223_v5  ;;  %214 = vmatmul.mubr.msk.bf16.vlgmr.msra.gmra.mrb[0].mxu1 %vm50_vm1, %v224_v6 }
  0xdd   :  { %v88_v7 = vpop.f32.mrb[0].mxu0  ;;  %v149_v8 = vpop.f32.mrb[0].mxu1 }
  0xde   :  { %v207_v10 = vpop.f32.mrb[1].mxu0  ;;  %v150_v11 = vadd.f32 %v149_v8, %v88_v7  ;;  %v215_v12 = vpop.f32.mrb[1].mxu1 }
  0xdf   :  { %v91_v13 = vpop.f32.mrb[2].mxu0  ;;  %v152_v14 = vpop.f32.mrb[2].mxu1 }
  0xe0   :  { %v208_v15 = vpop.f32.mrb[3].mxu0  ;;  %v163_v16 = vadd.f32 %v190_v9, %v150_v11  ;;  %v153_v17 = vadd.f32 %v152_v14, %v91_v13  ;;  %v216_v18 = vpop.f32.mrb[3].mxu1 }
  0xe2   :  { %225 = vtanh.f32 %v163_v16  ;;  %v164_v19 = vadd.f32 %v190_v9, %v153_v17 }
  0xe4   :  { %227 = vtanh.f32 %v164_v19 }
  0xec   :  { %v226_v20 = vpop.eup %225 }
  0xed   :  { %v193_v21 = vpack.c.bf16 %v226_v20, %v226_v20 }
  0xee   :  { %v228_v22 = vpop.eup %227 }
  0xef   :  { %176 = vst.msk [vmem:[%s293_s5] sm:$0xf] %vm175_vm2, %v193_v21  ;;  %v194_v23 = vpack.c.bf16 %v228_v22, %v228_v22 }
  0xf1   :  { %177 = vst.msk [vmem:[%s293_s5 + $0x4] sm:$0xf] %vm175_vm2, %v194_v23 }

// kernel: blstmp_forward.7
= control target key start
LH: loop header
LB: loop body
LE: loop exit
PB: predicated region body
PF: predicated region fallthrough
CT: control target
= control target key end

     0   :  { %v256_v1 = vmov 0.0   ;;  %vm257_vm0 = vmmov 0   ;;  %vm51_vm1 = vcmask 261120   ;;  %s328_s0 = inlined_call_operand.vmem [shape: bf16[16,32], index: 0, kind: input, shape index: {}]   ;;  %s329_s1 = inlined_call_operand.vmem [shape: bf16[16,32], index: 1, kind: input, shape index: {}]   ;;  %s330_s2 = inlined_call_operand.vmem [shape: bf16[32,32], index: 2, kind: input, shape index: {}]   ;;  %s331_s3 = inlined_call_operand.vmem [shape: bf16[32,32], index: 3, kind: input, shape index: {}]   ;;  %s332_s4 = inlined_call_operand.vmem [shape: f32[1,32], index: 4, kind: input, shape index: {}]   ;;  %s333_s5 = inlined_call_operand.hbm [shape: f32[16,32], index: 5, kind: output, shape index: {}]  }
   0x1   :  { %v222_v0 = vld [vmem:[%s331_s3] sm:$0xff]   ;;  %201 = vmatprep.subr.bf16.mxu0 %v256_v1  ;;  %209 = vmatprep.subr.bf16.mxu1 %v256_v1  ;;  %v224_v3 = vld [vmem:[%s331_s3 + $0x8] sm:$0xff]  }
   0x2   :  { %v223_v2 = vld [vmem:[%s330_s2] sm:$0xff]   ;;  %202 = vmatpush3.bf16.msra.mxu0 %v222_v0  ;;  %205 = vmatprep.mubr.msk.bf16.mxu0 %vm257_vm0, %v256_v1  ;;  %v225_v4 = vld [vmem:[%s330_s2 + $0x8] sm:$0xff]  }
   0x3   :  { %210 = vmatpush3.bf16.msra.mxu1 %v223_v2  ;;  %203 = vmatprep.subr.bf16.mxu0 %v256_v1  ;;  %v226_v5 = vld [vmem:[%s329_s1] sm:$0xff]  }
   0x4   :  { %211 = vmatprep.subr.bf16.mxu1 %v256_v1  ;;  %213 = vmatprep.mubr.msk.bf16.mxu1 %vm257_vm0, %v256_v1  ;;  %v227_v6 = vld [vmem:[%s328_s0] sm:$0xff]  }
   0x6   :  { %204 = vmatpush3.bf16.msra.mxu0 %v224_v3 }
   0x7   :  { %10 = vsyncpa [#allocation3], 0  ;;  %212 = vmatpush3.bf16.msra.mxu1 %v225_v4  ;;  %v194_v9 = vld [vmem:[%s332_s4] ss:$0 sm:$0xff]  ;;  %s258_s0 = smov [#allocation2]  }
   0x8   :  { %s175_s1 = sshll.u32 %s258_s0, 4  ;;  %s176_s1 = int_to_ptr.vmem [resolvable:$true] %s175_s1 }
   0x9   :  { %206 = vmatmul.mubr.msk.bf16.vlgmr.msra.gmra.mrb[0].mxu0 %vm51_vm1, %v226_v5  ;;  %s232_s4 = scalar_lea.vmem %s176_s1, 256  ;;  %p237_p1 = scmp.lt.s32.totalorder %s176_s1, %s176_s1 }
   0xa   :  { %214 = vmatmul.mubr.msk.bf16.vlgmr.msra.gmra.mrb[0].mxu1 %vm51_vm1, %v227_v6  ;;  %p233_p0 = scmp.ne.s32.totalorder %s176_s1, %s232_s4  ;;  %p238_p2 = scmp.lt.s32.totalorder %s232_s4, %s232_s4 }
   0xc   :  { %p239_p3 = por %p238_p2, %p237_p1 }
   0xe   :  { %p240_p4 = pnand %p239_p3, %p233_p0 }
  0xdc   :  { %v89_v7 = vpop.f32.mrb[0].mxu0 }
  0xdd   :  { %v150_v8 = vpop.f32.mrb[0].mxu1  ;;  %v207_v10 = vpop.f32.mrb[1].mxu0 }
  0xde   :  { %v151_v11 = vadd.f32 %v150_v8, %v89_v7  ;;  %v215_v12 = vpop.f32.mrb[1].mxu1  ;;  %v92_v13 = vpop.f32.mrb[2].mxu0 }
  0xdf   :  { %v153_v14 = vpop.f32.mrb[2].mxu1  ;;  %v208_v15 = vpop.f32.mrb[3].mxu0 }
  0xe0   :  { %v164_v16 = vadd.f32 %v194_v9, %v151_v11  ;;  %v154_v17 = vadd.f32 %v153_v14, %v92_v13  ;;  %v216_v18 = vpop.f32.mrb[3].mxu1 }
  0xe2   :  { %228 = vtanh.f32 %v164_v16  ;;  %v165_v19 = vadd.f32 %v194_v9, %v154_v17 }
  0xe4   :  { %230 = vtanh.f32 %v165_v19 }
  0xec   :  { %v229_v20 = vpop.eup %228 }
  0xed   :  { %168 = vst.msk [vmem:[#allocation2] sm:$0xff] %vm51_vm1, %v229_v20 }
  0xee   :  { %v231_v21 = vpop.eup %230 }
  0xef   :  { %169 = vst.msk [vmem:[#allocation2 + $0x8] sm:$0xff] %vm51_vm1, %v231_v21 }
  0xf0   :  { %243 = shalt.err (!%p240_p4)
}
  0xf1   :  { %s244_s7 = scalar_lea.hbm %s333_s5, 256 }
  0xf2   :  { %p245_p5 = scmp.ne.s32.totalorder %s333_s5, %s244_s7  ;;  %p248_p6 = scmp.lt.u32.totalorder %s244_s7, %s333_s5 }
  0xf4   :  { %p250_p7 = pnand %p248_p6, %p245_p5 }
  0xf6   :  { %253 = shalt.err (!%p250_p7)
}
  0xf7   :  { %s259_s12 = smov 128   ;;  %s260_s13 = smov 8  }
  0xf8   :  { %181 = dma.vmem_to_hbm [thread:$0]  %s176_s1, 256, %s333_s5, [#allocation3], %s259_s12, %s259_s12, %s260_s13  }
  0xf9   :  { %254 = dma.done.wait [#allocation3], 256  }
  0xfa   :  { %255 = vsyncadd [#allocation3], 4294967040 }
  0xfb   :  { %185 = vsyncpa [#allocation3], 1 }

// kernel: blstmp_forward.4
= control target key start
LH: loop header
LB: loop body
LE: loop exit
PB: predicated region body
PF: predicated region fallthrough
CT: control target
= control target key end

     0   :  { %s2609_s0 = inlined_call_operand.vmem [shape: bf16[16,16], index: 0, kind: input, shape index: {}, may-alias: {0,1}]   ;;  %s2610_s1 = inlined_call_operand.vmem [shape: bf16[16,16], index: 1, kind: input, shape index: {}, may-alias: {0,1}]   ;;  %s2611_s2 = inlined_call_operand.vmem [shape: bf16[16,128], index: 2, kind: input, shape index: {}]   ;;  %s2612_s3 = inlined_call_operand.vmem [shape: bf16[32,128], index: 3, kind: input, shape index: {}]   ;;  %s2613_s4 = inlined_call_operand.vmem [shape: f32[1,128], index: 4, kind: input, shape index: {}]   ;;  %s2614_s5 = inlined_call_operand.vmem [shape: bf16[16,128], index: 5, kind: input, shape index: {}]   ;;  %s2615_s6 = inlined_call_operand.vmem [shape: bf16[32,128], index: 6, kind: input, shape index: {}]   ;;  %s2616_s7 = inlined_call_operand.vmem [shape: f32[1,128], index: 7, kind: input, shape index: {}]   ;;  %s2617_s8 = inlined_call_operand.vmem [shape: bf16[16,32], index: 8, kind: output, shape index: {0}]   ;;  %s2618_s9 = inlined_call_operand.vmem [shape: bf16[16,32], index: 9, kind: output, shape index: {1}]  }
   0x1   :  { %v96_v0 = vld [vmem:[%s2611_s2] sm:$0xff] }
   0x2   :  { %105 = vsyncadd [#allocation6], 128  ;;  %v2217_v1 = vld [vmem:[%s2612_s3] sm:$0xff]  ;;  %v2222_v2 = vld [vmem:[%s2612_s3 + $0x8] sm:$0xff] }
   0x3   :  { %150 = vsyncadd [#allocation6 + $0x1], 256  ;;  %v184_v3 = vld [vmem:[%s2614_s5] sm:$0xff] }
   0x4   :  { %193 = vsyncadd [#allocation6 + $0x2], 128  ;;  %v2230_v4 = vld [vmem:[%s2615_s6] sm:$0xff]  ;;  %v2235_v5 = vld [vmem:[%s2615_s6 + $0x8] sm:$0xff] }
   0x5   :  { %238 = vsyncadd [#allocation6 + $0x3], 256 }
   0x6   :  { %2148 = dma.done.wait [#allocation6], 128 }
   0x7   :  { %2149 = vsyncadd [#allocation6], 4294967168 }
   0x8   :  { %2150 = dma.done.wait [#allocation6 + $0x1], 256 }
   0x9   :  { %2151 = vsyncadd [#allocation6 + $0x1], 4294967040 }
   0xa   :  { %2152 = dma.done.wait [#allocation6 + $0x2], 128 }
   0xb   :  { %2153 = vsyncadd [#allocation6 + $0x2], 4294967168 }
   0xc   :  { %2154 = dma.done.wait [#allocation6 + $0x3], 256 }
   0xd   :  { %2155 = vsyncadd [#allocation6 + $0x3], 4294967040  ;;  %vm251_vm0 = vcmask 254976   ;;  %v2156_v6 = vmov 0.0   ;;  %vm2157_vm1 = vmmov 0   ;;  %vm271_vm2 = vcmask 130048  }
   0xe   :  { %1873 = vmatprep.subr.bf16.mxu0 %v2156_v6  ;;  %1879 = vmatprep.subr.bf16.mxu1 %v2156_v6  ;;  %252 = vst.msk [vmem:[#allocation7] sm:$0x3] %vm251_vm0, %v2156_v6  ;;  %253 = vst.msk [vmem:[#allocation8] sm:$0x3] %vm251_vm0, %v2156_v6  ;;  %v2018_v7 = vld [vmem:[%s2609_s0] sm:$0xff]   ;;  %s2158_s0 = smov 32  }
   0xf   :  { %254 = vst.msk [vmem:[#allocation9] sm:$0x3] %vm251_vm0, %v2156_v6  ;;  %255 = vst.msk [vmem:[#allocation10] sm:$0x3] %vm251_vm0, %v2156_v6  ;;  %1874 = vmatpush3.bf16.msra.mxu0 %v96_v0  ;;  %1880 = vmatpush3.bf16.msra.mxu1 %v184_v3  ;;  %v2019_v8 = vld [vmem:[%s2610_s1] sm:$0xff]   ;;  %vm389_vm3 = vcmask 261120  }
  0x10   :  { %1875 = vmatprep.mubr.msk.bf16.mxu0 %vm2157_vm1, %v2156_v6  ;;  %1881 = vmatprep.mubr.msk.bf16.mxu1 %vm2157_vm1, %v2156_v6  ;;  %v1771_v15 = vld [vmem:[%s2613_s4] ss:$0 sm:$0xff]  ;;  %s2159_s4 = smov 64   ;;  %vm1661_vm4 = vcmask 257024  }
  0x11   :  { %1885 = vmatprep.subr.bf16.mxu0 %v2156_v6  ;;  %1893 = vmatprep.subr.bf16.mxu1 %v2156_v6  ;;  %v1774_v16 = vld [vmem:[%s2616_s7] ss:$0 sm:$0xff]  ;;  %s2160_s7 = smov 96  }
  0x12   :  { %1876 = vmatmul.mubr.msk.bf16.vlgmr.msra.gmra.mrb[0].mxu0 %vm271_vm2, %v2018_v7  ;;  %1882 = vmatmul.mubr.msk.bf16.vlgmr.msra.gmra.mrb[0].mxu1 %vm271_vm2, %v2019_v8 }
  0x13   :  { %1886 = vmatpush3.bf16.msra.mxu0 %v2217_v1  ;;  %1894 = vmatpush3.bf16.msra.mxu1 %v2230_v4 }
  0x14   :  { %1887 = vmatprep.subr.bf16.mxu0 %v2156_v6  ;;  %1889 = vmatprep.mubr.msk.bf16.mxu0 %vm2157_vm1, %v2156_v6 }
  0x15   :  { %v383_v9 = vld [vmem:[#allocation7] sm:$0x3]  ;;  %v384_v10 = vld [vmem:[#allocation8] sm:$0x3]  ;;  %1895 = vmatprep.subr.bf16.mxu1 %v2156_v6  ;;  %1897 = vmatprep.mubr.msk.bf16.mxu1 %vm2157_vm1, %v2156_v6 }
  0x16   :  { %v385_v11 = vld [vmem:[#allocation9] sm:$0x3]  ;;  %v388_v12 = vpack.c.bf16 %v383_v9, %v383_v9  ;;  %442 = vrot.lane.b32.xlu1 %v384_v10, %s2158_s0  ;;  %v386_v14 = vld [vmem:[#allocation10] sm:$0x3] }
  0x17   :  { %1888 = vmatpush3.bf16.msra.mxu0 %v2222_v2  ;;  %v469_v13 = vpack.c.bf16 %v385_v11, %v385_v11  ;;  %1896 = vmatpush3.bf16.msra.mxu1 %v2235_v5 }
  0x18   :  { %1901 = vmatprep.subr.bf16.mxu0 %v2156_v6  ;;  %1909 = vmatprep.subr.bf16.mxu1 %v2156_v6 }
  0x1a   :  { %1890 = vmatmul.mubr.msk.bf16.vlgmr.msra.gmra.mrb[4].mxu0 %vm389_vm3, %v388_v12  ;;  %522 = vrot.lane.b32.xlu1 %v386_v14, %s2158_s0 }
  0x1b   :  { %1898 = vmatmul.mubr.msk.bf16.vlgmr.msra.gmra.mrb[4].mxu1 %vm389_vm3, %v469_v13  ;;  %1902 = vmatpush3.bf16.msra.mxu0 %v2217_v1 }
  0x1c   :  { %1903 = vmatprep.subr.bf16.mxu0 %v2156_v6  ;;  %1910 = vmatpush3.bf16.msra.mxu1 %v2230_v4 }
  0x1d   :  { %1905 = vmatprep.mubr.msk.bf16.mxu0 %vm2157_vm1, %v2156_v6  ;;  %1911 = vmatprep.subr.bf16.mxu1 %v2156_v6 }
  0x1e   :  { %1913 = vmatprep.mubr.msk.bf16.mxu1 %vm2157_vm1, %v2156_v6 }
  0x1f   :  { %1904 = vmatpush3.bf16.msra.mxu0 %v2222_v2 }
  0x20   :  { %1912 = vmatpush3.bf16.msra.mxu1 %v2235_v5  ;;  %1917 = vmatprep.subr.bf16.mxu0 %v2156_v6 }
  0x21   :  { %1925 = vmatprep.subr.bf16.mxu1 %v2156_v6 }
  0x88   :  { %v443_v55 = vpop.permute.xlu1 %442 }
  0x8c   :  { %v523_v57 = vpop.permute.xlu1 %522 }
  0xe5   :  { %v309_v17 = vpop.f32.mrb[0].mxu0  ;;  %v370_v19 = vpop.f32.mrb[0].mxu1 }
  0xe6   :  { %v310_v18 = vadd.f32 %v1771_v15, %v309_v17  ;;  %v1877_v20 = vpop.f32.mrb[1].mxu0  ;;  %v371_v21 = vadd.f32 %v1774_v16, %v370_v19  ;;  %v1883_v22 = vpop.f32.mrb[1].mxu1 }
  0xe7   :  { %v312_v23 = vpop.f32.mrb[2].mxu0  ;;  %v373_v25 = vpop.f32.mrb[2].mxu1 }
  0xe8   :  { %316 = vst [vmem:[#allocation11] sm:$0xff] %v310_v18  ;;  %v313_v24 = vadd.f32 %v1771_v15, %v312_v23  ;;  %v1878_v26 = vpop.f32.mrb[3].mxu0  ;;  %377 = vst [vmem:[#allocation12] sm:$0xff] %v371_v21  ;;  %v374_v27 = vadd.f32 %v1774_v16, %v373_v25  ;;  %v1884_v28 = vpop.f32.mrb[3].mxu1 }
  0xea   :  { %317 = vst [vmem:[#allocation11 + $0x8] sm:$0xff] %v313_v24  ;;  %378 = vst [vmem:[#allocation12 + $0x8] sm:$0xff] %v374_v27 }
  0xed   :  { %v427_v29 = vpop.f32.mrb[4].mxu0 }
  0xee   :  { %v1891_v30 = vpop.f32.mrb[5].mxu0  ;;  %v507_v31 = vpop.f32.mrb[4].mxu1 }
  0xef   :  { %v387_v32 = vld [vmem:[#allocation11] sm:$0x3]  ;;  %v430_v33 = vpop.f32.mrb[6].mxu0  ;;  %v1899_v34 = vpop.f32.mrb[5].mxu1  ;;  %v547_v14 = vld [vmem:[#allocation11 + $0x2] sm:$0x3] }
  0xf0   :  { %v433_v35 = vadd.f32 %v427_v29, %v387_v32  ;;  %v1892_v36 = vpop.f32.mrb[7].mxu0  ;;  %v510_v37 = vpop.f32.mrb[6].mxu1 }
  0xf1   :  { %v1900_v38 = vpop.f32.mrb[7].mxu1  ;;  %v468_v39 = vld [vmem:[#allocation12 + $0xe] sm:$0x3]  ;;  %v625_v20 = vld [vmem:[#allocation12 + $0xc] sm:$0x3] }
  0xf2   :  { %2020 = vtanh.f32 %v433_v35  ;;  %v513_v40 = vadd.f32 %v507_v31, %v468_v39  ;;  %v1778_v43 = vmul.f32 -1.442695, %v433_v35 }
  0xf4   :  { %2022 = vtanh.f32 %v513_v40  ;;  %v1780_v44 = vmul.f32 -1.442695, %v513_v40 }
  0xf5   :  { %2024 = vpow2.f32 %v1778_v43 }
  0xf6   :  { %2026 = vpow2.f32 %v1780_v44 }
  0xfc   :  { %v2021_v41 = vpop.eup %2020 }
  0xfd   :  { %447 = vrot.lane.b32.xlu0 %v2021_v41, %s2158_s0 }
  0xfe   :  { %v2023_v42 = vpop.eup %2022 }
  0xff   :  { %v2025_v45 = vpop.eup %2024 }
 0x100   :  { %v437_v46 = vadd.f32 1.0, %v2025_v45  ;;  %v2027_v47 = vpop.eup %2026 }
 0x101   :  { %527 = vrot.lane.b32.xlu0 %v2023_v42, %s2158_s0  ;;  %v517_v48 = vadd.f32 1.0, %v2027_v47 }
 0x102   :  { %2028 = vrcp.f32 %v437_v46 }
 0x103   :  { %2030 = vrcp.f32 %v517_v48 }
 0x10c   :  { %v2029_v49 = vpop.eup %2028 }
 0x10d   :  { %v2031_v52 = vpop.eup %2030  ;;  %v445_v56 = vmul.f32 %v2029_v49, %v443_v55 }
 0x10e   :  { %v525_v60 = vmul.f32 %v2031_v52, %v523_v57 }
 0x16f   :  { %v448_v50 = vpop.permute.xlu0 %447 }
 0x170   :  { %v450_v51 = vmul.f32 %v2029_v49, %v448_v50 }
 0x172   :  { %452 = vrot.lane.b32.xlu0 %v450_v51, %s2158_s0 }
 0x173   :  { %v528_v53 = vpop.permute.xlu0 %527 }
 0x174   :  { %v530_v54 = vmul.f32 %v2031_v52, %v528_v53 }
 0x176   :  { %532 = vrot.lane.b32.xlu1 %v530_v54, %s2158_s0 }
 0x1e4   :  { %v453_v58 = vpop.permute.xlu0 %452 }
 0x1e5   :  { %v2297_v59 = vadd.f32 %v453_v58, %v445_v56  ;;  %v703_v56 = vld [vmem:[#allocation11 + $0x4] sm:$0x3] }
 0x1e7   :  { %2032 = vtanh.f32 %v2297_v59 }
 0x1e8   :  { %v533_v61 = vpop.permute.xlu1 %532 }
 0x1e9   :  { %v2300_v62 = vadd.f32 %v533_v61, %v525_v60 }
 0x1eb   :  { %2034 = vtanh.f32 %v2300_v62 }
 0x1f1   :  { %v2033_v63 = vpop.eup %2032 }
 0x1f2   :  { %458 = vrot.lane.b32.xlu0 %v2033_v63, %s2158_s0 }
 0x1f5   :  { %v2035_v0 = vpop.eup %2034 }
 0x1f6   :  { %538 = vrot.lane.b32.xlu1 %v2035_v0, %s2158_s0 }
 0x264   :  { %v459_v3 = vpop.permute.xlu0 %458 }
 0x265   :  { %v2305_v7 = vmul.f32 %v2029_v49, %v459_v3 }
 0x267   :  { %v548_v8 = vpack.c.bf16 %v2305_v7, %v2305_v7 }
 0x268   :  { %v539_v9 = vpop.permute.xlu1 %538 }
 0x269   :  { %v2309_v10 = vmul.f32 %v2031_v52, %v539_v9  ;;  %550 = vrot.lane.b32.xlu0 %v548_v8, %s2159_s4 }
 0x26b   :  { %v626_v11 = vpack.c.bf16 %v2309_v10, %v2309_v10 }
 0x26d   :  { %628 = vrot.lane.b32.xlu1 %v626_v11, %s2159_s4 }
 0x2db   :  { %v551_v12 = vpop.permute.xlu0 %550 }
 0x2dc   :  { %1906 = vmatmul.mubr.msk.bf16.vlgmr.msra.gmra.mrb[8].mxu0 %vm389_vm3, %v551_v12 }
 0x2dd   :  { %1918 = vmatpush3.bf16.msra.mxu0 %v2217_v1  ;;  %1921 = vmatprep.mubr.msk.bf16.mxu0 %vm2157_vm1, %v2156_v6 }
 0x2de   :  { %1919 = vmatprep.subr.bf16.mxu0 %v2156_v6 }
 0x2df   :  { %v629_v13 = vpop.permute.xlu1 %628 }
 0x2e0   :  { %1914 = vmatmul.mubr.msk.bf16.vlgmr.msra.gmra.mrb[8].mxu1 %vm389_vm3, %v629_v13 }
 0x2e1   :  { %1926 = vmatpush3.bf16.msra.mxu1 %v2230_v4  ;;  %1920 = vmatpush3.bf16.msra.mxu0 %v2222_v2 }
 0x2e2   :  { %1927 = vmatprep.subr.bf16.mxu1 %v2156_v6  ;;  %1929 = vmatprep.mubr.msk.bf16.mxu1 %vm2157_vm1, %v2156_v6 }
 0x2e3   :  { %1933 = vmatprep.subr.bf16.mxu0 %v2156_v6 }
 0x2e5   :  { %1928 = vmatpush3.bf16.msra.mxu1 %v2235_v5 }
 0x2e6   :  { %1941 = vmatprep.subr.bf16.mxu1 %v2156_v6 }
 0x3af   :  { %v589_v15 = vpop.f32.mrb[8].mxu0 }
 0x3b0   :  { %v595_v16 = vadd.f32 %v589_v15, %v547_v14  ;;  %v1907_v17 = vpop.f32.mrb[9].mxu0 }
 0x3b1   :  { %v592_v18 = vpop.f32.mrb[10].mxu0 }
 0x3b2   :  { %2036 = vtanh.f32 %v595_v16  ;;  %v1908_v19 = vpop.f32.mrb[11].mxu0  ;;  %v1782_v28 = vmul.f32 -1.442695, %v595_v16 }
 0x3b3   :  { %v667_v21 = vpop.f32.mrb[8].mxu1 }
 0x3b4   :  { %v673_v22 = vadd.f32 %v667_v21, %v625_v20  ;;  %v1915_v23 = vpop.f32.mrb[9].mxu1 }
 0x3b5   :  { %v670_v24 = vpop.f32.mrb[10].mxu1 }
 0x3b6   :  { %2038 = vtanh.f32 %v673_v22  ;;  %v1916_v25 = vpop.f32.mrb[11].mxu1  ;;  %v1784_v29 = vmul.f32 -1.442695, %v673_v22 }
 0x3b7   :  { %2040 = vpow2.f32 %v1782_v28 }
 0x3b8   :  { %2042 = vpow2.f32 %v1784_v29 }
 0x3bc   :  { %v2037_v26 = vpop.eup %2036 }
 0x3bd   :  { %605 = vrot.lane.b32.xlu0 %v2037_v26, %s2158_s0 }
 0x3c0   :  { %v2039_v27 = vpop.eup %2038 }
 0x3c1   :  { %683 = vrot.lane.b32.xlu1 %v2039_v27, %s2158_s0  ;;  %v2041_v30 = vpop.eup %2040 }
 0x3c2   :  { %v599_v31 = vadd.f32 1.0, %v2041_v30  ;;  %v2043_v32 = vpop.eup %2042 }
 0x3c3   :  { %v677_v33 = vadd.f32 1.0, %v2043_v32 }
 0x3c4   :  { %2044 = vrcp.f32 %v599_v31 }
 0x3c5   :  { %2046 = vrcp.f32 %v677_v33 }
 0x3ce   :  { %v2045_v34 = vpop.eup %2044 }
 0x3cf   :  { %v2047_v37 = vpop.eup %2046  ;;  %v603_v40 = vmul.f32 %v2045_v34, %v2297_v59 }
 0x3d0   :  { %v681_v43 = vmul.f32 %v2047_v37, %v2300_v62  ;;  %v781_v62 = vld [vmem:[#allocation12 + $0xa] sm:$0x3] }
 0x42f   :  { %v606_v35 = vpop.permute.xlu0 %605 }
 0x430   :  { %v608_v36 = vmul.f32 %v2045_v34, %v606_v35 }
 0x432   :  { %610 = vrot.lane.b32.xlu0 %v608_v36, %s2158_s0 }
 0x433   :  { %v684_v38 = vpop.permute.xlu1 %683 }
 0x434   :  { %v686_v39 = vmul.f32 %v2047_v37, %v684_v38 }
 0x436   :  { %688 = vrot.lane.b32.xlu1 %v686_v39, %s2158_s0 }
 0x4a4   :  { %v611_v41 = vpop.permute.xlu0 %610 }
 0x4a5   :  { %v2334_v42 = vadd.f32 %v611_v41, %v603_v40  ;;  %v859_v41 = vld [vmem:[#allocation11 + $0x6] sm:$0x3] }
 0x4a7   :  { %2048 = vtanh.f32 %v2334_v42 }
 0x4a8   :  { %v689_v44 = vpop.permute.xlu1 %688 }
 0x4a9   :  { %v2338_v45 = vadd.f32 %v689_v44, %v681_v43 }
 0x4ab   :  { %2050 = vtanh.f32 %v2338_v45 }
 0x4b1   :  { %v2049_v46 = vpop.eup %2048 }
 0x4b2   :  { %616 = vrot.lane.b32.xlu0 %v2049_v46, %s2158_s0 }
 0x4b5   :  { %v2051_v47 = vpop.eup %2050 }
 0x4b6   :  { %694 = vrot.lane.b32.xlu1 %v2051_v47, %s2158_s0  ;;  %v937_v47 = vld [vmem:[#allocation12 + $0x8] sm:$0x3] }
 0x524   :  { %v617_v48 = vpop.permute.xlu0 %616 }
 0x525   :  { %v2343_v49 = vmul.f32 %v2045_v34, %v617_v48 }
 0x527   :  { %v704_v50 = vpack.c.bf16 %v2343_v49, %v2343_v49 }
 0x528   :  { %v695_v51 = vpop.permute.xlu1 %694 }
 0x529   :  { %v2347_v52 = vmul.f32 %v2047_v37, %v695_v51  ;;  %706 = vrot.lane.b32.xlu0 %v704_v50, %s2159_s4 }
 0x52b   :  { %v782_v53 = vpack.c.bf16 %v2347_v52, %v2347_v52 }
 0x52d   :  { %784 = vrot.lane.b32.xlu1 %v782_v53, %s2159_s4 }
 0x59b   :  { %v707_v54 = vpop.permute.xlu0 %706 }
 0x59c   :  { %1922 = vmatmul.mubr.msk.bf16.vlgmr.msra.gmra.mrb[12].mxu0 %vm389_vm3, %v707_v54 }
 0x59d   :  { %1934 = vmatpush3.bf16.msra.mxu0 %v2217_v1  ;;  %1937 = vmatprep.mubr.msk.bf16.mxu0 %vm2157_vm1, %v2156_v6 }
 0x59e   :  { %1935 = vmatprep.subr.bf16.mxu0 %v2156_v6 }
 0x59f   :  { %v785_v55 = vpop.permute.xlu1 %784 }
 0x5a0   :  { %1930 = vmatmul.mubr.msk.bf16.vlgmr.msra.gmra.mrb[12].mxu1 %vm389_vm3, %v785_v55 }
 0x5a1   :  { %1942 = vmatpush3.bf16.msra.mxu1 %v2230_v4  ;;  %1936 = vmatpush3.bf16.msra.mxu0 %v2222_v2 }
 0x5a2   :  { %1943 = vmatprep.subr.bf16.mxu1 %v2156_v6  ;;  %1945 = vmatprep.mubr.msk.bf16.mxu1 %vm2157_vm1, %v2156_v6 }
 0x5a3   :  { %1949 = vmatprep.subr.bf16.mxu0 %v2156_v6 }
 0x5a5   :  { %1944 = vmatpush3.bf16.msra.mxu1 %v2235_v5 }
 0x5a6   :  { %1957 = vmatprep.subr.bf16.mxu1 %v2156_v6 }
 0x66f   :  { %v745_v57 = vpop.f32.mrb[12].mxu0 }
 0x670   :  { %v751_v58 = vadd.f32 %v745_v57, %v703_v56  ;;  %v1923_v59 = vpop.f32.mrb[13].mxu0 }
 0x671   :  { %v748_v60 = vpop.f32.mrb[14].mxu0 }
 0x672   :  { %2052 = vtanh.f32 %v751_v58  ;;  %v1924_v61 = vpop.f32.mrb[15].mxu0  ;;  %v1786_v13 = vmul.f32 -1.442695, %v751_v58 }
 0x673   :  { %v823_v63 = vpop.f32.mrb[12].mxu1 }
 0x674   :  { %v829_v0 = vadd.f32 %v823_v63, %v781_v62  ;;  %v1931_v3 = vpop.f32.mrb[13].mxu1 }
 0x675   :  { %v826_v8 = vpop.f32.mrb[14].mxu1 }
 0x676   :  { %2054 = vtanh.f32 %v829_v0  ;;  %v1932_v9 = vpop.f32.mrb[15].mxu1  ;;  %v1788_v14 = vmul.f32 -1.442695, %v829_v0 }
 0x677   :  { %2056 = vpow2.f32 %v1786_v13 }
 0x678   :  { %2058 = vpow2.f32 %v1788_v14 }
 0x67c   :  { %v2053_v11 = vpop.eup %2052 }
 0x67d   :  { %761 = vrot.lane.b32.xlu0 %v2053_v11, %s2158_s0 }
 0x680   :  { %v2055_v12 = vpop.eup %2054 }
 0x681   :  { %839 = vrot.lane.b32.xlu1 %v2055_v12, %s2158_s0  ;;  %v2057_v15 = vpop.eup %2056 }
 0x682   :  { %v755_v16 = vadd.f32 1.0, %v2057_v15  ;;  %v2059_v17 = vpop.eup %2058 }
 0x683   :  { %v833_v18 = vadd.f32 1.0, %v2059_v17 }
 0x684   :  { %2060 = vrcp.f32 %v755_v16 }
 0x685   :  { %2062 = vrcp.f32 %v833_v18 }
 0x68e   :  { %v2061_v19 = vpop.eup %2060 }
 0x68f   :  { %v2063_v22 = vpop.eup %2062  ;;  %v759_v25 = vmul.f32 %v2061_v19, %v2334_v42 }
 0x690   :  { %v837_v28 = vmul.f32 %v2063_v22, %v2338_v45 }
 0x6ef   :  { %v762_v20 = vpop.permute.xlu0 %761 }
 0x6f0   :  { %v764_v21 = vmul.f32 %v2061_v19, %v762_v20 }
 0x6f2   :  { %766 = vrot.lane.b32.xlu0 %v764_v21, %s2158_s0 }
 0x6f3   :  { %v840_v23 = vpop.permute.xlu1 %839 }
 0x6f4   :  { %v842_v24 = vmul.f32 %v2063_v22, %v840_v23 }
 0x6f6   :  { %844 = vrot.lane.b32.xlu1 %v842_v24, %s2158_s0 }
 0x764   :  { %v767_v26 = vpop.permute.xlu0 %766 }
 0x765   :  { %v2372_v27 = vadd.f32 %v767_v26, %v759_v25 }
 0x767   :  { %2064 = vtanh.f32 %v2372_v27 }
 0x768   :  { %v845_v29 = vpop.permute.xlu1 %844 }
 0x769   :  { %v2376_v30 = vadd.f32 %v845_v29, %v837_v28  ;;  %v1015_v28 = vld [vmem:[#allocation11 + $0x8] sm:$0x3] }
 0x76b   :  { %2066 = vtanh.f32 %v2376_v30 }
 0x771   :  { %v2065_v31 = vpop.eup %2064 }
 0x772   :  { %772 = vrot.lane.b32.xlu0 %v2065_v31, %s2158_s0 }
 0x775   :  { %v2067_v32 = vpop.eup %2066 }
 0x776   :  { %850 = vrot.lane.b32.xlu1 %v2067_v32, %s2158_s0 }
 0x7e4   :  { %v773_v33 = vpop.permute.xlu0 %772 }
 0x7e5   :  { %v2381_v34 = vmul.f32 %v2061_v19, %v773_v33 }
 0x7e7   :  { %v860_v35 = vpack.c.bf16 %v2381_v34, %v2381_v34 }
 0x7e8   :  { %v851_v36 = vpop.permute.xlu1 %850 }
 0x7e9   :  { %v2385_v37 = vmul.f32 %v2063_v22, %v851_v36  ;;  %862 = vrot.lane.b32.xlu0 %v860_v35, %s2159_s4  ;;  %v1093_v35 = vld [vmem:[#allocation12 + $0x6] sm:$0x3] }
 0x7eb   :  { %v938_v38 = vpack.c.bf16 %v2385_v37, %v2385_v37 }
 0x7ed   :  { %940 = vrot.lane.b32.xlu1 %v938_v38, %s2159_s4 }
 0x85b   :  { %v863_v39 = vpop.permute.xlu0 %862 }
 0x85c   :  { %1938 = vmatmul.mubr.msk.bf16.vlgmr.msra.gmra.mrb[16].mxu0 %vm389_vm3, %v863_v39 }
 0x85d   :  { %1950 = vmatpush3.bf16.msra.mxu0 %v2217_v1  ;;  %1953 = vmatprep.mubr.msk.bf16.mxu0 %vm2157_vm1, %v2156_v6 }
 0x85e   :  { %1951 = vmatprep.subr.bf16.mxu0 %v2156_v6 }
 0x85f   :  { %v941_v40 = vpop.permute.xlu1 %940 }
 0x860   :  { %1946 = vmatmul.mubr.msk.bf16.vlgmr.msra.gmra.mrb[16].mxu1 %vm389_vm3, %v941_v40 }
 0x861   :  { %1958 = vmatpush3.bf16.msra.mxu1 %v2230_v4  ;;  %1952 = vmatpush3.bf16.msra.mxu0 %v2222_v2 }
 0x862   :  { %1959 = vmatprep.subr.bf16.mxu1 %v2156_v6  ;;  %1961 = vmatprep.mubr.msk.bf16.mxu1 %vm2157_vm1, %v2156_v6 }
 0x863   :  { %1965 = vmatprep.subr.bf16.mxu0 %v2156_v6 }
 0x865   :  { %1960 = vmatpush3.bf16.msra.mxu1 %v2235_v5 }
 0x866   :  { %1973 = vmatprep.subr.bf16.mxu1 %v2156_v6 }
 0x92f   :  { %v901_v42 = vpop.f32.mrb[16].mxu0 }
 0x930   :  { %v907_v43 = vadd.f32 %v901_v42, %v859_v41  ;;  %v1939_v44 = vpop.f32.mrb[17].mxu0 }
 0x931   :  { %v904_v45 = vpop.f32.mrb[18].mxu0 }
 0x932   :  { %2068 = vtanh.f32 %v907_v43  ;;  %v1940_v46 = vpop.f32.mrb[19].mxu0  ;;  %v1790_v57 = vmul.f32 -1.442695, %v907_v43 }
 0x933   :  { %v979_v48 = vpop.f32.mrb[16].mxu1 }
 0x934   :  { %v985_v50 = vadd.f32 %v979_v48, %v937_v47  ;;  %v1947_v51 = vpop.f32.mrb[17].mxu1 }
 0x935   :  { %v982_v53 = vpop.f32.mrb[18].mxu1 }
 0x936   :  { %2070 = vtanh.f32 %v985_v50  ;;  %v1948_v54 = vpop.f32.mrb[19].mxu1  ;;  %v1792_v58 = vmul.f32 -1.442695, %v985_v50 }
 0x937   :  { %2072 = vpow2.f32 %v1790_v57 }
 0x938   :  { %2074 = vpow2.f32 %v1792_v58 }
 0x93c   :  { %v2069_v55 = vpop.eup %2068 }
 0x93d   :  { %917 = vrot.lane.b32.xlu0 %v2069_v55, %s2158_s0 }
 0x940   :  { %v2071_v56 = vpop.eup %2070 }
 0x941   :  { %995 = vrot.lane.b32.xlu1 %v2071_v56, %s2158_s0  ;;  %v2073_v59 = vpop.eup %2072 }
 0x942   :  { %v911_v60 = vadd.f32 1.0, %v2073_v59  ;;  %v2075_v61 = vpop.eup %2074 }
 0x943   :  { %v989_v62 = vadd.f32 1.0, %v2075_v61 }
 0x944   :  { %2076 = vrcp.f32 %v911_v60 }
 0x945   :  { %2078 = vrcp.f32 %v989_v62 }
 0x94e   :  { %v2077_v63 = vpop.eup %2076 }
 0x94f   :  { %v2079_v8 = vpop.eup %2078  ;;  %v915_v12 = vmul.f32 %v2077_v63, %v2372_v27 }
 0x950   :  { %v993_v15 = vmul.f32 %v2079_v8, %v2376_v30 }
 0x9af   :  { %v918_v0 = vpop.permute.xlu0 %917 }
 0x9b0   :  { %v920_v3 = vmul.f32 %v2077_v63, %v918_v0 }
 0x9b2   :  { %922 = vrot.lane.b32.xlu0 %v920_v3, %s2158_s0 }
 0x9b3   :  { %v996_v9 = vpop.permute.xlu1 %995 }
 0x9b4   :  { %v998_v11 = vmul.f32 %v2079_v8, %v996_v9 }
 0x9b6   :  { %1000 = vrot.lane.b32.xlu1 %v998_v11, %s2158_s0 }
 0xa24   :  { %v923_v13 = vpop.permute.xlu0 %922 }
 0xa25   :  { %v2410_v14 = vadd.f32 %v923_v13, %v915_v12 }
 0xa27   :  { %2080 = vtanh.f32 %v2410_v14 }
 0xa28   :  { %v1001_v16 = vpop.permute.xlu1 %1000 }
 0xa29   :  { %v2414_v17 = vadd.f32 %v1001_v16, %v993_v15 }
 0xa2b   :  { %2082 = vtanh.f32 %v2414_v17 }
 0xa31   :  { %v2081_v18 = vpop.eup %2080 }
 0xa32   :  { %928 = vrot.lane.b32.xlu0 %v2081_v18, %s2158_s0 }
 0xa35   :  { %v2083_v19 = vpop.eup %2082 }
 0xa36   :  { %1006 = vrot.lane.b32.xlu1 %v2083_v19, %s2158_s0 }
 0xaa4   :  { %v929_v20 = vpop.permute.xlu0 %928 }
 0xaa5   :  { %v2419_v21 = vmul.f32 %v2077_v63, %v929_v20 }
 0xaa7   :  { %v1016_v22 = vpack.c.bf16 %v2419_v21, %v2419_v21 }
 0xaa8   :  { %v1007_v23 = vpop.permute.xlu1 %1006 }
 0xaa9   :  { %v2423_v24 = vmul.f32 %v2079_v8, %v1007_v23  ;;  %1018 = vrot.lane.b32.xlu0 %v1016_v22, %s2159_s4 }
 0xaab   :  { %v1094_v25 = vpack.c.bf16 %v2423_v24, %v2423_v24 }
 0xaad   :  { %1096 = vrot.lane.b32.xlu1 %v1094_v25, %s2159_s4  ;;  %v1249_v25 = vld [vmem:[#allocation12 + $0x4] sm:$0x3] }
 0xb1b   :  { %v1019_v26 = vpop.permute.xlu0 %1018 }
 0xb1c   :  { %1954 = vmatmul.mubr.msk.bf16.vlgmr.msra.gmra.mrb[20].mxu0 %vm389_vm3, %v1019_v26 }
 0xb1d   :  { %1966 = vmatpush3.bf16.msra.mxu0 %v2217_v1  ;;  %1969 = vmatprep.mubr.msk.bf16.mxu0 %vm2157_vm1, %v2156_v6 }
 0xb1e   :  { %1967 = vmatprep.subr.bf16.mxu0 %v2156_v6 }
 0xb1f   :  { %v1097_v27 = vpop.permute.xlu1 %1096 }
 0xb20   :  { %1962 = vmatmul.mubr.msk.bf16.vlgmr.msra.gmra.mrb[20].mxu1 %vm389_vm3, %v1097_v27 }
 0xb21   :  { %1974 = vmatpush3.bf16.msra.mxu1 %v2230_v4  ;;  %1968 = vmatpush3.bf16.msra.mxu0 %v2222_v2 }
 0xb22   :  { %1975 = vmatprep.subr.bf16.mxu1 %v2156_v6  ;;  %1977 = vmatprep.mubr.msk.bf16.mxu1 %vm2157_vm1, %v2156_v6 }
 0xb23   :  { %1981 = vmatprep.subr.bf16.mxu0 %v2156_v6 }
 0xb25   :  { %1976 = vmatpush3.bf16.msra.mxu1 %v2235_v5 }
 0xb26   :  { %1989 = vmatprep.subr.bf16.mxu1 %v2156_v6 }
 0xbef   :  { %v1057_v29 = vpop.f32.mrb[20].mxu0 }
 0xbf0   :  { %v1063_v30 = vadd.f32 %v1057_v29, %v1015_v28  ;;  %v1955_v31 = vpop.f32.mrb[21].mxu0 }
 0xbf1   :  { %v1060_v32 = vpop.f32.mrb[22].mxu0 }
 0xbf2   :  { %2084 = vtanh.f32 %v1063_v30  ;;  %v1956_v33 = vpop.f32.mrb[23].mxu0  ;;  %v1794_v44 = vmul.f32 -1.442695, %v1063_v30 }
 0xbf3   :  { %v1135_v36 = vpop.f32.mrb[20].mxu1 }
 0xbf4   :  { %v1141_v38 = vadd.f32 %v1135_v36, %v1093_v35  ;;  %v1963_v39 = vpop.f32.mrb[21].mxu1 }
 0xbf5   :  { %v1138_v40 = vpop.f32.mrb[22].mxu1 }
 0xbf6   :  { %2086 = vtanh.f32 %v1141_v38  ;;  %v1964_v41 = vpop.f32.mrb[23].mxu1  ;;  %v1796_v45 = vmul.f32 -1.442695, %v1141_v38 }
 0xbf7   :  { %2088 = vpow2.f32 %v1794_v44 }
 0xbf8   :  { %2090 = vpow2.f32 %v1796_v45 }
 0xbfc   :  { %v2085_v42 = vpop.eup %2084 }
 0xbfd   :  { %1073 = vrot.lane.b32.xlu0 %v2085_v42, %s2158_s0 }
 0xc00   :  { %v2087_v43 = vpop.eup %2086 }
 0xc01   :  { %1151 = vrot.lane.b32.xlu1 %v2087_v43, %s2158_s0  ;;  %v2089_v46 = vpop.eup %2088 }
 0xc02   :  { %v1067_v47 = vadd.f32 1.0, %v2089_v46  ;;  %v2091_v48 = vpop.eup %2090 }
 0xc03   :  { %v1145_v50 = vadd.f32 1.0, %v2091_v48 }
 0xc04   :  { %2092 = vrcp.f32 %v1067_v47 }
 0xc05   :  { %2094 = vrcp.f32 %v1145_v50 }
 0xc0e   :  { %v2093_v51 = vpop.eup %2092 }
 0xc0f   :  { %v2095_v55 = vpop.eup %2094  ;;  %v1071_v58 = vmul.f32 %v2093_v51, %v2410_v14 }
 0xc10   :  { %v1149_v61 = vmul.f32 %v2095_v55, %v2414_v17  ;;  %v1171_v17 = vld [vmem:[#allocation11 + $0xa] sm:$0x3] }
 0xc6f   :  { %v1074_v53 = vpop.permute.xlu0 %1073 }
 0xc70   :  { %v1076_v54 = vmul.f32 %v2093_v51, %v1074_v53 }
 0xc72   :  { %1078 = vrot.lane.b32.xlu0 %v1076_v54, %s2158_s0 }
 0xc73   :  { %v1152_v56 = vpop.permute.xlu1 %1151 }
 0xc74   :  { %v1154_v57 = vmul.f32 %v2095_v55, %v1152_v56 }
 0xc76   :  { %1156 = vrot.lane.b32.xlu1 %v1154_v57, %s2158_s0 }
 0xce4   :  { %v1079_v59 = vpop.permute.xlu0 %1078 }
 0xce5   :  { %v2448_v60 = vadd.f32 %v1079_v59, %v1071_v58 }
 0xce7   :  { %2096 = vtanh.f32 %v2448_v60 }
 0xce8   :  { %v1157_v62 = vpop.permute.xlu1 %1156 }
 0xce9   :  { %v2452_v63 = vadd.f32 %v1157_v62, %v1149_v61 }
 0xceb   :  { %2098 = vtanh.f32 %v2452_v63 }
 0xcf1   :  { %v2097_v0 = vpop.eup %2096 }
 0xcf2   :  { %1084 = vrot.lane.b32.xlu0 %v2097_v0, %s2158_s0 }
 0xcf5   :  { %v2099_v3 = vpop.eup %2098 }
 0xcf6   :  { %1162 = vrot.lane.b32.xlu1 %v2099_v3, %s2158_s0 }
 0xd64   :  { %v1085_v8 = vpop.permute.xlu0 %1084 }
 0xd65   :  { %v2457_v9 = vmul.f32 %v2093_v51, %v1085_v8 }
 0xd67   :  { %v1172_v11 = vpack.c.bf16 %v2457_v9, %v2457_v9 }
 0xd68   :  { %v1163_v12 = vpop.permute.xlu1 %1162 }
 0xd69   :  { %v2461_v13 = vmul.f32 %v2095_v55, %v1163_v12  ;;  %1174 = vrot.lane.b32.xlu0 %v1172_v11, %s2159_s4 }
 0xd6b   :  { %v1250_v14 = vpack.c.bf16 %v2461_v13, %v2461_v13 }
 0xd6d   :  { %1252 = vrot.lane.b32.xlu1 %v1250_v14, %s2159_s4 }
 0xddb   :  { %v1175_v15 = vpop.permute.xlu0 %1174 }
 0xddc   :  { %1970 = vmatmul.mubr.msk.bf16.vlgmr.msra.gmra.mrb[24].mxu0 %vm389_vm3, %v1175_v15  ;;  %v1405_v15 = vld [vmem:[#allocation12 + $0x2] sm:$0x3] }
 0xddd   :  { %1982 = vmatpush3.bf16.msra.mxu0 %v2217_v1  ;;  %1985 = vmatprep.mubr.msk.bf16.mxu0 %vm2157_vm1, %v2156_v6 }
 0xdde   :  { %1983 = vmatprep.subr.bf16.mxu0 %v2156_v6 }
 0xddf   :  { %v1253_v16 = vpop.permute.xlu1 %1252 }
 0xde0   :  { %1978 = vmatmul.mubr.msk.bf16.vlgmr.msra.gmra.mrb[24].mxu1 %vm389_vm3, %v1253_v16 }
 0xde1   :  { %1990 = vmatpush3.bf16.msra.mxu1 %v2230_v4  ;;  %1984 = vmatpush3.bf16.msra.mxu0 %v2222_v2 }
 0xde2   :  { %1991 = vmatprep.subr.bf16.mxu1 %v2156_v6  ;;  %1993 = vmatprep.mubr.msk.bf16.mxu1 %vm2157_vm1, %v2156_v6 }
 0xde3   :  { %1997 = vmatprep.subr.bf16.mxu0 %v2156_v6 }
 0xde5   :  { %1992 = vmatpush3.bf16.msra.mxu1 %v2235_v5 }
 0xde6   :  { %2005 = vmatprep.subr.bf16.mxu1 %v2156_v6 }
 0xeaf   :  { %v1213_v18 = vpop.f32.mrb[24].mxu0 }
 0xeb0   :  { %v1219_v19 = vadd.f32 %v1213_v18, %v1171_v17  ;;  %v1971_v20 = vpop.f32.mrb[25].mxu0 }
 0xeb1   :  { %v1216_v22 = vpop.f32.mrb[26].mxu0 }
 0xeb2   :  { %2100 = vtanh.f32 %v1219_v19  ;;  %v1972_v23 = vpop.f32.mrb[27].mxu0  ;;  %v1798_v33 = vmul.f32 -1.442695, %v1219_v19 }
 0xeb3   :  { %v1291_v26 = vpop.f32.mrb[24].mxu1 }
 0xeb4   :  { %v1297_v27 = vadd.f32 %v1291_v26, %v1249_v25  ;;  %v1979_v28 = vpop.f32.mrb[25].mxu1 }
 0xeb5   :  { %v1294_v29 = vpop.f32.mrb[26].mxu1 }
 0xeb6   :  { %2102 = vtanh.f32 %v1297_v27  ;;  %v1980_v30 = vpop.f32.mrb[27].mxu1  ;;  %v1800_v35 = vmul.f32 -1.442695, %v1297_v27 }
 0xeb7   :  { %2104 = vpow2.f32 %v1798_v33 }
 0xeb8   :  { %2106 = vpow2.f32 %v1800_v35 }
 0xebc   :  { %v2101_v31 = vpop.eup %2100 }
 0xebd   :  { %1229 = vrot.lane.b32.xlu0 %v2101_v31, %s2158_s0 }
 0xec0   :  { %v2103_v32 = vpop.eup %2102 }
 0xec1   :  { %1307 = vrot.lane.b32.xlu1 %v2103_v32, %s2158_s0  ;;  %v2105_v36 = vpop.eup %2104 }
 0xec2   :  { %v1223_v38 = vadd.f32 1.0, %v2105_v36  ;;  %v2107_v39 = vpop.eup %2106 }
 0xec3   :  { %v1301_v40 = vadd.f32 1.0, %v2107_v39 }
 0xec4   :  { %2108 = vrcp.f32 %v1223_v38 }
 0xec5   :  { %2110 = vrcp.f32 %v1301_v40 }
 0xece   :  { %v2109_v41 = vpop.eup %2108 }
 0xecf   :  { %v2111_v44 = vpop.eup %2110  ;;  %v1227_v47 = vmul.f32 %v2109_v41, %v2448_v60 }
 0xed0   :  { %v1305_v51 = vmul.f32 %v2111_v44, %v2452_v63 }
 0xf2f   :  { %v1230_v42 = vpop.permute.xlu0 %1229 }
 0xf30   :  { %v1232_v43 = vmul.f32 %v2109_v41, %v1230_v42 }
 0xf32   :  { %1234 = vrot.lane.b32.xlu0 %v1232_v43, %s2158_s0 }
 0xf33   :  { %v1308_v45 = vpop.permute.xlu1 %1307 }
 0xf34   :  { %v1310_v46 = vmul.f32 %v2111_v44, %v1308_v45 }
 0xf36   :  { %1312 = vrot.lane.b32.xlu1 %v1310_v46, %s2158_s0 }
 0xfa4   :  { %v1235_v48 = vpop.permute.xlu0 %1234 }
 0xfa5   :  { %v2486_v50 = vadd.f32 %v1235_v48, %v1227_v47 }
 0xfa7   :  { %2112 = vtanh.f32 %v2486_v50 }
 0xfa8   :  { %v1313_v53 = vpop.permute.xlu1 %1312 }
 0xfa9   :  { %v2490_v54 = vadd.f32 %v1313_v53, %v1305_v51  ;;  %v1483_v53 = vld [vmem:[#allocation11 + $0xe] sm:$0x3] }
 0xfab   :  { %2114 = vtanh.f32 %v2490_v54 }
 0xfb1   :  { %v2113_v55 = vpop.eup %2112 }
 0xfb2   :  { %1240 = vrot.lane.b32.xlu0 %v2113_v55, %s2158_s0 }
 0xfb5   :  { %v2115_v56 = vpop.eup %2114 }
 0xfb6   :  { %1318 = vrot.lane.b32.xlu1 %v2115_v56, %s2158_s0 }
0x1024   :  { %v1241_v57 = vpop.permute.xlu0 %1240 }
0x1025   :  { %v2495_v58 = vmul.f32 %v2109_v41, %v1241_v57 }
0x1027   :  { %v1328_v59 = vpack.c.bf16 %v2495_v58, %v2495_v58 }
0x1028   :  { %v1319_v60 = vpop.permute.xlu1 %1318 }
0x1029   :  { %v2499_v61 = vmul.f32 %v2111_v44, %v1319_v60  ;;  %1330 = vrot.lane.b32.xlu0 %v1328_v59, %s2159_s4  ;;  %v1561_v60 = vld [vmem:[#allocation12] sm:$0x3] }
0x102b   :  { %v1406_v62 = vpack.c.bf16 %v2499_v61, %v2499_v61 }
0x102d   :  { %1408 = vrot.lane.b32.xlu1 %v1406_v62, %s2159_s4 }
0x109b   :  { %v1331_v63 = vpop.permute.xlu0 %1330 }
0x109c   :  { %1986 = vmatmul.mubr.msk.bf16.vlgmr.msra.gmra.mrb[28].mxu0 %vm389_vm3, %v1331_v63 }
0x109d   :  { %1998 = vmatpush3.bf16.msra.mxu0 %v2217_v1  ;;  %2001 = vmatprep.mubr.msk.bf16.mxu0 %vm2157_vm1, %v2156_v6  ;;  %v1327_v1 = vld [vmem:[#allocation11 + $0xc] sm:$0x3] }
0x109e   :  { %1999 = vmatprep.subr.bf16.mxu0 %v2156_v6 }
0x109f   :  { %v1409_v0 = vpop.permute.xlu1 %1408 }
0x10a0   :  { %1994 = vmatmul.mubr.msk.bf16.vlgmr.msra.gmra.mrb[28].mxu1 %vm389_vm3, %v1409_v0 }
0x10a1   :  { %2006 = vmatpush3.bf16.msra.mxu1 %v2230_v4  ;;  %2000 = vmatpush3.bf16.msra.mxu0 %v2222_v2 }
0x10a2   :  { %2007 = vmatprep.subr.bf16.mxu1 %v2156_v6  ;;  %2009 = vmatprep.mubr.msk.bf16.mxu1 %vm2157_vm1, %v2156_v6 }
0x10a5   :  { %2008 = vmatpush3.bf16.msra.mxu1 %v2235_v5 }
0x116f   :  { %v1369_v3 = vpop.f32.mrb[28].mxu0 }
0x1170   :  { %v1375_v8 = vadd.f32 %v1369_v3, %v1327_v1  ;;  %v1987_v11 = vpop.f32.mrb[29].mxu0 }
0x1171   :  { %v1372_v12 = vpop.f32.mrb[30].mxu0 }
0x1172   :  { %2116 = vtanh.f32 %v1375_v8  ;;  %v1988_v14 = vpop.f32.mrb[31].mxu0  ;;  %v1802_v5 = vmul.f32 -1.442695, %v1375_v8 }
0x1173   :  { %v1447_v16 = vpop.f32.mrb[28].mxu1 }
0x1174   :  { %v1453_v17 = vadd.f32 %v1447_v16, %v1405_v15  ;;  %v1995_v4 = vpop.f32.mrb[29].mxu1 }
0x1175   :  { %v1450_v18 = vpop.f32.mrb[30].mxu1 }
0x1176   :  { %2118 = vtanh.f32 %v1453_v17  ;;  %v1996_v2 = vpop.f32.mrb[31].mxu1  ;;  %v1804_v20 = vmul.f32 -1.442695, %v1453_v17 }
0x1177   :  { %2120 = vpow2.f32 %v1802_v5 }
0x1178   :  { %2122 = vpow2.f32 %v1804_v20 }
0x117c   :  { %v2117_v19 = vpop.eup %2116 }
0x117d   :  { %1385 = vrot.lane.b32.xlu0 %v2117_v19, %s2158_s0 }
0x1180   :  { %v2119_v6 = vpop.eup %2118 }
0x1181   :  { %1463 = vrot.lane.b32.xlu1 %v2119_v6, %s2158_s0  ;;  %v2121_v22 = vpop.eup %2120 }
0x1182   :  { %v1379_v23 = vadd.f32 1.0, %v2121_v22  ;;  %v2123_v25 = vpop.eup %2122 }
0x1183   :  { %v1457_v26 = vadd.f32 1.0, %v2123_v25 }
0x1184   :  { %2124 = vrcp.f32 %v1379_v23 }
0x1185   :  { %2126 = vrcp.f32 %v1457_v26 }
0x118e   :  { %v2125_v27 = vpop.eup %2124 }
0x118f   :  { %v2127_v30 = vpop.eup %2126  ;;  %v1383_v33 = vmul.f32 %v2125_v27, %v2486_v50 }
0x1190   :  { %v1461_v38 = vmul.f32 %v2127_v30, %v2490_v54 }
0x11ef   :  { %v1386_v28 = vpop.permute.xlu0 %1385 }
0x11f0   :  { %v1388_v29 = vmul.f32 %v2125_v27, %v1386_v28 }
0x11f2   :  { %1390 = vrot.lane.b32.xlu0 %v1388_v29, %s2158_s0 }
0x11f3   :  { %v1464_v31 = vpop.permute.xlu1 %1463 }
0x11f4   :  { %v1466_v32 = vmul.f32 %v2127_v30, %v1464_v31 }
0x11f6   :  { %1468 = vrot.lane.b32.xlu1 %v1466_v32, %s2158_s0 }
0x1264   :  { %v1391_v35 = vpop.permute.xlu0 %1390 }
0x1265   :  { %v1393_v36 = vadd.f32 %v1391_v35, %v1383_v33 }
0x1267   :  { %2128 = vtanh.f32 %v1393_v36 }
0x1268   :  { %v1469_v39 = vpop.permute.xlu1 %1468 }
0x1269   :  { %v1471_v40 = vadd.f32 %v1469_v39, %v1461_v38 }
0x126b   :  { %2130 = vtanh.f32 %v1471_v40 }
0x1271   :  { %v2129_v41 = vpop.eup %2128 }
0x1272   :  { %1396 = vrot.lane.b32.xlu0 %v2129_v41, %s2158_s0 }
0x1275   :  { %v2131_v42 = vpop.eup %2130 }
0x1276   :  { %1474 = vrot.lane.b32.xlu1 %v2131_v42, %s2158_s0 }
0x12e4   :  { %v1397_v43 = vpop.permute.xlu0 %1396 }
0x12e5   :  { %v2525_v44 = vmul.f32 %v2125_v27, %v1397_v43 }
0x12e7   :  { %v1484_v45 = vpack.c.bf16 %v2525_v44, %v2525_v44 }
0x12e8   :  { %v1475_v46 = vpop.permute.xlu1 %1474 }
0x12e9   :  { %v2529_v47 = vmul.f32 %v2127_v30, %v1475_v46  ;;  %1486 = vrot.lane.b32.xlu0 %v1484_v45, %s2159_s4 }
0x12eb   :  { %v1562_v48 = vpack.c.bf16 %v2529_v47, %v2529_v47 }
0x12ed   :  { %1564 = vrot.lane.b32.xlu1 %v1562_v48, %s2159_s4 }
0x135b   :  { %v1487_v50 = vpop.permute.xlu0 %1486 }
0x135c   :  { %2002 = vmatmul.mubr.msk.bf16.vlgmr.msra.gmra.mrb[32].mxu0 %vm389_vm3, %v1487_v50 }
0x135f   :  { %v1565_v51 = vpop.permute.xlu1 %1564 }
0x1360   :  { %2010 = vmatmul.mubr.msk.bf16.vlgmr.msra.gmra.mrb[32].mxu1 %vm389_vm3, %v1565_v51 }
0x142f   :  { %v1525_v54 = vpop.f32.mrb[32].mxu0 }
0x1430   :  { %v1531_v55 = vadd.f32 %v1525_v54, %v1483_v53  ;;  %v2003_v56 = vpop.f32.mrb[33].mxu0 }
0x1431   :  { %v1528_v57 = vpop.f32.mrb[34].mxu0 }
0x1432   :  { %2132 = vtanh.f32 %v1531_v55  ;;  %v2004_v59 = vpop.f32.mrb[35].mxu0  ;;  %v1806_v12 = vmul.f32 -1.442695, %v1531_v55 }
0x1433   :  { %v1603_v62 = vpop.f32.mrb[32].mxu1 }
0x1434   :  { %v1609_v63 = vadd.f32 %v1603_v62, %v1561_v60  ;;  %v2011_v0 = vpop.f32.mrb[33].mxu1 }
0x1435   :  { %v1606_v1 = vpop.f32.mrb[34].mxu1 }
0x1436   :  { %2134 = vtanh.f32 %v1609_v63  ;;  %v2012_v3 = vpop.f32.mrb[35].mxu1  ;;  %v1808_v14 = vmul.f32 -1.442695, %v1609_v63 }
0x1437   :  { %2136 = vpow2.f32 %v1806_v12 }
0x1438   :  { %2138 = vpow2.f32 %v1808_v14 }
0x143c   :  { %v2133_v8 = vpop.eup %2132 }
0x143d   :  { %1541 = vrot.lane.b32.xlu0 %v2133_v8, %s2158_s0 }
0x1440   :  { %v2135_v11 = vpop.eup %2134 }
0x1441   :  { %1619 = vrot.lane.b32.xlu1 %v2135_v11, %s2158_s0  ;;  %v2137_v15 = vpop.eup %2136 }
0x1442   :  { %v1535_v16 = vadd.f32 1.0, %v2137_v15  ;;  %v2139_v17 = vpop.eup %2138 }
0x1443   :  { %v1613_v4 = vadd.f32 1.0, %v2139_v17 }
0x1444   :  { %2140 = vrcp.f32 %v1535_v16 }
0x1445   :  { %2142 = vrcp.f32 %v1613_v4 }
0x144e   :  { %v2141_v18 = vpop.eup %2140 }
0x144f   :  { %v2143_v6 = vpop.eup %2142  ;;  %v1539_v22 = vmul.f32 %v2141_v18, %v1393_v36 }
0x1450   :  { %v1617_v26 = vmul.f32 %v2143_v6, %v1471_v40 }
0x14af   :  { %v1542_v2 = vpop.permute.xlu0 %1541 }
0x14b0   :  { %v1544_v19 = vmul.f32 %v2141_v18, %v1542_v2 }
0x14b2   :  { %1546 = vrot.lane.b32.xlu0 %v1544_v19, %s2158_s0 }
0x14b3   :  { %v1620_v5 = vpop.permute.xlu1 %1619 }
0x14b4   :  { %v1622_v20 = vmul.f32 %v2143_v6, %v1620_v5 }
0x14b6   :  { %1624 = vrot.lane.b32.xlu1 %v1622_v20, %s2158_s0 }
0x1524   :  { %v1547_v23 = vpop.permute.xlu0 %1546 }
0x1525   :  { %v1549_v25 = vadd.f32 %v1547_v23, %v1539_v22 }
0x1527   :  { %2144 = vtanh.f32 %v1549_v25 }
0x1528   :  { %v1625_v27 = vpop.permute.xlu1 %1624 }
0x1529   :  { %v1627_v28 = vadd.f32 %v1625_v27, %v1617_v26 }
0x152b   :  { %2146 = vtanh.f32 %v1627_v28 }
0x1531   :  { %v2145_v29 = vpop.eup %2144 }
0x1532   :  { %1552 = vrot.lane.b32.xlu0 %v2145_v29, %s2158_s0 }
0x1535   :  { %v2147_v30 = vpop.eup %2146 }
0x1536   :  { %1630 = vrot.lane.b32.xlu1 %v2147_v30, %s2158_s0  ;;  %463 = vrot.lane.b32.xlu0 %v2305_v7, %s2159_s4 }
0x153a   :  { %543 = vrot.lane.b32.xlu1 %v2309_v10, %s2159_s4  ;;  %621 = vrot.lane.b32.xlu0 %v2343_v49, %s2159_s4 }
0x153e   :  { %699 = vrot.lane.b32.xlu1 %v2347_v52, %s2159_s4  ;;  %777 = vrot.lane.b32.xlu0 %v2381_v34, %s2159_s4 }
0x1542   :  { %855 = vrot.lane.b32.xlu1 %v2385_v37, %s2159_s4  ;;  %933 = vrot.lane.b32.xlu0 %v2419_v21, %s2159_s4 }
0x1546   :  { %1011 = vrot.lane.b32.xlu1 %v2423_v24, %s2159_s4  ;;  %1089 = vrot.lane.b32.xlu0 %v2457_v9, %s2159_s4 }
0x154a   :  { %1167 = vrot.lane.b32.xlu1 %v2461_v13, %s2159_s4  ;;  %1245 = vrot.lane.b32.xlu0 %v2495_v58, %s2159_s4 }
0x154e   :  { %1323 = vrot.lane.b32.xlu1 %v2499_v61, %s2159_s4  ;;  %1401 = vrot.lane.b32.xlu0 %v2525_v44, %s2159_s4 }
0x1552   :  { %1479 = vrot.lane.b32.xlu1 %v2529_v47, %s2159_s4 }
0x15a4   :  { %v1553_v7 = vpop.permute.xlu0 %1552 }
0x15a5   :  { %v1555_v10 = vmul.f32 %v2141_v18, %v1553_v7 }
0x15a7   :  { %1557 = vrot.lane.b32.xlu0 %v1555_v10, %s2159_s4 }
0x15a8   :  { %v1631_v49 = vpop.permute.xlu1 %1630  ;;  %v464_v52 = vpop.permute.xlu0 %463 }
0x15a9   :  { %v1633_v34 = vmul.f32 %v2143_v6, %v1631_v49  ;;  %467 = vst.msk [vmem:[#allocation13] sm:$0x3] %vm251_vm0, %v464_v52 }
0x15ab   :  { %1635 = vrot.lane.b32.xlu1 %v1633_v34, %s2159_s4  ;;  %1641 = vrot.lane.b32.xlu0 %v1549_v25, %s2160_s7 }
0x15ac   :  { %v544_v37 = vpop.permute.xlu1 %543  ;;  %v622_v21 = vpop.permute.xlu0 %621 }
0x15ad   :  { %546 = vst.msk [vmem:[#allocation14 + $0xe] sm:$0x3] %vm251_vm0, %v544_v37  ;;  %624 = vst.msk [vmem:[#allocation13 + $0x2] sm:$0x3] %vm251_vm0, %v622_v21 }
0x15af   :  { %1647 = vrot.lane.b32.xlu1 %v1627_v28, %s2160_s7 }
0x15b0   :  { %v700_v24 = vpop.permute.xlu1 %699  ;;  %v778_v9 = vpop.permute.xlu0 %777 }
0x15b1   :  { %702 = vst.msk [vmem:[#allocation14 + $0xc] sm:$0x3] %vm251_vm0, %v700_v24  ;;  %780 = vst.msk [vmem:[#allocation13 + $0x4] sm:$0x3] %vm251_vm0, %v778_v9 }
0x15b4   :  { %v856_v13 = vpop.permute.xlu1 %855  ;;  %v934_v58 = vpop.permute.xlu0 %933 }
0x15b5   :  { %858 = vst.msk [vmem:[#allocation14 + $0xa] sm:$0x3] %vm251_vm0, %v856_v13  ;;  %936 = vst.msk [vmem:[#allocation13 + $0x6] sm:$0x3] %vm251_vm0, %v934_v58 }
0x15b8   :  { %v1012_v61 = vpop.permute.xlu1 %1011  ;;  %v1090_v31 = vpop.permute.xlu0 %1089 }
0x15b9   :  { %1014 = vst.msk [vmem:[#allocation14 + $0x8] sm:$0x3] %vm251_vm0, %v1012_v61  ;;  %1092 = vst.msk [vmem:[#allocation13 + $0x8] sm:$0x3] %vm251_vm0, %v1090_v31 }
0x15bc   :  { %v1651_v32 = vld [vmem:[#allocation13] sm:$0xff]  ;;  %v1168_v33 = vpop.permute.xlu1 %1167  ;;  %v1246_v35 = vpop.permute.xlu0 %1245 }
0x15bd   :  { %v1817_v36 = vpack.c.bf16 %v1651_v32, %v1651_v32  ;;  %1170 = vst.msk [vmem:[#allocation14 + $0x6] sm:$0x3] %vm251_vm0, %v1168_v33  ;;  %1248 = vst.msk [vmem:[#allocation13 + $0xa] sm:$0x3] %vm251_vm0, %v1246_v35 }
0x15bf   :  { %1662 = vst.msk [vmem:[%s2617_s8] sm:$0xf] %vm1661_vm4, %v1817_v36 }
0x15c0   :  { %v1665_v38 = vld [vmem:[#allocation14 + $0x8] sm:$0xff]  ;;  %v1324_v39 = vpop.permute.xlu1 %1323  ;;  %v1402_v40 = vpop.permute.xlu0 %1401 }
0x15c1   :  { %v1820_v41 = vpack.c.bf16 %v1665_v38, %v1665_v38  ;;  %1326 = vst.msk [vmem:[#allocation14 + $0x4] sm:$0x3] %vm251_vm0, %v1324_v39  ;;  %1404 = vst.msk [vmem:[#allocation13 + $0xc] sm:$0x3] %vm251_vm0, %v1402_v40 }
0x15c3   :  { %1675 = vst.msk [vmem:[%s2618_s9 + $0x4] sm:$0xf] %vm1661_vm4, %v1820_v41 }
0x15c4   :  { %v1480_v42 = vpop.permute.xlu1 %1479 }
0x15c5   :  { %1482 = vst.msk [vmem:[#allocation14 + $0x2] sm:$0x3] %vm251_vm0, %v1480_v42 }
0x1619   :  { %v1558_v43 = vpop.permute.xlu0 %1557 }
0x161a   :  { %1560 = vst.msk [vmem:[#allocation13 + $0xe] sm:$0x3] %vm251_vm0, %v1558_v43  ;;  %1639 = vst.msk [vmem:[#allocation7] sm:$0x3] %vm251_vm0, %v1558_v43 }
0x161d   :  { %v1636_v44 = vpop.permute.xlu1 %1635  ;;  %v1642_v45 = vpop.permute.xlu0 %1641 }
0x161e   :  { %1638 = vst.msk [vmem:[#allocation14] sm:$0x3] %vm251_vm0, %v1636_v44  ;;  %1645 = vst.msk [vmem:[#allocation9] sm:$0x3] %vm251_vm0, %v1636_v44 }
0x161f   :  { %1644 = vst.msk [vmem:[#allocation8] sm:$0x3] %vm251_vm0, %v1642_v45 }
0x1621   :  { %v1652_v46 = vld [vmem:[#allocation13 + $0x8] sm:$0xff]  ;;  %v1648_v47 = vpop.permute.xlu1 %1647 }
0x1622   :  { %v1818_v48 = vpack.c.bf16 %v1652_v46, %v1652_v46  ;;  %1650 = vst.msk [vmem:[#allocation10] sm:$0x3] %vm251_vm0, %v1648_v47 }
0x1624   :  { %1663 = vst.msk [vmem:[%s2617_s8 + $0x4] sm:$0xf] %vm1661_vm4, %v1818_v48 }
0x1625   :  { %v1664_v50 = vld [vmem:[#allocation14] sm:$0xff] }
0x1626   :  { %v1819_v51 = vpack.c.bf16 %v1664_v50, %v1664_v50 }
0x1628   :  { %1674 = vst.msk [vmem:[%s2618_s9] sm:$0xf] %vm1661_vm4, %v1819_v51 }
0x1629   :  { %1698 = vsyncmov [#allocation6] }
0x162c   :  { %s1699_s11 = vpop.sfrf %1698 }
0x162d   :  { %p1813_p0 = scmp.ne.s32.totalorder %s1699_s11, 0 }
0x162f   :  { %1703 = shalt.err (%p1813_p0)  }
0x1630   :  { %1705 = vsyncmov [#allocation6 + $0x1] }
0x1633   :  { %s1706_s12 = vpop.sfrf %1705 }
0x1634   :  { %p1814_p1 = scmp.ne.s32.totalorder %s1706_s12, 0 }
0x1636   :  { %1710 = shalt.err (%p1814_p1)  }
0x1637   :  { %1712 = vsyncmov [#allocation6 + $0x2] }
0x163a   :  { %s1713_s13 = vpop.sfrf %1712 }
0x163b   :  { %p1815_p2 = scmp.ne.s32.totalorder %s1713_s13, 0 }
0x163d   :  { %1717 = shalt.err (%p1815_p2)  }
0x163e   :  { %1719 = vsyncmov [#allocation6 + $0x3] }
0x1641   :  { %s1720_s8 = vpop.sfrf %1719 }
0x1642   :  { %p1816_p3 = scmp.ne.s32.totalorder %s1720_s8, 0 }
0x1644   :  { %1724 = shalt.err (%p1816_p3)  }

// kernel: blstmp_forward.6
= control target key start
LH: loop header
LB: loop body
LE: loop exit
PB: predicated region body
PF: predicated region fallthrough
CT: control target
= control target key end

     0   :  { %s2628_s0 = inlined_call_operand.vmem [shape: bf16[16,32], index: 0, kind: input, shape index: {}, may-alias: {0,1}]   ;;  %s2629_s1 = inlined_call_operand.vmem [shape: bf16[16,32], index: 1, kind: input, shape index: {}, may-alias: {0,1}]   ;;  %s2630_s2 = inlined_call_operand.vmem [shape: bf16[32,128], index: 2, kind: input, shape index: {}]   ;;  %s2631_s3 = inlined_call_operand.vmem [shape: bf16[32,128], index: 3, kind: input, shape index: {}]   ;;  %s2632_s4 = inlined_call_operand.vmem [shape: f32[1,128], index: 4, kind: input, shape index: {}]   ;;  %s2633_s5 = inlined_call_operand.vmem [shape: bf16[32,128], index: 5, kind: input, shape index: {}]   ;;  %s2634_s6 = inlined_call_operand.vmem [shape: bf16[32,128], index: 6, kind: input, shape index: {}]   ;;  %s2635_s7 = inlined_call_operand.vmem [shape: f32[1,128], index: 7, kind: input, shape index: {}]   ;;  %s2636_s8 = inlined_call_operand.vmem [shape: bf16[16,32], index: 8, kind: output, shape index: {0}]   ;;  %s2637_s9 = inlined_call_operand.vmem [shape: bf16[16,32], index: 9, kind: output, shape index: {1}]  }
   0x1   :  { %v96_v0 = vld [vmem:[%s2630_s2] sm:$0xff]  ;;  %v98_v1 = vld [vmem:[%s2630_s2 + $0x8] sm:$0xff] }
   0x2   :  { %107 = vsyncadd [#allocation6], 256  ;;  %v2229_v2 = vld [vmem:[%s2631_s3] sm:$0xff]  ;;  %v2234_v3 = vld [vmem:[%s2631_s3 + $0x8] sm:$0xff] }
   0x3   :  { %152 = vsyncadd [#allocation6 + $0x1], 256  ;;  %v186_v4 = vld [vmem:[%s2633_s5] sm:$0xff]  ;;  %v188_v5 = vld [vmem:[%s2633_s5 + $0x8] sm:$0xff] }
   0x4   :  { %197 = vsyncadd [#allocation6 + $0x2], 256  ;;  %v2245_v6 = vld [vmem:[%s2634_s6] sm:$0xff]  ;;  %v2250_v7 = vld [vmem:[%s2634_s6 + $0x8] sm:$0xff] }
   0x5   :  { %242 = vsyncadd [#allocation6 + $0x3], 256 }
   0x6   :  { %2157 = dma.done.wait [#allocation6], 256 }
   0x7   :  { %2158 = vsyncadd [#allocation6], 4294967040 }
   0x8   :  { %2159 = dma.done.wait [#allocation6 + $0x1], 256 }
   0x9   :  { %2160 = vsyncadd [#allocation6 + $0x1], 4294967040 }
   0xa   :  { %2161 = dma.done.wait [#allocation6 + $0x2], 256 }
   0xb   :  { %2162 = vsyncadd [#allocation6 + $0x2], 4294967040 }
   0xc   :  { %2163 = dma.done.wait [#allocation6 + $0x3], 256 }
   0xd   :  { %2164 = vsyncadd [#allocation6 + $0x3], 4294967040  ;;  %vm253_vm0 = vcmask 254976   ;;  %v2165_v8 = vmov 0.0   ;;  %vm2166_vm1 = vmmov 0   ;;  %vm274_vm2 = vcmask 261120  }
   0xe   :  { %1878 = vmatprep.subr.bf16.mxu0 %v2165_v8  ;;  %1886 = vmatprep.subr.bf16.mxu1 %v2165_v8  ;;  %254 = vst.msk [vmem:[#allocation7] sm:$0x3] %vm253_vm0, %v2165_v8  ;;  %255 = vst.msk [vmem:[#allocation8] sm:$0x3] %vm253_vm0, %v2165_v8  ;;  %v2027_v9 = vld [vmem:[%s2628_s0] sm:$0xff]   ;;  %s2167_s0 = smov 32  }
   0xf   :  { %256 = vst.msk [vmem:[#allocation9] sm:$0x3] %vm253_vm0, %v2165_v8  ;;  %257 = vst.msk [vmem:[#allocation10] sm:$0x3] %vm253_vm0, %v2165_v8  ;;  %1879 = vmatpush3.bf16.msra.mxu0 %v96_v0  ;;  %1887 = vmatpush3.bf16.msra.mxu1 %v186_v4  ;;  %v2028_v10 = vld [vmem:[%s2629_s1] sm:$0xff]   ;;  %vm1664_vm3 = vcmask 257024  }
  0x10   :  { %1880 = vmatprep.subr.bf16.mxu0 %v2165_v8  ;;  %1888 = vmatprep.subr.bf16.mxu1 %v2165_v8  ;;  %v1774_v17 = vld [vmem:[%s2632_s4] ss:$0 sm:$0xff]  ;;  %s2168_s4 = smov 64  }
  0x11   :  { %1882 = vmatprep.mubr.msk.bf16.mxu0 %vm2166_vm1, %v2165_v8  ;;  %1890 = vmatprep.mubr.msk.bf16.mxu1 %vm2166_vm1, %v2165_v8  ;;  %v1777_v18 = vld [vmem:[%s2635_s7] ss:$0 sm:$0xff]  ;;  %s2169_s7 = smov 96  }
  0x13   :  { %1881 = vmatpush3.bf16.msra.mxu0 %v98_v1  ;;  %1889 = vmatpush3.bf16.msra.mxu1 %v188_v5 }
  0x14   :  { %1894 = vmatprep.subr.bf16.mxu0 %v2165_v8  ;;  %1902 = vmatprep.subr.bf16.mxu1 %v2165_v8 }
  0x15   :  { %v387_v11 = vld [vmem:[#allocation7] sm:$0x3]  ;;  %v388_v12 = vld [vmem:[#allocation8] sm:$0x3] }
  0x16   :  { %1883 = vmatmul.mubr.msk.bf16.vlgmr.msra.gmra.mrb[0].mxu0 %vm274_vm2, %v2027_v9  ;;  %1891 = vmatmul.mubr.msk.bf16.vlgmr.msra.gmra.mrb[0].mxu1 %vm274_vm2, %v2028_v10  ;;  %v389_v13 = vld [vmem:[#allocation9] sm:$0x3]  ;;  %v392_v14 = vpack.c.bf16 %v387_v11, %v387_v11  ;;  %v390_v16 = vld [vmem:[#allocation10] sm:$0x3] }
  0x17   :  { %1895 = vmatpush3.bf16.msra.mxu0 %v2229_v2  ;;  %1903 = vmatpush3.bf16.msra.mxu1 %v2245_v6  ;;  %v472_v15 = vpack.c.bf16 %v389_v13, %v389_v13 }
  0x18   :  { %1896 = vmatprep.subr.bf16.mxu0 %v2165_v8  ;;  %1898 = vmatprep.mubr.msk.bf16.mxu0 %vm2166_vm1, %v2165_v8 }
  0x19   :  { %1904 = vmatprep.subr.bf16.mxu1 %v2165_v8  ;;  %1906 = vmatprep.mubr.msk.bf16.mxu1 %vm2166_vm1, %v2165_v8 }
  0x1a   :  { %445 = vrot.lane.b32.xlu1 %v388_v12, %s2167_s0 }
  0x1b   :  { %1897 = vmatpush3.bf16.msra.mxu0 %v2234_v3  ;;  %1905 = vmatpush3.bf16.msra.mxu1 %v2250_v7 }
  0x1c   :  { %1910 = vmatprep.subr.bf16.mxu0 %v2165_v8  ;;  %1918 = vmatprep.subr.bf16.mxu1 %v2165_v8 }
  0x1e   :  { %1899 = vmatmul.mubr.msk.bf16.vlgmr.msra.gmra.mrb[4].mxu0 %vm274_vm2, %v392_v14  ;;  %525 = vrot.lane.b32.xlu1 %v390_v16, %s2167_s0 }
  0x1f   :  { %1907 = vmatmul.mubr.msk.bf16.vlgmr.msra.gmra.mrb[4].mxu1 %vm274_vm2, %v472_v15  ;;  %1911 = vmatpush3.bf16.msra.mxu0 %v2229_v2 }
  0x20   :  { %1912 = vmatprep.subr.bf16.mxu0 %v2165_v8  ;;  %1919 = vmatpush3.bf16.msra.mxu1 %v2245_v6 }
  0x21   :  { %1914 = vmatprep.mubr.msk.bf16.mxu0 %vm2166_vm1, %v2165_v8  ;;  %1920 = vmatprep.subr.bf16.mxu1 %v2165_v8 }
  0x22   :  { %1922 = vmatprep.mubr.msk.bf16.mxu1 %vm2166_vm1, %v2165_v8 }
  0x23   :  { %1913 = vmatpush3.bf16.msra.mxu0 %v2234_v3 }
  0x24   :  { %1921 = vmatpush3.bf16.msra.mxu1 %v2250_v7  ;;  %1926 = vmatprep.subr.bf16.mxu0 %v2165_v8 }
  0x25   :  { %1934 = vmatprep.subr.bf16.mxu1 %v2165_v8 }
  0x8c   :  { %v446_v57 = vpop.permute.xlu1 %445 }
  0x90   :  { %v526_v59 = vpop.permute.xlu1 %525 }
  0xe9   :  { %v312_v19 = vpop.f32.mrb[0].mxu0  ;;  %v374_v21 = vpop.f32.mrb[0].mxu1 }
  0xea   :  { %v313_v20 = vadd.f32 %v1774_v17, %v312_v19  ;;  %v1884_v22 = vpop.f32.mrb[1].mxu0  ;;  %v375_v23 = vadd.f32 %v1777_v18, %v374_v21  ;;  %v1892_v24 = vpop.f32.mrb[1].mxu1 }
  0xeb   :  { %v315_v25 = vpop.f32.mrb[2].mxu0  ;;  %v377_v27 = vpop.f32.mrb[2].mxu1 }
  0xec   :  { %319 = vst [vmem:[#allocation11] sm:$0xff] %v313_v20  ;;  %v316_v26 = vadd.f32 %v1774_v17, %v315_v25  ;;  %v1885_v28 = vpop.f32.mrb[3].mxu0  ;;  %381 = vst [vmem:[#allocation12] sm:$0xff] %v375_v23  ;;  %v378_v29 = vadd.f32 %v1777_v18, %v377_v27  ;;  %v1893_v30 = vpop.f32.mrb[3].mxu1 }
  0xee   :  { %320 = vst [vmem:[#allocation11 + $0x8] sm:$0xff] %v316_v26  ;;  %382 = vst [vmem:[#allocation12 + $0x8] sm:$0xff] %v378_v29 }
  0xf1   :  { %v430_v31 = vpop.f32.mrb[4].mxu0 }
  0xf2   :  { %v1900_v32 = vpop.f32.mrb[5].mxu0  ;;  %v510_v33 = vpop.f32.mrb[4].mxu1 }
  0xf3   :  { %v391_v34 = vld [vmem:[#allocation11] sm:$0x3]  ;;  %v433_v35 = vpop.f32.mrb[6].mxu0  ;;  %v1908_v36 = vpop.f32.mrb[5].mxu1  ;;  %v550_v16 = vld [vmem:[#allocation11 + $0x2] sm:$0x3] }
  0xf4   :  { %v436_v37 = vadd.f32 %v430_v31, %v391_v34  ;;  %v1901_v38 = vpop.f32.mrb[7].mxu0  ;;  %v513_v39 = vpop.f32.mrb[6].mxu1 }
  0xf5   :  { %v1909_v40 = vpop.f32.mrb[7].mxu1  ;;  %v471_v41 = vld [vmem:[#allocation12 + $0xe] sm:$0x3]  ;;  %v628_v22 = vld [vmem:[#allocation12 + $0xc] sm:$0x3] }
  0xf6   :  { %2029 = vtanh.f32 %v436_v37  ;;  %v516_v42 = vadd.f32 %v510_v33, %v471_v41  ;;  %v1781_v45 = vmul.f32 -1.442695, %v436_v37 }
  0xf8   :  { %2031 = vtanh.f32 %v516_v42  ;;  %v1783_v46 = vmul.f32 -1.442695, %v516_v42 }
  0xf9   :  { %2033 = vpow2.f32 %v1781_v45 }
  0xfa   :  { %2035 = vpow2.f32 %v1783_v46 }
 0x100   :  { %v2030_v43 = vpop.eup %2029 }
 0x101   :  { %450 = vrot.lane.b32.xlu0 %v2030_v43, %s2167_s0 }
 0x102   :  { %v2032_v44 = vpop.eup %2031 }
 0x103   :  { %v2034_v47 = vpop.eup %2033 }
 0x104   :  { %v440_v48 = vadd.f32 1.0, %v2034_v47  ;;  %v2036_v49 = vpop.eup %2035 }
 0x105   :  { %530 = vrot.lane.b32.xlu0 %v2032_v44, %s2167_s0  ;;  %v520_v50 = vadd.f32 1.0, %v2036_v49 }
 0x106   :  { %2037 = vrcp.f32 %v440_v48 }
 0x107   :  { %2039 = vrcp.f32 %v520_v50 }
 0x110   :  { %v2038_v51 = vpop.eup %2037 }
 0x111   :  { %v2040_v54 = vpop.eup %2039  ;;  %v448_v58 = vmul.f32 %v2038_v51, %v446_v57 }
 0x112   :  { %v528_v62 = vmul.f32 %v2040_v54, %v526_v59 }
 0x173   :  { %v451_v52 = vpop.permute.xlu0 %450 }
 0x174   :  { %v453_v53 = vmul.f32 %v2038_v51, %v451_v52 }
 0x176   :  { %455 = vrot.lane.b32.xlu0 %v453_v53, %s2167_s0 }
 0x177   :  { %v531_v55 = vpop.permute.xlu0 %530 }
 0x178   :  { %v533_v56 = vmul.f32 %v2040_v54, %v531_v55 }
 0x17a   :  { %535 = vrot.lane.b32.xlu1 %v533_v56, %s2167_s0 }
 0x1e8   :  { %v456_v60 = vpop.permute.xlu0 %455 }
 0x1e9   :  { %v2316_v61 = vadd.f32 %v456_v60, %v448_v58  ;;  %v706_v58 = vld [vmem:[#allocation11 + $0x4] sm:$0x3] }
 0x1eb   :  { %2041 = vtanh.f32 %v2316_v61 }
 0x1ec   :  { %v536_v63 = vpop.permute.xlu1 %535 }
 0x1ed   :  { %v2319_v0 = vadd.f32 %v536_v63, %v528_v62 }
 0x1ef   :  { %2043 = vtanh.f32 %v2319_v0 }
 0x1f5   :  { %v2042_v1 = vpop.eup %2041 }
 0x1f6   :  { %461 = vrot.lane.b32.xlu0 %v2042_v1, %s2167_s0 }
 0x1f9   :  { %v2044_v4 = vpop.eup %2043 }
 0x1fa   :  { %541 = vrot.lane.b32.xlu1 %v2044_v4, %s2167_s0 }
 0x268   :  { %v462_v5 = vpop.permute.xlu0 %461 }
 0x269   :  { %v2324_v9 = vmul.f32 %v2038_v51, %v462_v5 }
 0x26b   :  { %v551_v10 = vpack.c.bf16 %v2324_v9, %v2324_v9 }
 0x26c   :  { %v542_v11 = vpop.permute.xlu1 %541 }
 0x26d   :  { %v2328_v12 = vmul.f32 %v2040_v54, %v542_v11  ;;  %553 = vrot.lane.b32.xlu0 %v551_v10, %s2168_s4 }
 0x26f   :  { %v629_v13 = vpack.c.bf16 %v2328_v12, %v2328_v12 }
 0x271   :  { %631 = vrot.lane.b32.xlu1 %v629_v13, %s2168_s4 }
 0x2df   :  { %v554_v14 = vpop.permute.xlu0 %553 }
 0x2e0   :  { %1915 = vmatmul.mubr.msk.bf16.vlgmr.msra.gmra.mrb[8].mxu0 %vm274_vm2, %v554_v14 }
 0x2e1   :  { %1927 = vmatpush3.bf16.msra.mxu0 %v2229_v2  ;;  %1930 = vmatprep.mubr.msk.bf16.mxu0 %vm2166_vm1, %v2165_v8 }
 0x2e2   :  { %1928 = vmatprep.subr.bf16.mxu0 %v2165_v8 }
 0x2e3   :  { %v632_v15 = vpop.permute.xlu1 %631 }
 0x2e4   :  { %1923 = vmatmul.mubr.msk.bf16.vlgmr.msra.gmra.mrb[8].mxu1 %vm274_vm2, %v632_v15 }
 0x2e5   :  { %1935 = vmatpush3.bf16.msra.mxu1 %v2245_v6  ;;  %1929 = vmatpush3.bf16.msra.mxu0 %v2234_v3 }
 0x2e6   :  { %1936 = vmatprep.subr.bf16.mxu1 %v2165_v8  ;;  %1938 = vmatprep.mubr.msk.bf16.mxu1 %vm2166_vm1, %v2165_v8 }
 0x2e7   :  { %1942 = vmatprep.subr.bf16.mxu0 %v2165_v8 }
 0x2e9   :  { %1937 = vmatpush3.bf16.msra.mxu1 %v2250_v7 }
 0x2ea   :  { %1950 = vmatprep.subr.bf16.mxu1 %v2165_v8 }
 0x3b3   :  { %v592_v17 = vpop.f32.mrb[8].mxu0 }
 0x3b4   :  { %v598_v18 = vadd.f32 %v592_v17, %v550_v16  ;;  %v1916_v19 = vpop.f32.mrb[9].mxu0 }
 0x3b5   :  { %v595_v20 = vpop.f32.mrb[10].mxu0 }
 0x3b6   :  { %2045 = vtanh.f32 %v598_v18  ;;  %v1917_v21 = vpop.f32.mrb[11].mxu0  ;;  %v1785_v30 = vmul.f32 -1.442695, %v598_v18 }
 0x3b7   :  { %v670_v23 = vpop.f32.mrb[8].mxu1 }
 0x3b8   :  { %v676_v24 = vadd.f32 %v670_v23, %v628_v22  ;;  %v1924_v25 = vpop.f32.mrb[9].mxu1 }
 0x3b9   :  { %v673_v26 = vpop.f32.mrb[10].mxu1 }
 0x3ba   :  { %2047 = vtanh.f32 %v676_v24  ;;  %v1925_v27 = vpop.f32.mrb[11].mxu1  ;;  %v1787_v31 = vmul.f32 -1.442695, %v676_v24 }
 0x3bb   :  { %2049 = vpow2.f32 %v1785_v30 }
 0x3bc   :  { %2051 = vpow2.f32 %v1787_v31 }
 0x3c0   :  { %v2046_v28 = vpop.eup %2045 }
 0x3c1   :  { %608 = vrot.lane.b32.xlu0 %v2046_v28, %s2167_s0 }
 0x3c4   :  { %v2048_v29 = vpop.eup %2047 }
 0x3c5   :  { %686 = vrot.lane.b32.xlu1 %v2048_v29, %s2167_s0  ;;  %v2050_v32 = vpop.eup %2049 }
 0x3c6   :  { %v602_v33 = vadd.f32 1.0, %v2050_v32  ;;  %v2052_v34 = vpop.eup %2051 }
 0x3c7   :  { %v680_v35 = vadd.f32 1.0, %v2052_v34 }
 0x3c8   :  { %2053 = vrcp.f32 %v602_v33 }
 0x3c9   :  { %2055 = vrcp.f32 %v680_v35 }
 0x3d2   :  { %v2054_v36 = vpop.eup %2053 }
 0x3d3   :  { %v2056_v39 = vpop.eup %2055  ;;  %v606_v42 = vmul.f32 %v2054_v36, %v2316_v61 }
 0x3d4   :  { %v684_v45 = vmul.f32 %v2056_v39, %v2319_v0  ;;  %v784_v0 = vld [vmem:[#allocation12 + $0xa] sm:$0x3] }
 0x433   :  { %v609_v37 = vpop.permute.xlu0 %608 }
 0x434   :  { %v611_v38 = vmul.f32 %v2054_v36, %v609_v37 }
 0x436   :  { %613 = vrot.lane.b32.xlu0 %v611_v38, %s2167_s0 }
 0x437   :  { %v687_v40 = vpop.permute.xlu1 %686 }
 0x438   :  { %v689_v41 = vmul.f32 %v2056_v39, %v687_v40 }
 0x43a   :  { %691 = vrot.lane.b32.xlu1 %v689_v41, %s2167_s0 }
 0x4a8   :  { %v614_v43 = vpop.permute.xlu0 %613 }
 0x4a9   :  { %v2353_v44 = vadd.f32 %v614_v43, %v606_v42  ;;  %v862_v43 = vld [vmem:[#allocation11 + $0x6] sm:$0x3] }
 0x4ab   :  { %2057 = vtanh.f32 %v2353_v44 }
 0x4ac   :  { %v692_v46 = vpop.permute.xlu1 %691 }
 0x4ad   :  { %v2357_v47 = vadd.f32 %v692_v46, %v684_v45 }
 0x4af   :  { %2059 = vtanh.f32 %v2357_v47 }
 0x4b5   :  { %v2058_v48 = vpop.eup %2057 }
 0x4b6   :  { %619 = vrot.lane.b32.xlu0 %v2058_v48, %s2167_s0 }
 0x4b9   :  { %v2060_v49 = vpop.eup %2059 }
 0x4ba   :  { %697 = vrot.lane.b32.xlu1 %v2060_v49, %s2167_s0  ;;  %v940_v49 = vld [vmem:[#allocation12 + $0x8] sm:$0x3] }
 0x528   :  { %v620_v50 = vpop.permute.xlu0 %619 }
 0x529   :  { %v2362_v51 = vmul.f32 %v2054_v36, %v620_v50 }
 0x52b   :  { %v707_v52 = vpack.c.bf16 %v2362_v51, %v2362_v51 }
 0x52c   :  { %v698_v53 = vpop.permute.xlu1 %697 }
 0x52d   :  { %v2366_v54 = vmul.f32 %v2056_v39, %v698_v53  ;;  %709 = vrot.lane.b32.xlu0 %v707_v52, %s2168_s4 }
 0x52f   :  { %v785_v55 = vpack.c.bf16 %v2366_v54, %v2366_v54 }
 0x531   :  { %787 = vrot.lane.b32.xlu1 %v785_v55, %s2168_s4 }
 0x59f   :  { %v710_v56 = vpop.permute.xlu0 %709 }
 0x5a0   :  { %1931 = vmatmul.mubr.msk.bf16.vlgmr.msra.gmra.mrb[12].mxu0 %vm274_vm2, %v710_v56 }
 0x5a1   :  { %1943 = vmatpush3.bf16.msra.mxu0 %v2229_v2  ;;  %1946 = vmatprep.mubr.msk.bf16.mxu0 %vm2166_vm1, %v2165_v8 }
 0x5a2   :  { %1944 = vmatprep.subr.bf16.mxu0 %v2165_v8 }
 0x5a3   :  { %v788_v57 = vpop.permute.xlu1 %787 }
 0x5a4   :  { %1939 = vmatmul.mubr.msk.bf16.vlgmr.msra.gmra.mrb[12].mxu1 %vm274_vm2, %v788_v57 }
 0x5a5   :  { %1951 = vmatpush3.bf16.msra.mxu1 %v2245_v6  ;;  %1945 = vmatpush3.bf16.msra.mxu0 %v2234_v3 }
 0x5a6   :  { %1952 = vmatprep.subr.bf16.mxu1 %v2165_v8  ;;  %1954 = vmatprep.mubr.msk.bf16.mxu1 %vm2166_vm1, %v2165_v8 }
 0x5a7   :  { %1958 = vmatprep.subr.bf16.mxu0 %v2165_v8 }
 0x5a9   :  { %1953 = vmatpush3.bf16.msra.mxu1 %v2250_v7 }
 0x5aa   :  { %1966 = vmatprep.subr.bf16.mxu1 %v2165_v8 }
 0x673   :  { %v748_v59 = vpop.f32.mrb[12].mxu0 }
 0x674   :  { %v754_v60 = vadd.f32 %v748_v59, %v706_v58  ;;  %v1932_v61 = vpop.f32.mrb[13].mxu0 }
 0x675   :  { %v751_v62 = vpop.f32.mrb[14].mxu0 }
 0x676   :  { %2061 = vtanh.f32 %v754_v60  ;;  %v1933_v63 = vpop.f32.mrb[15].mxu0  ;;  %v1789_v15 = vmul.f32 -1.442695, %v754_v60 }
 0x677   :  { %v826_v1 = vpop.f32.mrb[12].mxu1 }
 0x678   :  { %v832_v4 = vadd.f32 %v826_v1, %v784_v0  ;;  %v1940_v5 = vpop.f32.mrb[13].mxu1 }
 0x679   :  { %v829_v10 = vpop.f32.mrb[14].mxu1 }
 0x67a   :  { %2063 = vtanh.f32 %v832_v4  ;;  %v1941_v11 = vpop.f32.mrb[15].mxu1  ;;  %v1791_v16 = vmul.f32 -1.442695, %v832_v4 }
 0x67b   :  { %2065 = vpow2.f32 %v1789_v15 }
 0x67c   :  { %2067 = vpow2.f32 %v1791_v16 }
 0x680   :  { %v2062_v13 = vpop.eup %2061 }
 0x681   :  { %764 = vrot.lane.b32.xlu0 %v2062_v13, %s2167_s0 }
 0x684   :  { %v2064_v14 = vpop.eup %2063 }
 0x685   :  { %842 = vrot.lane.b32.xlu1 %v2064_v14, %s2167_s0  ;;  %v2066_v17 = vpop.eup %2065 }
 0x686   :  { %v758_v18 = vadd.f32 1.0, %v2066_v17  ;;  %v2068_v19 = vpop.eup %2067 }
 0x687   :  { %v836_v20 = vadd.f32 1.0, %v2068_v19 }
 0x688   :  { %2069 = vrcp.f32 %v758_v18 }
 0x689   :  { %2071 = vrcp.f32 %v836_v20 }
 0x692   :  { %v2070_v21 = vpop.eup %2069 }
 0x693   :  { %v2072_v24 = vpop.eup %2071  ;;  %v762_v27 = vmul.f32 %v2070_v21, %v2353_v44 }
 0x694   :  { %v840_v30 = vmul.f32 %v2072_v24, %v2357_v47 }
 0x6f3   :  { %v765_v22 = vpop.permute.xlu0 %764 }
 0x6f4   :  { %v767_v23 = vmul.f32 %v2070_v21, %v765_v22 }
 0x6f6   :  { %769 = vrot.lane.b32.xlu0 %v767_v23, %s2167_s0 }
 0x6f7   :  { %v843_v25 = vpop.permute.xlu1 %842 }
 0x6f8   :  { %v845_v26 = vmul.f32 %v2072_v24, %v843_v25 }
 0x6fa   :  { %847 = vrot.lane.b32.xlu1 %v845_v26, %s2167_s0 }
 0x768   :  { %v770_v28 = vpop.permute.xlu0 %769 }
 0x769   :  { %v2391_v29 = vadd.f32 %v770_v28, %v762_v27 }
 0x76b   :  { %2073 = vtanh.f32 %v2391_v29 }
 0x76c   :  { %v848_v31 = vpop.permute.xlu1 %847 }
 0x76d   :  { %v2395_v32 = vadd.f32 %v848_v31, %v840_v30  ;;  %v1018_v30 = vld [vmem:[#allocation11 + $0x8] sm:$0x3] }
 0x76f   :  { %2075 = vtanh.f32 %v2395_v32 }
 0x775   :  { %v2074_v33 = vpop.eup %2073 }
 0x776   :  { %775 = vrot.lane.b32.xlu0 %v2074_v33, %s2167_s0 }
 0x779   :  { %v2076_v34 = vpop.eup %2075 }
 0x77a   :  { %853 = vrot.lane.b32.xlu1 %v2076_v34, %s2167_s0 }
 0x7e8   :  { %v776_v35 = vpop.permute.xlu0 %775 }
 0x7e9   :  { %v2400_v36 = vmul.f32 %v2070_v21, %v776_v35 }
 0x7eb   :  { %v863_v37 = vpack.c.bf16 %v2400_v36, %v2400_v36 }
 0x7ec   :  { %v854_v38 = vpop.permute.xlu1 %853 }
 0x7ed   :  { %v2404_v39 = vmul.f32 %v2072_v24, %v854_v38  ;;  %865 = vrot.lane.b32.xlu0 %v863_v37, %s2168_s4  ;;  %v1096_v37 = vld [vmem:[#allocation12 + $0x6] sm:$0x3] }
 0x7ef   :  { %v941_v40 = vpack.c.bf16 %v2404_v39, %v2404_v39 }
 0x7f1   :  { %943 = vrot.lane.b32.xlu1 %v941_v40, %s2168_s4 }
 0x85f   :  { %v866_v41 = vpop.permute.xlu0 %865 }
 0x860   :  { %1947 = vmatmul.mubr.msk.bf16.vlgmr.msra.gmra.mrb[16].mxu0 %vm274_vm2, %v866_v41 }
 0x861   :  { %1959 = vmatpush3.bf16.msra.mxu0 %v2229_v2  ;;  %1962 = vmatprep.mubr.msk.bf16.mxu0 %vm2166_vm1, %v2165_v8 }
 0x862   :  { %1960 = vmatprep.subr.bf16.mxu0 %v2165_v8 }
 0x863   :  { %v944_v42 = vpop.permute.xlu1 %943 }
 0x864   :  { %1955 = vmatmul.mubr.msk.bf16.vlgmr.msra.gmra.mrb[16].mxu1 %vm274_vm2, %v944_v42 }
 0x865   :  { %1967 = vmatpush3.bf16.msra.mxu1 %v2245_v6  ;;  %1961 = vmatpush3.bf16.msra.mxu0 %v2234_v3 }
 0x866   :  { %1968 = vmatprep.subr.bf16.mxu1 %v2165_v8  ;;  %1970 = vmatprep.mubr.msk.bf16.mxu1 %vm2166_vm1, %v2165_v8 }
 0x867   :  { %1974 = vmatprep.subr.bf16.mxu0 %v2165_v8 }
 0x869   :  { %1969 = vmatpush3.bf16.msra.mxu1 %v2250_v7 }
 0x86a   :  { %1982 = vmatprep.subr.bf16.mxu1 %v2165_v8 }
 0x933   :  { %v904_v44 = vpop.f32.mrb[16].mxu0 }
 0x934   :  { %v910_v45 = vadd.f32 %v904_v44, %v862_v43  ;;  %v1948_v46 = vpop.f32.mrb[17].mxu0 }
 0x935   :  { %v907_v47 = vpop.f32.mrb[18].mxu0 }
 0x936   :  { %2077 = vtanh.f32 %v910_v45  ;;  %v1949_v48 = vpop.f32.mrb[19].mxu0  ;;  %v1793_v59 = vmul.f32 -1.442695, %v910_v45 }
 0x937   :  { %v982_v50 = vpop.f32.mrb[16].mxu1 }
 0x938   :  { %v988_v52 = vadd.f32 %v982_v50, %v940_v49  ;;  %v1956_v53 = vpop.f32.mrb[17].mxu1 }
 0x939   :  { %v985_v55 = vpop.f32.mrb[18].mxu1 }
 0x93a   :  { %2079 = vtanh.f32 %v988_v52  ;;  %v1957_v56 = vpop.f32.mrb[19].mxu1  ;;  %v1795_v60 = vmul.f32 -1.442695, %v988_v52 }
 0x93b   :  { %2081 = vpow2.f32 %v1793_v59 }
 0x93c   :  { %2083 = vpow2.f32 %v1795_v60 }
 0x940   :  { %v2078_v57 = vpop.eup %2077 }
 0x941   :  { %920 = vrot.lane.b32.xlu0 %v2078_v57, %s2167_s0 }
 0x944   :  { %v2080_v58 = vpop.eup %2079 }
 0x945   :  { %998 = vrot.lane.b32.xlu1 %v2080_v58, %s2167_s0  ;;  %v2082_v61 = vpop.eup %2081 }
 0x946   :  { %v914_v62 = vadd.f32 1.0, %v2082_v61  ;;  %v2084_v63 = vpop.eup %2083 }
 0x947   :  { %v992_v0 = vadd.f32 1.0, %v2084_v63 }
 0x948   :  { %2085 = vrcp.f32 %v914_v62 }
 0x949   :  { %2087 = vrcp.f32 %v992_v0 }
 0x952   :  { %v2086_v1 = vpop.eup %2085 }
 0x953   :  { %v2088_v10 = vpop.eup %2087  ;;  %v918_v14 = vmul.f32 %v2086_v1, %v2391_v29 }
 0x954   :  { %v996_v17 = vmul.f32 %v2088_v10, %v2395_v32 }
 0x9b3   :  { %v921_v4 = vpop.permute.xlu0 %920 }
 0x9b4   :  { %v923_v5 = vmul.f32 %v2086_v1, %v921_v4 }
 0x9b6   :  { %925 = vrot.lane.b32.xlu0 %v923_v5, %s2167_s0 }
 0x9b7   :  { %v999_v11 = vpop.permute.xlu1 %998 }
 0x9b8   :  { %v1001_v13 = vmul.f32 %v2088_v10, %v999_v11 }
 0x9ba   :  { %1003 = vrot.lane.b32.xlu1 %v1001_v13, %s2167_s0 }
 0xa28   :  { %v926_v15 = vpop.permute.xlu0 %925 }
 0xa29   :  { %v2429_v16 = vadd.f32 %v926_v15, %v918_v14 }
 0xa2b   :  { %2089 = vtanh.f32 %v2429_v16 }
 0xa2c   :  { %v1004_v18 = vpop.permute.xlu1 %1003 }
 0xa2d   :  { %v2433_v19 = vadd.f32 %v1004_v18, %v996_v17 }
 0xa2f   :  { %2091 = vtanh.f32 %v2433_v19 }
 0xa35   :  { %v2090_v20 = vpop.eup %2089 }
 0xa36   :  { %931 = vrot.lane.b32.xlu0 %v2090_v20, %s2167_s0 }
 0xa39   :  { %v2092_v21 = vpop.eup %2091 }
 0xa3a   :  { %1009 = vrot.lane.b32.xlu1 %v2092_v21, %s2167_s0 }
 0xaa8   :  { %v932_v22 = vpop.permute.xlu0 %931 }
 0xaa9   :  { %v2438_v23 = vmul.f32 %v2086_v1, %v932_v22 }
 0xaab   :  { %v1019_v24 = vpack.c.bf16 %v2438_v23, %v2438_v23 }
 0xaac   :  { %v1010_v25 = vpop.permute.xlu1 %1009 }
 0xaad   :  { %v2442_v26 = vmul.f32 %v2088_v10, %v1010_v25  ;;  %1021 = vrot.lane.b32.xlu0 %v1019_v24, %s2168_s4 }
 0xaaf   :  { %v1097_v27 = vpack.c.bf16 %v2442_v26, %v2442_v26 }
 0xab1   :  { %1099 = vrot.lane.b32.xlu1 %v1097_v27, %s2168_s4  ;;  %v1252_v27 = vld [vmem:[#allocation12 + $0x4] sm:$0x3] }
 0xb1f   :  { %v1022_v28 = vpop.permute.xlu0 %1021 }
 0xb20   :  { %1963 = vmatmul.mubr.msk.bf16.vlgmr.msra.gmra.mrb[20].mxu0 %vm274_vm2, %v1022_v28 }
 0xb21   :  { %1975 = vmatpush3.bf16.msra.mxu0 %v2229_v2  ;;  %1978 = vmatprep.mubr.msk.bf16.mxu0 %vm2166_vm1, %v2165_v8 }
 0xb22   :  { %1976 = vmatprep.subr.bf16.mxu0 %v2165_v8 }
 0xb23   :  { %v1100_v29 = vpop.permute.xlu1 %1099 }
 0xb24   :  { %1971 = vmatmul.mubr.msk.bf16.vlgmr.msra.gmra.mrb[20].mxu1 %vm274_vm2, %v1100_v29 }
 0xb25   :  { %1983 = vmatpush3.bf16.msra.mxu1 %v2245_v6  ;;  %1977 = vmatpush3.bf16.msra.mxu0 %v2234_v3 }
 0xb26   :  { %1984 = vmatprep.subr.bf16.mxu1 %v2165_v8  ;;  %1986 = vmatprep.mubr.msk.bf16.mxu1 %vm2166_vm1, %v2165_v8 }
 0xb27   :  { %1990 = vmatprep.subr.bf16.mxu0 %v2165_v8 }
 0xb29   :  { %1985 = vmatpush3.bf16.msra.mxu1 %v2250_v7 }
 0xb2a   :  { %1998 = vmatprep.subr.bf16.mxu1 %v2165_v8 }
 0xbf3   :  { %v1060_v31 = vpop.f32.mrb[20].mxu0 }
 0xbf4   :  { %v1066_v32 = vadd.f32 %v1060_v31, %v1018_v30  ;;  %v1964_v33 = vpop.f32.mrb[21].mxu0 }
 0xbf5   :  { %v1063_v34 = vpop.f32.mrb[22].mxu0 }
 0xbf6   :  { %2093 = vtanh.f32 %v1066_v32  ;;  %v1965_v35 = vpop.f32.mrb[23].mxu0  ;;  %v1797_v46 = vmul.f32 -1.442695, %v1066_v32 }
 0xbf7   :  { %v1138_v38 = vpop.f32.mrb[20].mxu1 }
 0xbf8   :  { %v1144_v40 = vadd.f32 %v1138_v38, %v1096_v37  ;;  %v1972_v41 = vpop.f32.mrb[21].mxu1 }
 0xbf9   :  { %v1141_v42 = vpop.f32.mrb[22].mxu1 }
 0xbfa   :  { %2095 = vtanh.f32 %v1144_v40  ;;  %v1973_v43 = vpop.f32.mrb[23].mxu1  ;;  %v1799_v47 = vmul.f32 -1.442695, %v1144_v40 }
 0xbfb   :  { %2097 = vpow2.f32 %v1797_v46 }
 0xbfc   :  { %2099 = vpow2.f32 %v1799_v47 }
 0xc00   :  { %v2094_v44 = vpop.eup %2093 }
 0xc01   :  { %1076 = vrot.lane.b32.xlu0 %v2094_v44, %s2167_s0 }
 0xc04   :  { %v2096_v45 = vpop.eup %2095 }
 0xc05   :  { %1154 = vrot.lane.b32.xlu1 %v2096_v45, %s2167_s0  ;;  %v2098_v48 = vpop.eup %2097 }
 0xc06   :  { %v1070_v49 = vadd.f32 1.0, %v2098_v48  ;;  %v2100_v50 = vpop.eup %2099 }
 0xc07   :  { %v1148_v52 = vadd.f32 1.0, %v2100_v50 }
 0xc08   :  { %2101 = vrcp.f32 %v1070_v49 }
 0xc09   :  { %2103 = vrcp.f32 %v1148_v52 }
 0xc12   :  { %v2102_v53 = vpop.eup %2101 }
 0xc13   :  { %v2104_v57 = vpop.eup %2103  ;;  %v1074_v60 = vmul.f32 %v2102_v53, %v2429_v16 }
 0xc14   :  { %v1152_v63 = vmul.f32 %v2104_v57, %v2433_v19  ;;  %v1174_v19 = vld [vmem:[#allocation11 + $0xa] sm:$0x3] }
 0xc73   :  { %v1077_v55 = vpop.permute.xlu0 %1076 }
 0xc74   :  { %v1079_v56 = vmul.f32 %v2102_v53, %v1077_v55 }
 0xc76   :  { %1081 = vrot.lane.b32.xlu0 %v1079_v56, %s2167_s0 }
 0xc77   :  { %v1155_v58 = vpop.permute.xlu1 %1154 }
 0xc78   :  { %v1157_v59 = vmul.f32 %v2104_v57, %v1155_v58 }
 0xc7a   :  { %1159 = vrot.lane.b32.xlu1 %v1157_v59, %s2167_s0 }
 0xce8   :  { %v1082_v61 = vpop.permute.xlu0 %1081 }
 0xce9   :  { %v2467_v62 = vadd.f32 %v1082_v61, %v1074_v60 }
 0xceb   :  { %2105 = vtanh.f32 %v2467_v62 }
 0xcec   :  { %v1160_v0 = vpop.permute.xlu1 %1159 }
 0xced   :  { %v2471_v1 = vadd.f32 %v1160_v0, %v1152_v63 }
 0xcef   :  { %2107 = vtanh.f32 %v2471_v1 }
 0xcf5   :  { %v2106_v4 = vpop.eup %2105 }
 0xcf6   :  { %1087 = vrot.lane.b32.xlu0 %v2106_v4, %s2167_s0 }
 0xcf9   :  { %v2108_v5 = vpop.eup %2107 }
 0xcfa   :  { %1165 = vrot.lane.b32.xlu1 %v2108_v5, %s2167_s0 }
 0xd68   :  { %v1088_v10 = vpop.permute.xlu0 %1087 }
 0xd69   :  { %v2476_v11 = vmul.f32 %v2102_v53, %v1088_v10 }
 0xd6b   :  { %v1175_v13 = vpack.c.bf16 %v2476_v11, %v2476_v11 }
 0xd6c   :  { %v1166_v14 = vpop.permute.xlu1 %1165 }
 0xd6d   :  { %v2480_v15 = vmul.f32 %v2104_v57, %v1166_v14  ;;  %1177 = vrot.lane.b32.xlu0 %v1175_v13, %s2168_s4 }
 0xd6f   :  { %v1253_v16 = vpack.c.bf16 %v2480_v15, %v2480_v15 }
 0xd71   :  { %1255 = vrot.lane.b32.xlu1 %v1253_v16, %s2168_s4 }
 0xddf   :  { %v1178_v17 = vpop.permute.xlu0 %1177 }
 0xde0   :  { %1979 = vmatmul.mubr.msk.bf16.vlgmr.msra.gmra.mrb[24].mxu0 %vm274_vm2, %v1178_v17  ;;  %v1408_v17 = vld [vmem:[#allocation12 + $0x2] sm:$0x3] }
 0xde1   :  { %1991 = vmatpush3.bf16.msra.mxu0 %v2229_v2  ;;  %1994 = vmatprep.mubr.msk.bf16.mxu0 %vm2166_vm1, %v2165_v8 }
 0xde2   :  { %1992 = vmatprep.subr.bf16.mxu0 %v2165_v8 }
 0xde3   :  { %v1256_v18 = vpop.permute.xlu1 %1255 }
 0xde4   :  { %1987 = vmatmul.mubr.msk.bf16.vlgmr.msra.gmra.mrb[24].mxu1 %vm274_vm2, %v1256_v18 }
 0xde5   :  { %1999 = vmatpush3.bf16.msra.mxu1 %v2245_v6  ;;  %1993 = vmatpush3.bf16.msra.mxu0 %v2234_v3 }
 0xde6   :  { %2000 = vmatprep.subr.bf16.mxu1 %v2165_v8  ;;  %2002 = vmatprep.mubr.msk.bf16.mxu1 %vm2166_vm1, %v2165_v8 }
 0xde7   :  { %2006 = vmatprep.subr.bf16.mxu0 %v2165_v8 }
 0xde9   :  { %2001 = vmatpush3.bf16.msra.mxu1 %v2250_v7 }
 0xdea   :  { %2014 = vmatprep.subr.bf16.mxu1 %v2165_v8 }
 0xeb3   :  { %v1216_v20 = vpop.f32.mrb[24].mxu0 }
 0xeb4   :  { %v1222_v21 = vadd.f32 %v1216_v20, %v1174_v19  ;;  %v1980_v22 = vpop.f32.mrb[25].mxu0 }
 0xeb5   :  { %v1219_v24 = vpop.f32.mrb[26].mxu0 }
 0xeb6   :  { %2109 = vtanh.f32 %v1222_v21  ;;  %v1981_v25 = vpop.f32.mrb[27].mxu0  ;;  %v1801_v35 = vmul.f32 -1.442695, %v1222_v21 }
 0xeb7   :  { %v1294_v28 = vpop.f32.mrb[24].mxu1 }
 0xeb8   :  { %v1300_v29 = vadd.f32 %v1294_v28, %v1252_v27  ;;  %v1988_v30 = vpop.f32.mrb[25].mxu1 }
 0xeb9   :  { %v1297_v31 = vpop.f32.mrb[26].mxu1 }
 0xeba   :  { %2111 = vtanh.f32 %v1300_v29  ;;  %v1989_v32 = vpop.f32.mrb[27].mxu1  ;;  %v1803_v37 = vmul.f32 -1.442695, %v1300_v29 }
 0xebb   :  { %2113 = vpow2.f32 %v1801_v35 }
 0xebc   :  { %2115 = vpow2.f32 %v1803_v37 }
 0xec0   :  { %v2110_v33 = vpop.eup %2109 }
 0xec1   :  { %1232 = vrot.lane.b32.xlu0 %v2110_v33, %s2167_s0 }
 0xec4   :  { %v2112_v34 = vpop.eup %2111 }
 0xec5   :  { %1310 = vrot.lane.b32.xlu1 %v2112_v34, %s2167_s0  ;;  %v2114_v38 = vpop.eup %2113 }
 0xec6   :  { %v1226_v40 = vadd.f32 1.0, %v2114_v38  ;;  %v2116_v41 = vpop.eup %2115 }
 0xec7   :  { %v1304_v42 = vadd.f32 1.0, %v2116_v41 }
 0xec8   :  { %2117 = vrcp.f32 %v1226_v40 }
 0xec9   :  { %2119 = vrcp.f32 %v1304_v42 }
 0xed2   :  { %v2118_v43 = vpop.eup %2117 }
 0xed3   :  { %v2120_v46 = vpop.eup %2119  ;;  %v1230_v49 = vmul.f32 %v2118_v43, %v2467_v62 }
 0xed4   :  { %v1308_v53 = vmul.f32 %v2120_v46, %v2471_v1 }
 0xf33   :  { %v1233_v44 = vpop.permute.xlu0 %1232 }
 0xf34   :  { %v1235_v45 = vmul.f32 %v2118_v43, %v1233_v44 }
 0xf36   :  { %1237 = vrot.lane.b32.xlu0 %v1235_v45, %s2167_s0 }
 0xf37   :  { %v1311_v47 = vpop.permute.xlu1 %1310 }
 0xf38   :  { %v1313_v48 = vmul.f32 %v2120_v46, %v1311_v47 }
 0xf3a   :  { %1315 = vrot.lane.b32.xlu1 %v1313_v48, %s2167_s0 }
 0xfa8   :  { %v1238_v50 = vpop.permute.xlu0 %1237 }
 0xfa9   :  { %v2505_v52 = vadd.f32 %v1238_v50, %v1230_v49 }
 0xfab   :  { %2121 = vtanh.f32 %v2505_v52 }
 0xfac   :  { %v1316_v55 = vpop.permute.xlu1 %1315 }
 0xfad   :  { %v2509_v56 = vadd.f32 %v1316_v55, %v1308_v53  ;;  %v1486_v55 = vld [vmem:[#allocation11 + $0xe] sm:$0x3] }
 0xfaf   :  { %2123 = vtanh.f32 %v2509_v56 }
 0xfb5   :  { %v2122_v57 = vpop.eup %2121 }
 0xfb6   :  { %1243 = vrot.lane.b32.xlu0 %v2122_v57, %s2167_s0 }
 0xfb9   :  { %v2124_v58 = vpop.eup %2123 }
 0xfba   :  { %1321 = vrot.lane.b32.xlu1 %v2124_v58, %s2167_s0 }
0x1028   :  { %v1244_v59 = vpop.permute.xlu0 %1243 }
0x1029   :  { %v2514_v60 = vmul.f32 %v2118_v43, %v1244_v59 }
0x102b   :  { %v1331_v61 = vpack.c.bf16 %v2514_v60, %v2514_v60 }
0x102c   :  { %v1322_v62 = vpop.permute.xlu1 %1321 }
0x102d   :  { %v2518_v63 = vmul.f32 %v2120_v46, %v1322_v62  ;;  %1333 = vrot.lane.b32.xlu0 %v1331_v61, %s2168_s4  ;;  %v1564_v62 = vld [vmem:[#allocation12] sm:$0x3] }
0x102f   :  { %v1409_v0 = vpack.c.bf16 %v2518_v63, %v2518_v63 }
0x1031   :  { %1411 = vrot.lane.b32.xlu1 %v1409_v0, %s2168_s4 }
0x109f   :  { %v1334_v1 = vpop.permute.xlu0 %1333 }
0x10a0   :  { %1995 = vmatmul.mubr.msk.bf16.vlgmr.msra.gmra.mrb[28].mxu0 %vm274_vm2, %v1334_v1 }
0x10a1   :  { %2007 = vmatpush3.bf16.msra.mxu0 %v2229_v2  ;;  %2010 = vmatprep.mubr.msk.bf16.mxu0 %vm2166_vm1, %v2165_v8  ;;  %v1330_v2 = vld [vmem:[#allocation11 + $0xc] sm:$0x3] }
0x10a2   :  { %2008 = vmatprep.subr.bf16.mxu0 %v2165_v8 }
0x10a3   :  { %v1412_v4 = vpop.permute.xlu1 %1411 }
0x10a4   :  { %2003 = vmatmul.mubr.msk.bf16.vlgmr.msra.gmra.mrb[28].mxu1 %vm274_vm2, %v1412_v4 }
0x10a5   :  { %2015 = vmatpush3.bf16.msra.mxu1 %v2245_v6  ;;  %2009 = vmatpush3.bf16.msra.mxu0 %v2234_v3 }
0x10a6   :  { %2016 = vmatprep.subr.bf16.mxu1 %v2165_v8  ;;  %2018 = vmatprep.mubr.msk.bf16.mxu1 %vm2166_vm1, %v2165_v8 }
0x10a9   :  { %2017 = vmatpush3.bf16.msra.mxu1 %v2250_v7 }
0x1173   :  { %v1372_v5 = vpop.f32.mrb[28].mxu0 }
0x1174   :  { %v1378_v10 = vadd.f32 %v1372_v5, %v1330_v2  ;;  %v1996_v13 = vpop.f32.mrb[29].mxu0 }
0x1175   :  { %v1375_v14 = vpop.f32.mrb[30].mxu0 }
0x1176   :  { %2125 = vtanh.f32 %v1378_v10  ;;  %v1997_v16 = vpop.f32.mrb[31].mxu0  ;;  %v1805_v7 = vmul.f32 -1.442695, %v1378_v10 }
0x1177   :  { %v1450_v18 = vpop.f32.mrb[28].mxu1 }
0x1178   :  { %v1456_v19 = vadd.f32 %v1450_v18, %v1408_v17  ;;  %v2004_v6 = vpop.f32.mrb[29].mxu1 }
0x1179   :  { %v1453_v20 = vpop.f32.mrb[30].mxu1 }
0x117a   :  { %2127 = vtanh.f32 %v1456_v19  ;;  %v2005_v3 = vpop.f32.mrb[31].mxu1  ;;  %v1807_v22 = vmul.f32 -1.442695, %v1456_v19 }
0x117b   :  { %2129 = vpow2.f32 %v1805_v7 }
0x117c   :  { %2131 = vpow2.f32 %v1807_v22 }
0x1180   :  { %v2126_v21 = vpop.eup %2125 }
0x1181   :  { %1388 = vrot.lane.b32.xlu0 %v2126_v21, %s2167_s0 }
0x1184   :  { %v2128_v8 = vpop.eup %2127 }
0x1185   :  { %1466 = vrot.lane.b32.xlu1 %v2128_v8, %s2167_s0  ;;  %v2130_v24 = vpop.eup %2129 }
0x1186   :  { %v1382_v25 = vadd.f32 1.0, %v2130_v24  ;;  %v2132_v27 = vpop.eup %2131 }
0x1187   :  { %v1460_v28 = vadd.f32 1.0, %v2132_v27 }
0x1188   :  { %2133 = vrcp.f32 %v1382_v25 }
0x1189   :  { %2135 = vrcp.f32 %v1460_v28 }
0x1192   :  { %v2134_v29 = vpop.eup %2133 }
0x1193   :  { %v2136_v32 = vpop.eup %2135  ;;  %v1386_v35 = vmul.f32 %v2134_v29, %v2505_v52 }
0x1194   :  { %v1464_v40 = vmul.f32 %v2136_v32, %v2509_v56 }
0x11f3   :  { %v1389_v30 = vpop.permute.xlu0 %1388 }
0x11f4   :  { %v1391_v31 = vmul.f32 %v2134_v29, %v1389_v30 }
0x11f6   :  { %1393 = vrot.lane.b32.xlu0 %v1391_v31, %s2167_s0 }
0x11f7   :  { %v1467_v33 = vpop.permute.xlu1 %1466 }
0x11f8   :  { %v1469_v34 = vmul.f32 %v2136_v32, %v1467_v33 }
0x11fa   :  { %1471 = vrot.lane.b32.xlu1 %v1469_v34, %s2167_s0 }
0x1268   :  { %v1394_v37 = vpop.permute.xlu0 %1393 }
0x1269   :  { %v1396_v38 = vadd.f32 %v1394_v37, %v1386_v35 }
0x126b   :  { %2137 = vtanh.f32 %v1396_v38 }
0x126c   :  { %v1472_v41 = vpop.permute.xlu1 %1471 }
0x126d   :  { %v1474_v42 = vadd.f32 %v1472_v41, %v1464_v40 }
0x126f   :  { %2139 = vtanh.f32 %v1474_v42 }
0x1275   :  { %v2138_v43 = vpop.eup %2137 }
0x1276   :  { %1399 = vrot.lane.b32.xlu0 %v2138_v43, %s2167_s0 }
0x1279   :  { %v2140_v44 = vpop.eup %2139 }
0x127a   :  { %1477 = vrot.lane.b32.xlu1 %v2140_v44, %s2167_s0 }
0x12e8   :  { %v1400_v45 = vpop.permute.xlu0 %1399 }
0x12e9   :  { %v2544_v46 = vmul.f32 %v2134_v29, %v1400_v45 }
0x12eb   :  { %v1487_v47 = vpack.c.bf16 %v2544_v46, %v2544_v46 }
0x12ec   :  { %v1478_v48 = vpop.permute.xlu1 %1477 }
0x12ed   :  { %v2548_v49 = vmul.f32 %v2136_v32, %v1478_v48  ;;  %1489 = vrot.lane.b32.xlu0 %v1487_v47, %s2168_s4 }
0x12ef   :  { %v1565_v50 = vpack.c.bf16 %v2548_v49, %v2548_v49 }
0x12f1   :  { %1567 = vrot.lane.b32.xlu1 %v1565_v50, %s2168_s4 }
0x135f   :  { %v1490_v52 = vpop.permute.xlu0 %1489 }
0x1360   :  { %2011 = vmatmul.mubr.msk.bf16.vlgmr.msra.gmra.mrb[32].mxu0 %vm274_vm2, %v1490_v52 }
0x1363   :  { %v1568_v53 = vpop.permute.xlu1 %1567 }
0x1364   :  { %2019 = vmatmul.mubr.msk.bf16.vlgmr.msra.gmra.mrb[32].mxu1 %vm274_vm2, %v1568_v53 }
0x1433   :  { %v1528_v56 = vpop.f32.mrb[32].mxu0 }
0x1434   :  { %v1534_v57 = vadd.f32 %v1528_v56, %v1486_v55  ;;  %v2012_v58 = vpop.f32.mrb[33].mxu0 }
0x1435   :  { %v1531_v59 = vpop.f32.mrb[34].mxu0 }
0x1436   :  { %2141 = vtanh.f32 %v1534_v57  ;;  %v2013_v61 = vpop.f32.mrb[35].mxu0  ;;  %v1809_v14 = vmul.f32 -1.442695, %v1534_v57 }
0x1437   :  { %v1606_v0 = vpop.f32.mrb[32].mxu1 }
0x1438   :  { %v1612_v1 = vadd.f32 %v1606_v0, %v1564_v62  ;;  %v2020_v4 = vpop.f32.mrb[33].mxu1 }
0x1439   :  { %v1609_v2 = vpop.f32.mrb[34].mxu1 }
0x143a   :  { %2143 = vtanh.f32 %v1612_v1  ;;  %v2021_v5 = vpop.f32.mrb[35].mxu1  ;;  %v1811_v16 = vmul.f32 -1.442695, %v1612_v1 }
0x143b   :  { %2145 = vpow2.f32 %v1809_v14 }
0x143c   :  { %2147 = vpow2.f32 %v1811_v16 }
0x1440   :  { %v2142_v10 = vpop.eup %2141 }
0x1441   :  { %1544 = vrot.lane.b32.xlu0 %v2142_v10, %s2167_s0 }
0x1444   :  { %v2144_v13 = vpop.eup %2143 }
0x1445   :  { %1622 = vrot.lane.b32.xlu1 %v2144_v13, %s2167_s0  ;;  %v2146_v17 = vpop.eup %2145 }
0x1446   :  { %v1538_v18 = vadd.f32 1.0, %v2146_v17  ;;  %v2148_v19 = vpop.eup %2147 }
0x1447   :  { %v1616_v6 = vadd.f32 1.0, %v2148_v19 }
0x1448   :  { %2149 = vrcp.f32 %v1538_v18 }
0x1449   :  { %2151 = vrcp.f32 %v1616_v6 }
0x1452   :  { %v2150_v20 = vpop.eup %2149 }
0x1453   :  { %v2152_v8 = vpop.eup %2151  ;;  %v1542_v24 = vmul.f32 %v2150_v20, %v1396_v38 }
0x1454   :  { %v1620_v28 = vmul.f32 %v2152_v8, %v1474_v42 }
0x14b3   :  { %v1545_v3 = vpop.permute.xlu0 %1544 }
0x14b4   :  { %v1547_v21 = vmul.f32 %v2150_v20, %v1545_v3 }
0x14b6   :  { %1549 = vrot.lane.b32.xlu0 %v1547_v21, %s2167_s0 }
0x14b7   :  { %v1623_v7 = vpop.permute.xlu1 %1622 }
0x14b8   :  { %v1625_v22 = vmul.f32 %v2152_v8, %v1623_v7 }
0x14ba   :  { %1627 = vrot.lane.b32.xlu1 %v1625_v22, %s2167_s0 }
0x1528   :  { %v1550_v25 = vpop.permute.xlu0 %1549 }
0x1529   :  { %v1552_v27 = vadd.f32 %v1550_v25, %v1542_v24 }
0x152b   :  { %2153 = vtanh.f32 %v1552_v27 }
0x152c   :  { %v1628_v29 = vpop.permute.xlu1 %1627 }
0x152d   :  { %v1630_v30 = vadd.f32 %v1628_v29, %v1620_v28 }
0x152f   :  { %2155 = vtanh.f32 %v1630_v30 }
0x1535   :  { %v2154_v31 = vpop.eup %2153 }
0x1536   :  { %1555 = vrot.lane.b32.xlu0 %v2154_v31, %s2167_s0 }
0x1539   :  { %v2156_v32 = vpop.eup %2155 }
0x153a   :  { %1633 = vrot.lane.b32.xlu1 %v2156_v32, %s2167_s0  ;;  %466 = vrot.lane.b32.xlu0 %v2324_v9, %s2168_s4 }
0x153e   :  { %546 = vrot.lane.b32.xlu1 %v2328_v12, %s2168_s4  ;;  %624 = vrot.lane.b32.xlu0 %v2362_v51, %s2168_s4 }
0x1542   :  { %702 = vrot.lane.b32.xlu1 %v2366_v54, %s2168_s4  ;;  %780 = vrot.lane.b32.xlu0 %v2400_v36, %s2168_s4 }
0x1546   :  { %858 = vrot.lane.b32.xlu1 %v2404_v39, %s2168_s4  ;;  %936 = vrot.lane.b32.xlu0 %v2438_v23, %s2168_s4 }
0x154a   :  { %1014 = vrot.lane.b32.xlu1 %v2442_v26, %s2168_s4  ;;  %1092 = vrot.lane.b32.xlu0 %v2476_v11, %s2168_s4 }
0x154e   :  { %1170 = vrot.lane.b32.xlu1 %v2480_v15, %s2168_s4  ;;  %1248 = vrot.lane.b32.xlu0 %v2514_v60, %s2168_s4 }
0x1552   :  { %1326 = vrot.lane.b32.xlu1 %v2518_v63, %s2168_s4  ;;  %1404 = vrot.lane.b32.xlu0 %v2544_v46, %s2168_s4 }
0x1556   :  { %1482 = vrot.lane.b32.xlu1 %v2548_v49, %s2168_s4 }
0x15a8   :  { %v1556_v9 = vpop.permute.xlu0 %1555 }
0x15a9   :  { %v1558_v12 = vmul.f32 %v2150_v20, %v1556_v9 }
0x15ab   :  { %1560 = vrot.lane.b32.xlu0 %v1558_v12, %s2168_s4 }
0x15ac   :  { %v1634_v51 = vpop.permute.xlu1 %1633  ;;  %v467_v54 = vpop.permute.xlu0 %466 }
0x15ad   :  { %v1636_v36 = vmul.f32 %v2152_v8, %v1634_v51  ;;  %470 = vst.msk [vmem:[#allocation13] sm:$0x3] %vm253_vm0, %v467_v54 }
0x15af   :  { %1638 = vrot.lane.b32.xlu1 %v1636_v36, %s2168_s4  ;;  %1644 = vrot.lane.b32.xlu0 %v1552_v27, %s2169_s7 }
0x15b0   :  { %v547_v39 = vpop.permute.xlu1 %546  ;;  %v625_v23 = vpop.permute.xlu0 %624 }
0x15b1   :  { %549 = vst.msk [vmem:[#allocation14 + $0xe] sm:$0x3] %vm253_vm0, %v547_v39  ;;  %627 = vst.msk [vmem:[#allocation13 + $0x2] sm:$0x3] %vm253_vm0, %v625_v23 }
0x15b3   :  { %1650 = vrot.lane.b32.xlu1 %v1630_v30, %s2169_s7 }
0x15b4   :  { %v703_v26 = vpop.permute.xlu1 %702  ;;  %v781_v11 = vpop.permute.xlu0 %780 }
0x15b5   :  { %705 = vst.msk [vmem:[#allocation14 + $0xc] sm:$0x3] %vm253_vm0, %v703_v26  ;;  %783 = vst.msk [vmem:[#allocation13 + $0x4] sm:$0x3] %vm253_vm0, %v781_v11 }
0x15b8   :  { %v859_v15 = vpop.permute.xlu1 %858  ;;  %v937_v60 = vpop.permute.xlu0 %936 }
0x15b9   :  { %861 = vst.msk [vmem:[#allocation14 + $0xa] sm:$0x3] %vm253_vm0, %v859_v15  ;;  %939 = vst.msk [vmem:[#allocation13 + $0x6] sm:$0x3] %vm253_vm0, %v937_v60 }
0x15bc   :  { %v1015_v63 = vpop.permute.xlu1 %1014  ;;  %v1093_v33 = vpop.permute.xlu0 %1092 }
0x15bd   :  { %1017 = vst.msk [vmem:[#allocation14 + $0x8] sm:$0x3] %vm253_vm0, %v1015_v63  ;;  %1095 = vst.msk [vmem:[#allocation13 + $0x8] sm:$0x3] %vm253_vm0, %v1093_v33 }
0x15c0   :  { %v1654_v34 = vld [vmem:[#allocation13] sm:$0xff]  ;;  %v1171_v35 = vpop.permute.xlu1 %1170  ;;  %v1249_v37 = vpop.permute.xlu0 %1248 }
0x15c1   :  { %v1820_v38 = vpack.c.bf16 %v1654_v34, %v1654_v34  ;;  %1173 = vst.msk [vmem:[#allocation14 + $0x6] sm:$0x3] %vm253_vm0, %v1171_v35  ;;  %1251 = vst.msk [vmem:[#allocation13 + $0xa] sm:$0x3] %vm253_vm0, %v1249_v37 }
0x15c3   :  { %1665 = vst.msk [vmem:[%s2636_s8] sm:$0xf] %vm1664_vm3, %v1820_v38 }
0x15c4   :  { %v1668_v40 = vld [vmem:[#allocation14 + $0x8] sm:$0xff]  ;;  %v1327_v41 = vpop.permute.xlu1 %1326  ;;  %v1405_v42 = vpop.permute.xlu0 %1404 }
0x15c5   :  { %v1823_v43 = vpack.c.bf16 %v1668_v40, %v1668_v40  ;;  %1329 = vst.msk [vmem:[#allocation14 + $0x4] sm:$0x3] %vm253_vm0, %v1327_v41  ;;  %1407 = vst.msk [vmem:[#allocation13 + $0xc] sm:$0x3] %vm253_vm0, %v1405_v42 }
0x15c7   :  { %1678 = vst.msk [vmem:[%s2637_s9 + $0x4] sm:$0xf] %vm1664_vm3, %v1823_v43 }
0x15c8   :  { %v1483_v44 = vpop.permute.xlu1 %1482 }
0x15c9   :  { %1485 = vst.msk [vmem:[#allocation14 + $0x2] sm:$0x3] %vm253_vm0, %v1483_v44 }
0x161d   :  { %v1561_v45 = vpop.permute.xlu0 %1560 }
0x161e   :  { %1563 = vst.msk [vmem:[#allocation13 + $0xe] sm:$0x3] %vm253_vm0, %v1561_v45  ;;  %1642 = vst.msk [vmem:[#allocation7] sm:$0x3] %vm253_vm0, %v1561_v45 }
0x1621   :  { %v1639_v46 = vpop.permute.xlu1 %1638  ;;  %v1645_v47 = vpop.permute.xlu0 %1644 }
0x1622   :  { %1641 = vst.msk [vmem:[#allocation14] sm:$0x3] %vm253_vm0, %v1639_v46  ;;  %1648 = vst.msk [vmem:[#allocation9] sm:$0x3] %vm253_vm0, %v1639_v46 }
0x1623   :  { %1647 = vst.msk [vmem:[#allocation8] sm:$0x3] %vm253_vm0, %v1645_v47 }
0x1625   :  { %v1655_v48 = vld [vmem:[#allocation13 + $0x8] sm:$0xff]  ;;  %v1651_v49 = vpop.permute.xlu1 %1650 }
0x1626   :  { %v1821_v50 = vpack.c.bf16 %v1655_v48, %v1655_v48  ;;  %1653 = vst.msk [vmem:[#allocation10] sm:$0x3] %vm253_vm0, %v1651_v49 }
0x1628   :  { %1666 = vst.msk [vmem:[%s2636_s8 + $0x4] sm:$0xf] %vm1664_vm3, %v1821_v50 }
0x1629   :  { %v1667_v52 = vld [vmem:[#allocation14] sm:$0xff] }
0x162a   :  { %v1822_v53 = vpack.c.bf16 %v1667_v52, %v1667_v52 }
0x162c   :  { %1677 = vst.msk [vmem:[%s2637_s9] sm:$0xf] %vm1664_vm3, %v1822_v53 }
0x162d   :  { %1701 = vsyncmov [#allocation6] }
0x1630   :  { %s1702_s15 = vpop.sfrf %1701 }
0x1631   :  { %p1816_p0 = scmp.ne.s32.totalorder %s1702_s15, 0 }
0x1633   :  { %1706 = shalt.err (%p1816_p0)  }
0x1634   :  { %1708 = vsyncmov [#allocation6 + $0x1] }
0x1637   :  { %s1709_s16 = vpop.sfrf %1708 }
0x1638   :  { %p1817_p1 = scmp.ne.s32.totalorder %s1709_s16, 0 }
0x163a   :  { %1713 = shalt.err (%p1817_p1)  }
0x163b   :  { %1715 = vsyncmov [#allocation6 + $0x2] }
0x163e   :  { %s1716_s17 = vpop.sfrf %1715 }
0x163f   :  { %p1818_p2 = scmp.ne.s32.totalorder %s1716_s17, 0 }
0x1641   :  { %1720 = shalt.err (%p1818_p2)  }
0x1642   :  { %1722 = vsyncmov [#allocation6 + $0x3] }
0x1645   :  { %s1723_s8 = vpop.sfrf %1722 }
0x1646   :  { %p1819_p3 = scmp.ne.s32.totalorder %s1723_s8, 0 }
0x1648   :  { %1727 = shalt.err (%p1819_p3)  }

</bundles_post_ra>
